<compile_context>
chip_gen: v7x
topology: tpu7x:2x2x1
jax: 0.10.0
libtpu: 0.0.40
codegen_flags: <defaults>
</compile_context>

<pallas_src>
from functools import partial

import jax
import jax.numpy as jnp
from jax import lax
from jax.experimental import pallas as pl
from jax.experimental.pallas import tpu as pltpu

EPS = 1e-5
EXPANSION = 4


# ---------------------------------------------------------------------------
# Fused Pallas kernel: conv1x1+bn+relu -> conv3x3+bn+relu -> conv1x1+bn+res+relu
# ---------------------------------------------------------------------------
def _bottleneck_kernel(x_ref, w1_ref, s1_ref, b1_ref,
                       w2_ref, s2_ref, b2_ref,
                       w3_ref, s3_ref, b3_ref,
                       o_ref, t1_pad):
    _, H, W, Cin = x_ref.shape
    planes = w1_ref.shape[1]
    Cout = w3_ref.shape[1]

    # (1, H, W, Cin) -> (H*W, Cin), bf16 operand for the MXU.
    x2d = x_ref[0].reshape(H * W, Cin)

    # ---- conv1 (1x1) + bn1 + relu -----------------------------------------
    y1 = jnp.dot(x2d, w1_ref[...], preferred_element_type=jnp.float32)
    y1 = jnp.maximum(y1 * s1_ref[...] + b1_ref[...], 0.0)

    # Stage into a zero-padded VMEM tile for the 3x3 conv (halo = 1).
    t1_pad[...] = jnp.zeros_like(t1_pad)                       # zero halo
    t1_pad[1:H + 1, 1:W + 1, :] = y1.reshape(H, W, planes).astype(t1_pad.dtype)

    # ---- conv2 (3x3, pad=1, stride=1): 9 accumulating matmuls --------------
    acc = jnp.zeros((H * W, planes), jnp.float32)
    for dy in range(3):
        for dx in range(3):
            win = t1_pad[dy:dy + H, dx:dx + W, :].reshape(H * W, planes)
            acc = acc + jnp.dot(win, w2_ref[dy * 3 + dx],
                                preferred_element_type=jnp.float32)
    y2 = jnp.maximum(acc * s2_ref[...] + b2_ref[...], 0.0).astype(jnp.bfloat16)

    # ---- conv3 (1x1, expansion) + bn3 + residual + relu ---------------------
    y3 = jnp.dot(y2, w3_ref[...], preferred_element_type=jnp.float32)
    y3 = y3 * s3_ref[...] + b3_ref[...] + x2d.astype(jnp.float32)
    o_ref[0] = jnp.maximum(y3, 0.0).reshape(H, W, Cout).astype(o_ref.dtype)


def bottleneck_group_forward(x_nchw, qp, planes, stride=1):
    # downsample=None + residual add requires stride==1 and Cin == planes*4.
    assert stride == 1, "stride != 1 requires a downsample module (not implemented)"
    N, Cin, H, W = x_nchw.shape
    assert Cin == planes * EXPANSION, "residual path requires inplanes == planes*expansion"
    Cout = planes * EXPANSION

    # NCHW (PyTorch interface) -> NHWC bf16.  In a full network the block
    # would consume/produce NHWC bf16 directly and these boundary ops vanish.
    x = jnp.transpose(x_nchw, (0, 2, 3, 1)).astype(jnp.bfloat16)

    const2 = lambda n: (0, 0)
    const3 = lambda n: (0, 0, 0)

    out = pl.pallas_call(
        _bottleneck_kernel,
        out_shape=jax.ShapeDtypeStruct((N, H, W, Cout), jnp.bfloat16),
        grid_spec=pltpu.PrefetchScalarGridSpec(
            num_scalar_prefetch=0,
            grid=(N,),
            in_specs=[
                pl.BlockSpec((1, H, W, Cin), lambda n: (n, 0, 0, 0)),   # x
                pl.BlockSpec((Cin, planes), const2),                    # w1
                pl.BlockSpec((1, planes), const2),                      # s1
                pl.BlockSpec((1, planes), const2),                      # b1
                pl.BlockSpec((9, planes, planes), const3),              # w2 (taps)
                pl.BlockSpec((1, planes), const2),                      # s2
                pl.BlockSpec((1, planes), const2),                      # b2
                pl.BlockSpec((planes, Cout), const2),                   # w3
                pl.BlockSpec((1, Cout), const2),                        # s3
                pl.BlockSpec((1, Cout), const2),                        # b3
            ],
            out_specs=pl.BlockSpec((1, H, W, Cout), lambda n: (n, 0, 0, 0)),
            scratch_shapes=[pltpu.VMEM((H + 2, W + 2, planes), jnp.bfloat16)],
        ),
        compiler_params=pltpu.CompilerParams(
            dimension_semantics=("parallel",),        # megacore sharding on v7x
            vmem_limit_bytes=32 * 1024 * 1024,        # safe on v5e/v6e/v7x (64 MiB phys)
        ),
    )(x, qp["w1"], qp["s1"], qp["b1"], qp["w2"], qp["s2"], qp["b2"],
      qp["w3"], qp["s3"], qp["b3"])

    return jnp.transpose(out.astype(jnp.float32), (0, 3, 1, 2))        # back to NCHW


# ---------------------------------------------------------------------------
# Parameter setup (PyTorch layouts) and conversion to kernel operands
# ---------------------------------------------------------------------------
def fold_bn(gamma, beta, mean, var):
    scale = gamma / jnp.sqrt(var + EPS)
    bias = beta - mean * scale
    c = scale.shape[0]
    return (scale.reshape(1, c).astype(jnp.float32),
            bias.reshape(1, c).astype(jnp.float32))


def init_params(key, inplanes, planes):
    """Deterministic synthetic parameters mirroring the PyTorch module shapes."""
    ks = jax.random.split(key, 15)
    p = {}
    p["w1"] = 0.2 * jax.random.normal(ks[0], (planes, inplanes, 1, 1), jnp.float32)
    p["w2"] = 0.2 * jax.random.normal(ks[1], (planes, planes, 3, 3), jnp.float32)
    p["w3"] = 0.2 * jax.random.normal(ks[2], (planes * EXPANSION, planes, 1, 1), jnp.float32)

    def bn_params(k0, k1, k2, k3, c):
        gamma = 1.0 + 0.1 * jax.random.normal(k0, (c,), jnp.float32)
        beta = 0.1 * jax.random.normal(k1, (c,), jnp.float32)
        mean = 0.1 * jax.random.normal(k2, (c,), jnp.float32)
        var = 1.0 + 0.5 * jax.random.uniform(k3, (c,), jnp.float32)
        return gamma, beta, mean, var

    p["bn1"] = bn_params(ks[3], ks[4], ks[5], ks[6], planes)
    p["bn2"] = bn_params(ks[7], ks[8], ks[9], ks[10], planes)
    p["bn3"] = bn_params(ks[11], ks[12], ks[13], ks[14], planes * EXPANSION)
    return p


def prepare_params(p):
    """PyTorch OIHW weights -> bf16 matmul operands + folded f32 BN scale/bias."""
    planes = p["w1"].shape[0]
    q = {}
    q["w1"] = p["w1"][:, :, 0, 0].T.astype(jnp.bfloat16)                  # (Cin, planes)
    q["w2"] = (jnp.transpose(p["w2"], (2, 3, 1, 0))                       # (3,3,I,O)
               .reshape(9, planes, planes).astype(jnp.bfloat16))          # (tap, I, O)
    q["w3"] = p["w3"][:, :, 0, 0].T.astype(jnp.bfloat16)                  # (planes, planes*4)
    q["s1"], q["b1"] = fold_bn(*p["bn1"])
    q["s2"], q["b2"] = fold_bn(*p["bn2"])
    q["s3"], q["b3"] = fold_bn(*p["bn3"])
    return q


# ---------------------------------------------------------------------------
# Pure-JAX reference (mirrors the PyTorch forward, inference-mode BN, f32)
# ---------------------------------------------------------------------------
def reference_forward(x_nchw, p, stride=1):
    dn = ("NCHW", "OIHW", "NCHW")

    def bn(x, params):
        gamma, beta, mean, var = params
        scale = gamma / jnp.sqrt(var + EPS)
        bias = beta - mean * scale
        return x * scale[None, :, None, None] + bias[None, :, None, None]

    out = lax.conv_general_dilated(x_nchw, p["w1"], (1, 1), "VALID",
                                   dimension_numbers=dn, precision=lax.Precision.HIGHEST)
    out = jnp.maximum(bn(out, p["bn1"]), 0.0)
    out = lax.conv_general_dilated(out, p["w2"], (stride, stride), ((1, 1), (1, 1)),
                                   dimension_numbers=dn, precision=lax.Precision.HIGHEST)
    out = jnp.maximum(bn(out, p["bn2"]), 0.0)
    out = lax.conv_general_dilated(out, p["w3"], (1, 1), "VALID",
                                   dimension_numbers=dn, precision=lax.Precision.HIGHEST)
    out = bn(out, p["bn3"]) + x_nchw
    return jnp.maximum(out, 0.0)


# ---------------------------------------------------------------------------
if __name__ == "__main__":
    key = jax.random.PRNGKey(0)
    kx, kp = jax.random.split(key)

    # Small shapes consistent with the module; residual path (downsample=None)
    # requires inplanes == planes * expansion and stride == 1.
    batch, planes, H, W = 2, 4, 16, 16
    inplanes = planes * EXPANSION                     # 16
    stride = 1

    x = jax.random.normal(kx, (batch, inplanes, H, W), dtype=jnp.float32)
    params = init_params(kp, inplanes, planes)
    qparams = prepare_params(params)

    fwd = jax.jit(partial(bottleneck_group_forward, planes=planes, stride=stride))
    out = jax.block_until_ready(fwd(x, qparams))
    assert out.shape == (batch, planes * EXPANSION, H, W), out.shape

    ref = jax.block_until_ready(reference_forward(x, params, stride))
    max_err = float(jnp.max(jnp.abs(out - ref)))
    # bf16 MXU operands + bf16 activation round-trips => loosen vs f32-HIGHEST ref.
    assert max_err < 5e-2, max_err

    print("KERNEL_OK")
</pallas_src>

<mosaic_0001>
module attributes {stable_mosaic.version = 11 : i64} {
  func.func @_bottleneck_kernel(%arg0: i32, %arg1: memref<1x16x16x16xbf16, #tpu.memory_space<vmem>>, %arg2: memref<16x4xbf16, #tpu.memory_space<vmem>>, %arg3: memref<1x4xf32, #tpu.memory_space<vmem>>, %arg4: memref<1x4xf32, #tpu.memory_space<vmem>>, %arg5: memref<9x4x4xbf16, #tpu.memory_space<vmem>>, %arg6: memref<1x4xf32, #tpu.memory_space<vmem>>, %arg7: memref<1x4xf32, #tpu.memory_space<vmem>>, %arg8: memref<4x16xbf16, #tpu.memory_space<vmem>>, %arg9: memref<1x16xf32, #tpu.memory_space<vmem>>, %arg10: memref<1x16xf32, #tpu.memory_space<vmem>>, %arg11: memref<1x16x16x16xbf16, #tpu.memory_space<vmem>>, %arg12: memref<18x18x4xbf16, #tpu.memory_space<vmem>>) attributes {dimension_semantics = [#tpu.dimension_semantics<parallel>], iteration_bounds = array<i64: 2>, scalar_prefetch = 0 : i64, scratch_operands = 1 : i64, tpu.core_type = #tpu.core_type<tc>, window_params = [{transform_indices = @transform_0, window_bounds = array<i64: 1, 16, 16, 16>}, {pipeline_mode = #tpu.pipeline_mode<synchronous>, transform_indices = @transform_1, window_bounds = array<i64: 16, 4>}, {pipeline_mode = #tpu.pipeline_mode<synchronous>, transform_indices = @transform_2, window_bounds = array<i64: 1, 4>}, {pipeline_mode = #tpu.pipeline_mode<synchronous>, transform_indices = @transform_3, window_bounds = array<i64: 1, 4>}, {pipeline_mode = #tpu.pipeline_mode<synchronous>, transform_indices = @transform_4, window_bounds = array<i64: 9, 4, 4>}, {pipeline_mode = #tpu.pipeline_mode<synchronous>, transform_indices = @transform_5, window_bounds = array<i64: 1, 4>}, {pipeline_mode = #tpu.pipeline_mode<synchronous>, transform_indices = @transform_6, window_bounds = array<i64: 1, 4>}, {pipeline_mode = #tpu.pipeline_mode<synchronous>, transform_indices = @transform_7, window_bounds = array<i64: 4, 16>}, {pipeline_mode = #tpu.pipeline_mode<synchronous>, transform_indices = @transform_8, window_bounds = array<i64: 1, 16>}, {pipeline_mode = #tpu.pipeline_mode<synchronous>, transform_indices = @transform_9, window_bounds = array<i64: 1, 16>}, {transform_indices = @transform_10, window_bounds = array<i64: 1, 16, 16, 16>}]} {
    %c0 = arith.constant 0 : index
    %c0_0 = arith.constant 0 : index
    %c0_1 = arith.constant 0 : index
    %c0_2 = arith.constant 0 : index
    %0 = vector.load %arg1[%c0, %c0_0, %c0_1, %c0_2] : memref<1x16x16x16xbf16, #tpu.memory_space<vmem>>, vector<1x16x16x16xbf16>
    %1 = vector.shape_cast %0 : vector<1x16x16x16xbf16> to vector<16x16x16xbf16>
    %2 = vector.shape_cast %1 : vector<16x16x16xbf16> to vector<256x16xbf16>
    %c0_3 = arith.constant 0 : index
    %c0_4 = arith.constant 0 : index
    %3 = vector.load %arg2[%c0_3, %c0_4] : memref<16x4xbf16, #tpu.memory_space<vmem>>, vector<16x4xbf16>
    %cst = arith.constant dense<0.000000e+00> : vector<256x4xf32>
    %4 = tpu.matmul %2, %3, %cst {dimension_numbers = #tpu.dot_dimension_numbers<[1], [0], [0], [1], [0, 0, 1, 1], [], []>} : vector<256x16xbf16>, vector<16x4xbf16>, vector<256x4xf32> -> vector<256x4xf32>
    %c0_5 = arith.constant 0 : index
    %c0_6 = arith.constant 0 : index
    %5 = vector.load %arg3[%c0_5, %c0_6] : memref<1x4xf32, #tpu.memory_space<vmem>>, vector<1x4xf32>
    %6 = vector.broadcast %5 : vector<1x4xf32> to vector<256x4xf32>
    %7 = arith.mulf %4, %6 : vector<256x4xf32>
    %c0_7 = arith.constant 0 : index
    %c0_8 = arith.constant 0 : index
    %8 = vector.load %arg4[%c0_7, %c0_8] : memref<1x4xf32, #tpu.memory_space<vmem>>, vector<1x4xf32>
    %9 = vector.broadcast %8 : vector<1x4xf32> to vector<256x4xf32>
    %10 = arith.addf %7, %9 : vector<256x4xf32>
    %cst_9 = arith.constant 0.000000e+00 : f32
    %11 = vector.broadcast %cst_9 : f32 to vector<256x4xf32>
    %12 = arith.maximumf %10, %11 : vector<256x4xf32>
    %cst_10 = arith.constant 0.000000e+00 : bf16
    %13 = vector.broadcast %cst_10 : bf16 to vector<18x18x4xbf16>
    %c0_11 = arith.constant 0 : index
    %c0_12 = arith.constant 0 : index
    %c0_13 = arith.constant 0 : index
    %14 = vector.load %arg12[%c0_11, %c0_12, %c0_13] : memref<18x18x4xbf16, #tpu.memory_space<vmem>>, vector<18x18x4xbf16>
    tpu.vector_store %arg12[%c0_11, %c0_12, %c0_13], %13 {strides = array<i32>} : memref<18x18x4xbf16, #tpu.memory_space<vmem>>, vector<18x18x4xbf16>,
    %15 = vector.shape_cast %12 : vector<256x4xf32> to vector<16x16x4xf32>
    %16 = arith.truncf %15 : vector<16x16x4xf32> to vector<16x16x4xbf16>
    %c1 = arith.constant 1 : index
    %c1_14 = arith.constant 1 : index
    %c0_15 = arith.constant 0 : index
    %17 = vector.load %arg12[%c1, %c1_14, %c0_15] : memref<18x18x4xbf16, #tpu.memory_space<vmem>>, vector<16x16x4xbf16>
    tpu.vector_store %arg12[%c1, %c1_14, %c0_15], %16 {strides = array<i32>} : memref<18x18x4xbf16, #tpu.memory_space<vmem>>, vector<16x16x4xbf16>,
    %cst_16 = arith.constant 0.000000e+00 : f32
    %18 = vector.broadcast %cst_16 : f32 to vector<256x4xf32>
    %c0_17 = arith.constant 0 : index
    %c0_18 = arith.constant 0 : index
    %c0_19 = arith.constant 0 : index
    %19 = vector.load %arg12[%c0_17, %c0_18, %c0_19] : memref<18x18x4xbf16, #tpu.memory_space<vmem>>, vector<16x16x4xbf16>
    %20 = vector.shape_cast %19 : vector<16x16x4xbf16> to vector<256x4xbf16>
    %c0_20 = arith.constant 0 : index
    %c0_21 = arith.constant 0 : index
    %c0_22 = arith.constant 0 : index
    %21 = vector.load %arg5[%c0_20, %c0_21, %c0_22] : memref<9x4x4xbf16, #tpu.memory_space<vmem>>, vector<1x4x4xbf16>
    %22 = vector.shape_cast %21 : vector<1x4x4xbf16> to vector<4x4xbf16>
    %cst_23 = arith.constant dense<0.000000e+00> : vector<256x4xf32>
    %23 = tpu.matmul %20, %22, %cst_23 {dimension_numbers = #tpu.dot_dimension_numbers<[1], [0], [0], [1], [0, 0, 1, 1], [], []>} : vector<256x4xbf16>, vector<4x4xbf16>, vector<256x4xf32> -> vector<256x4xf32>
    %24 = arith.addf %18, %23 : vector<256x4xf32>
    %c0_24 = arith.constant 0 : index
    %c1_25 = arith.constant 1 : index
    %c0_26 = arith.constant 0 : index
    %25 = vector.load %arg12[%c0_24, %c1_25, %c0_26] : memref<18x18x4xbf16, #tpu.memory_space<vmem>>, vector<16x16x4xbf16>
    %26 = vector.shape_cast %25 : vector<16x16x4xbf16> to vector<256x4xbf16>
    %c1_27 = arith.constant 1 : index
    %c0_28 = arith.constant 0 : index
    %c0_29 = arith.constant 0 : index
    %27 = vector.load %arg5[%c1_27, %c0_28, %c0_29] : memref<9x4x4xbf16, #tpu.memory_space<vmem>>, vector<1x4x4xbf16>
    %28 = vector.shape_cast %27 : vector<1x4x4xbf16> to vector<4x4xbf16>
    %cst_30 = arith.constant dense<0.000000e+00> : vector<256x4xf32>
    %29 = tpu.matmul %26, %28, %cst_30 {dimension_numbers = #tpu.dot_dimension_numbers<[1], [0], [0], [1], [0, 0, 1, 1], [], []>} : vector<256x4xbf16>, vector<4x4xbf16>, vector<256x4xf32> -> vector<256x4xf32>
    %30 = arith.addf %24, %29 : vector<256x4xf32>
    %c0_31 = arith.constant 0 : index
    %c2 = arith.constant 2 : index
    %c0_32 = arith.constant 0 : index
    %31 = vector.load %arg12[%c0_31, %c2, %c0_32] : memref<18x18x4xbf16, #tpu.memory_space<vmem>>, vector<16x16x4xbf16>
    %32 = vector.shape_cast %31 : vector<16x16x4xbf16> to vector<256x4xbf16>
    %c2_33 = arith.constant 2 : index
    %c0_34 = arith.constant 0 : index
    %c0_35 = arith.constant 0 : index
    %33 = vector.load %arg5[%c2_33, %c0_34, %c0_35] : memref<9x4x4xbf16, #tpu.memory_space<vmem>>, vector<1x4x4xbf16>
    %34 = vector.shape_cast %33 : vector<1x4x4xbf16> to vector<4x4xbf16>
    %cst_36 = arith.constant dense<0.000000e+00> : vector<256x4xf32>
    %35 = tpu.matmul %32, %34, %cst_36 {dimension_numbers = #tpu.dot_dimension_numbers<[1], [0], [0], [1], [0, 0, 1, 1], [], []>} : vector<256x4xbf16>, vector<4x4xbf16>, vector<256x4xf32> -> vector<256x4xf32>
    %36 = arith.addf %30, %35 : vector<256x4xf32>
    %c1_37 = arith.constant 1 : index
    %c0_38 = arith.constant 0 : index
    %c0_39 = arith.constant 0 : index
    %37 = vector.load %arg12[%c1_37, %c0_38, %c0_39] : memref<18x18x4xbf16, #tpu.memory_space<vmem>>, vector<16x16x4xbf16>
    %38 = vector.shape_cast %37 : vector<16x16x4xbf16> to vector<256x4xbf16>
    %c3 = arith.constant 3 : index
    %c0_40 = arith.constant 0 : index
    %c0_41 = arith.constant 0 : index
    %39 = vector.load %arg5[%c3, %c0_40, %c0_41] : memref<9x4x4xbf16, #tpu.memory_space<vmem>>, vector<1x4x4xbf16>
    %40 = vector.shape_cast %39 : vector<1x4x4xbf16> to vector<4x4xbf16>
    %cst_42 = arith.constant dense<0.000000e+00> : vector<256x4xf32>
    %41 = tpu.matmul %38, %40, %cst_42 {dimension_numbers = #tpu.dot_dimension_numbers<[1], [0], [0], [1], [0, 0, 1, 1], [], []>} : vector<256x4xbf16>, vector<4x4xbf16>, vector<256x4xf32> -> vector<256x4xf32>
    %42 = arith.addf %36, %41 : vector<256x4xf32>
    %c1_43 = arith.constant 1 : index
    %c1_44 = arith.constant 1 : index
    %c0_45 = arith.constant 0 : index
    %43 = vector.load %arg12[%c1_43, %c1_44, %c0_45] : memref<18x18x4xbf16, #tpu.memory_space<vmem>>, vector<16x16x4xbf16>
    %44 = vector.shape_cast %43 : vector<16x16x4xbf16> to vector<256x4xbf16>
    %c4 = arith.constant 4 : index
    %c0_46 = arith.constant 0 : index
    %c0_47 = arith.constant 0 : index
    %45 = vector.load %arg5[%c4, %c0_46, %c0_47] : memref<9x4x4xbf16, #tpu.memory_space<vmem>>, vector<1x4x4xbf16>
    %46 = vector.shape_cast %45 : vector<1x4x4xbf16> to vector<4x4xbf16>
    %cst_48 = arith.constant dense<0.000000e+00> : vector<256x4xf32>
    %47 = tpu.matmul %44, %46, %cst_48 {dimension_numbers = #tpu.dot_dimension_numbers<[1], [0], [0], [1], [0, 0, 1, 1], [], []>} : vector<256x4xbf16>, vector<4x4xbf16>, vector<256x4xf32> -> vector<256x4xf32>
    %48 = arith.addf %42, %47 : vector<256x4xf32>
    %c1_49 = arith.constant 1 : index
    %c2_50 = arith.constant 2 : index
    %c0_51 = arith.constant 0 : index
    %49 = vector.load %arg12[%c1_49, %c2_50, %c0_51] : memref<18x18x4xbf16, #tpu.memory_space<vmem>>, vector<16x16x4xbf16>
    %50 = vector.shape_cast %49 : vector<16x16x4xbf16> to vector<256x4xbf16>
    %c5 = arith.constant 5 : index
    %c0_52 = arith.constant 0 : index
    %c0_53 = arith.constant 0 : index
    %51 = vector.load %arg5[%c5, %c0_52, %c0_53] : memref<9x4x4xbf16, #tpu.memory_space<vmem>>, vector<1x4x4xbf16>
    %52 = vector.shape_cast %51 : vector<1x4x4xbf16> to vector<4x4xbf16>
    %cst_54 = arith.constant dense<0.000000e+00> : vector<256x4xf32>
    %53 = tpu.matmul %50, %52, %cst_54 {dimension_numbers = #tpu.dot_dimension_numbers<[1], [0], [0], [1], [0, 0, 1, 1], [], []>} : vector<256x4xbf16>, vector<4x4xbf16>, vector<256x4xf32> -> vector<256x4xf32>
    %54 = arith.addf %48, %53 : vector<256x4xf32>
    %c2_55 = arith.constant 2 : index
    %c0_56 = arith.constant 0 : index
    %c0_57 = arith.constant 0 : index
    %55 = vector.load %arg12[%c2_55, %c0_56, %c0_57] : memref<18x18x4xbf16, #tpu.memory_space<vmem>>, vector<16x16x4xbf16>
    %56 = vector.shape_cast %55 : vector<16x16x4xbf16> to vector<256x4xbf16>
    %c6 = arith.constant 6 : index
    %c0_58 = arith.constant 0 : index
    %c0_59 = arith.constant 0 : index
    %57 = vector.load %arg5[%c6, %c0_58, %c0_59] : memref<9x4x4xbf16, #tpu.memory_space<vmem>>, vector<1x4x4xbf16>
    %58 = vector.shape_cast %57 : vector<1x4x4xbf16> to vector<4x4xbf16>
    %cst_60 = arith.constant dense<0.000000e+00> : vector<256x4xf32>
    %59 = tpu.matmul %56, %58, %cst_60 {dimension_numbers = #tpu.dot_dimension_numbers<[1], [0], [0], [1], [0, 0, 1, 1], [], []>} : vector<256x4xbf16>, vector<4x4xbf16>, vector<256x4xf32> -> vector<256x4xf32>
    %60 = arith.addf %54, %59 : vector<256x4xf32>
    %c2_61 = arith.constant 2 : index
    %c1_62 = arith.constant 1 : index
    %c0_63 = arith.constant 0 : index
    %61 = vector.load %arg12[%c2_61, %c1_62, %c0_63] : memref<18x18x4xbf16, #tpu.memory_space<vmem>>, vector<16x16x4xbf16>
    %62 = vector.shape_cast %61 : vector<16x16x4xbf16> to vector<256x4xbf16>
    %c7 = arith.constant 7 : index
    %c0_64 = arith.constant 0 : index
    %c0_65 = arith.constant 0 : index
    %63 = vector.load %arg5[%c7, %c0_64, %c0_65] : memref<9x4x4xbf16, #tpu.memory_space<vmem>>, vector<1x4x4xbf16>
    %64 = vector.shape_cast %63 : vector<1x4x4xbf16> to vector<4x4xbf16>
    %cst_66 = arith.constant dense<0.000000e+00> : vector<256x4xf32>
    %65 = tpu.matmul %62, %64, %cst_66 {dimension_numbers = #tpu.dot_dimension_numbers<[1], [0], [0], [1], [0, 0, 1, 1], [], []>} : vector<256x4xbf16>, vector<4x4xbf16>, vector<256x4xf32> -> vector<256x4xf32>
    %66 = arith.addf %60, %65 : vector<256x4xf32>
    %c2_67 = arith.constant 2 : index
    %c2_68 = arith.constant 2 : index
    %c0_69 = arith.constant 0 : index
    %67 = vector.load %arg12[%c2_67, %c2_68, %c0_69] : memref<18x18x4xbf16, #tpu.memory_space<vmem>>, vector<16x16x4xbf16>
    %68 = vector.shape_cast %67 : vector<16x16x4xbf16> to vector<256x4xbf16>
    %c8 = arith.constant 8 : index
    %c0_70 = arith.constant 0 : index
    %c0_71 = arith.constant 0 : index
    %69 = vector.load %arg5[%c8, %c0_70, %c0_71] : memref<9x4x4xbf16, #tpu.memory_space<vmem>>, vector<1x4x4xbf16>
    %70 = vector.shape_cast %69 : vector<1x4x4xbf16> to vector<4x4xbf16>
    %cst_72 = arith.constant dense<0.000000e+00> : vector<256x4xf32>
    %71 = tpu.matmul %68, %70, %cst_72 {dimension_numbers = #tpu.dot_dimension_numbers<[1], [0], [0], [1], [0, 0, 1, 1], [], []>} : vector<256x4xbf16>, vector<4x4xbf16>, vector<256x4xf32> -> vector<256x4xf32>
    %72 = arith.addf %66, %71 : vector<256x4xf32>
    %c0_73 = arith.constant 0 : index
    %c0_74 = arith.constant 0 : index
    %73 = vector.load %arg6[%c0_73, %c0_74] : memref<1x4xf32, #tpu.memory_space<vmem>>, vector<1x4xf32>
    %74 = vector.broadcast %73 : vector<1x4xf32> to vector<256x4xf32>
    %75 = arith.mulf %72, %74 : vector<256x4xf32>
    %c0_75 = arith.constant 0 : index
    %c0_76 = arith.constant 0 : index
    %76 = vector.load %arg7[%c0_75, %c0_76] : memref<1x4xf32, #tpu.memory_space<vmem>>, vector<1x4xf32>
    %77 = vector.broadcast %76 : vector<1x4xf32> to vector<256x4xf32>
    %78 = arith.addf %75, %77 : vector<256x4xf32>
    %cst_77 = arith.constant 0.000000e+00 : f32
    %79 = vector.broadcast %cst_77 : f32 to vector<256x4xf32>
    %80 = arith.maximumf %78, %79 : vector<256x4xf32>
    %81 = arith.truncf %80 : vector<256x4xf32> to vector<256x4xbf16>
    %c0_78 = arith.constant 0 : index
    %c0_79 = arith.constant 0 : index
    %82 = vector.load %arg8[%c0_78, %c0_79] : memref<4x16xbf16, #tpu.memory_space<vmem>>, vector<4x16xbf16>
    %cst_80 = arith.constant dense<0.000000e+00> : vector<256x16xf32>
    %83 = tpu.matmul %81, %82, %cst_80 {dimension_numbers = #tpu.dot_dimension_numbers<[1], [0], [0], [1], [0, 0, 1, 1], [], []>} : vector<256x4xbf16>, vector<4x16xbf16>, vector<256x16xf32> -> vector<256x16xf32>
    %c0_81 = arith.constant 0 : index
    %c0_82 = arith.constant 0 : index
    %84 = vector.load %arg9[%c0_81, %c0_82] : memref<1x16xf32, #tpu.memory_space<vmem>>, vector<1x16xf32>
    %85 = vector.broadcast %84 : vector<1x16xf32> to vector<256x16xf32>
    %86 = arith.mulf %83, %85 : vector<256x16xf32>
    %c0_83 = arith.constant 0 : index
    %c0_84 = arith.constant 0 : index
    %87 = vector.load %arg10[%c0_83, %c0_84] : memref<1x16xf32, #tpu.memory_space<vmem>>, vector<1x16xf32>
    %88 = vector.broadcast %87 : vector<1x16xf32> to vector<256x16xf32>
    %89 = arith.addf %86, %88 : vector<256x16xf32>
    %90 = arith.extf %2 : vector<256x16xbf16> to vector<256x16xf32>
    %91 = arith.addf %89, %90 : vector<256x16xf32>
    %cst_85 = arith.constant 0.000000e+00 : f32
    %92 = vector.broadcast %cst_85 : f32 to vector<256x16xf32>
    %93 = arith.maximumf %91, %92 : vector<256x16xf32>
    %94 = vector.shape_cast %93 : vector<256x16xf32> to vector<16x16x16xf32>
    %95 = arith.truncf %94 : vector<16x16x16xf32> to vector<16x16x16xbf16>
    %c0_86 = arith.constant 0 : index
    %c0_87 = arith.constant 0 : index
    %c0_88 = arith.constant 0 : index
    %c0_89 = arith.constant 0 : index
    %96 = vector.load %arg11[%c0_86, %c0_87, %c0_88, %c0_89] : memref<1x16x16x16xbf16, #tpu.memory_space<vmem>>, vector<1x16x16x16xbf16>
    %97 = vector.shape_cast %96 : vector<1x16x16x16xbf16> to vector<16x16x16xbf16>
    %98 = vector.shape_cast %95 : vector<16x16x16xbf16> to vector<1x16x16x16xbf16>
    tpu.vector_store %arg11[%c0_86, %c0_87, %c0_88, %c0_89], %98 {strides = array<i32>} : memref<1x16x16x16xbf16, #tpu.memory_space<vmem>>, vector<1x16x16x16xbf16>,
    return
  }
  func.func @transform_0(%arg0: i32) -> (i32, i32, i32, i32) {
    %c0_i32 = arith.constant 0 : i32
    %c0_i32_0 = arith.constant 0 : i32
    %c0_i32_1 = arith.constant 0 : i32
    %c0_i32_2 = arith.constant 0 : i32
    return %arg0, %c0_i32, %c0_i32_0, %c0_i32_1 : i32, i32, i32, i32
  }
  func.func @transform_1(%arg0: i32) -> (i32, i32) {
    %c0_i32 = arith.constant 0 : i32
    %c0_i32_0 = arith.constant 0 : i32
    %c0_i32_1 = arith.constant 0 : i32
    return %c0_i32, %c0_i32_0 : i32, i32
  }
  func.func @transform_2(%arg0: i32) -> (i32, i32) {
    %c0_i32 = arith.constant 0 : i32
    %c0_i32_0 = arith.constant 0 : i32
    %c0_i32_1 = arith.constant 0 : i32
    return %c0_i32, %c0_i32_0 : i32, i32
  }
  func.func @transform_3(%arg0: i32) -> (i32, i32) {
    %c0_i32 = arith.constant 0 : i32
    %c0_i32_0 = arith.constant 0 : i32
    %c0_i32_1 = arith.constant 0 : i32
    return %c0_i32, %c0_i32_0 : i32, i32
  }
  func.func @transform_4(%arg0: i32) -> (i32, i32, i32) {
    %c0_i32 = arith.constant 0 : i32
    %c0_i32_0 = arith.constant 0 : i32
    %c0_i32_1 = arith.constant 0 : i32
    %c0_i32_2 = arith.constant 0 : i32
    return %c0_i32, %c0_i32_0, %c0_i32_1 : i32, i32, i32
  }
  func.func @transform_5(%arg0: i32) -> (i32, i32) {
    %c0_i32 = arith.constant 0 : i32
    %c0_i32_0 = arith.constant 0 : i32
    %c0_i32_1 = arith.constant 0 : i32
    return %c0_i32, %c0_i32_0 : i32, i32
  }
  func.func @transform_6(%arg0: i32) -> (i32, i32) {
    %c0_i32 = arith.constant 0 : i32
    %c0_i32_0 = arith.constant 0 : i32
    %c0_i32_1 = arith.constant 0 : i32
    return %c0_i32, %c0_i32_0 : i32, i32
  }
  func.func @transform_7(%arg0: i32) -> (i32, i32) {
    %c0_i32 = arith.constant 0 : i32
    %c0_i32_0 = arith.constant 0 : i32
    %c0_i32_1 = arith.constant 0 : i32
    return %c0_i32, %c0_i32_0 : i32, i32
  }
  func.func @transform_8(%arg0: i32) -> (i32, i32) {
    %c0_i32 = arith.constant 0 : i32
    %c0_i32_0 = arith.constant 0 : i32
    %c0_i32_1 = arith.constant 0 : i32
    return %c0_i32, %c0_i32_0 : i32, i32
  }
  func.func @transform_9(%arg0: i32) -> (i32, i32) {
    %c0_i32 = arith.constant 0 : i32
    %c0_i32_0 = arith.constant 0 : i32
    %c0_i32_1 = arith.constant 0 : i32
    return %c0_i32, %c0_i32_0 : i32, i32
  }
  func.func @transform_10(%arg0: i32) -> (i32, i32, i32, i32) {
    %c0_i32 = arith.constant 0 : i32
    %c0_i32_0 = arith.constant 0 : i32
    %c0_i32_1 = arith.constant 0 : i32
    %c0_i32_2 = arith.constant 0 : i32
    return %arg0, %c0_i32, %c0_i32_0, %c0_i32_1 : i32, i32, i32, i32
  }
}

</mosaic_0001>

<bundles_post_ra>
// kernel: bottleneck_group_forward.1
= control target key start
LH: loop header
LB: loop body
LE: loop exit
PB: predicated region body
PF: predicated region fallthrough
CT: control target
= control target key end

     0   :  { %s8257_s13 = smov 0   ;;  %s10259_s0 = inlined_call_operand.vmem [shape: bf16[2,16,16,16], index: 0, kind: input, shape index: {}]   ;;  %s10260_s1 = inlined_call_operand.vmem [shape: bf16[16,4], index: 1, kind: input, shape index: {}]   ;;  %s10261_s2 = inlined_call_operand.vmem [shape: f32[1,4], index: 2, kind: input, shape index: {}]   ;;  %s10262_s3 = inlined_call_operand.vmem [shape: f32[1,4], index: 3, kind: input, shape index: {}]   ;;  %s10263_s4 = inlined_call_operand.vmem [shape: bf16[9,4,4], index: 4, kind: input, shape index: {}]   ;;  %s10264_s5 = inlined_call_operand.vmem [shape: f32[1,4], index: 5, kind: input, shape index: {}]   ;;  %s10265_s6 = inlined_call_operand.vmem [shape: f32[1,4], index: 6, kind: input, shape index: {}]   ;;  %s10266_s7 = inlined_call_operand.vmem [shape: bf16[4,16], index: 7, kind: input, shape index: {}]   ;;  %s10267_s8 = inlined_call_operand.vmem [shape: f32[1,16], index: 8, kind: input, shape index: {}]   ;;  %s10268_s9 = inlined_call_operand.vmem [shape: f32[1,16], index: 9, kind: input, shape index: {}]   ;;  %s10269_s10 = inlined_call_operand.vmem [shape: bf16[2,16,16,16], index: 10, kind: output, shape index: {}]  }
   0x1 LB: > { %s6681_s14 = sadd.s32 4294967295, %s8199_s13   ;;  %p6685_p0 = scmp.ge.s32.totalorder %s8199_s13, 1  ;;  %s8199_s13 = sphi %s8257_s13, %s20_s13  }
   0x2   : > { %p312_p1 = scmp.lt.s32.totalorder %s8199_s13, 3 }
   0x4   : > { %p313_p2 = pnand %p6685_p0, %p312_p1 }
   0x6   : > { %316 = sbr.rel (%p313_p2) target bundleno = 1171 (0x493), region = 60 }
   0xd   : > { %v8060_v0 = vld [vmem:[%s10260_s1] sm:$0xff]   ;;  %p350_p3 = scmp.lt.s32.totalorder %s6681_s14, 1  ;;  %vm481_vm0 = vcmask 130048   ;;  %vm801_vm1 = vcmask 27648   ;;  %v8201_v17 = vmov 0   ;;  %vm804_vm2 = vcmask 24576  }
   0xe   : > { %7408 = vmatprep.subr.bf16.mxu0 %v8060_v0  ;;  %809 = vst.msk [vmem:[#allocation2 + $0x18] sm:$0xf] %vm801_vm1, %v8201_v17  ;;  %802 = vst.msk [vmem:[#allocation2] sm:$0xf] %vm801_vm1, %v8201_v17  ;;  %vm1443_vm3 = vsmask.f32 3328 }
   0xf   : > { %s10372_s14 = smov (!%p350_p3, %s6681_s14), 1  ;;  %7409 = vmatpush3.bf16.msra.mxu0 %v8060_v0  ;;  %803 = vst.msk [vmem:[#allocation2 + $0x4] sm:$0xf] %vm801_vm1, %v8201_v17  ;;  %806 = vst.msk [vmem:[#allocation2 + $0xc] sm:$0xf] %vm801_vm1, %v8201_v17  ;;  %vm1929_vm5 = vcmask 1041408  }
  0x10   : > { %s7155_s17 = sshll.u32 %s10372_s14, 7  ;;  %807 = vst.msk [vmem:[#allocation2 + $0x10] sm:$0xf] %vm801_vm1, %v8201_v17  ;;  %810 = vst.msk [vmem:[#allocation2 + $0x1c] sm:$0xf] %vm801_vm1, %v8201_v17  ;;  %vm1880_vm7 = vcmask 31744  }
  0x11   : > { %s8276_s20 = scalar_lea.vmem %s10259_s0, %s7155_s17  ;;  %812 = vst.msk [vmem:[#allocation2 + $0x24] sm:$0xf] %vm801_vm1, %v8201_v17  ;;  %813 = vst.msk [vmem:[#allocation2 + $0x28] sm:$0xf] %vm801_vm1, %v8201_v17  ;;  %vm1444_vm4 = vsmask.f32 7440  ;;  %s10120_s11 = scalar_lea.vmem %s10269_s10, %s7155_s17 }
  0x12   : > { %v361_v1 = vld [vmem:[%s8276_s20] sm:$0xff]   ;;  %v363_v2 = vld [vmem:[%s8276_s20 + $0x8] sm:$0xff]   ;;  %v365_v3 = vld [vmem:[%s8276_s20 + $0x10] sm:$0xff]   ;;  %815 = vst.msk [vmem:[#allocation2 + $0x30] sm:$0xf] %vm801_vm1, %v8201_v17  ;;  %vm2434_vm14 = vcmask 1042432  }
  0x13   : > { %7410 = vmatprep.mubr.msk.bf16.mxu0 %vm481_vm0, %v361_v1  ;;  %v367_v4 = vld [vmem:[%s8276_s20 + $0x18] sm:$0xff]   ;;  %v369_v5 = vld [vmem:[%s8276_s20 + $0x20] sm:$0xff]   ;;  %v371_v6 = vld [vmem:[%s8276_s20 + $0x28] sm:$0xff]   ;;  %816 = vst.msk [vmem:[#allocation2 + $0x34] sm:$0xf] %vm801_vm1, %v8201_v17  ;;  %vm2435_vm15 = vcmask 1046532  }
  0x14   : > { %7411 = vmatmul.mubr.msk.bf16.vlgmr.msra.gmra.mrb[0].mxu0 %vm481_vm0, %v363_v2  ;;  %v373_v7 = vld [vmem:[%s8276_s20 + $0x30] sm:$0xff]   ;;  %v375_v8 = vld [vmem:[%s8276_s20 + $0x38] sm:$0xff]   ;;  %v377_v9 = vld [vmem:[%s8276_s20 + $0x40] sm:$0xff]   ;;  %818 = vst.msk [vmem:[#allocation2 + $0x3c] sm:$0xf] %vm801_vm1, %v8201_v17 }
  0x15   : > { %7414 = vmatprep.mubr.msk.bf16.mxu0 %vm481_vm0, %v365_v3  ;;  %v379_v10 = vld [vmem:[%s8276_s20 + $0x48] sm:$0xff]   ;;  %v381_v11 = vld [vmem:[%s8276_s20 + $0x50] sm:$0xff]   ;;  %v383_v12 = vld [vmem:[%s8276_s20 + $0x58] sm:$0xff]   ;;  %819 = vst.msk [vmem:[#allocation2 + $0x40] sm:$0xf] %vm801_vm1, %v8201_v17 }
  0x16   : > { %v385_v13 = vld [vmem:[%s8276_s20 + $0x60] sm:$0xff]   ;;  %v387_v14 = vld [vmem:[%s8276_s20 + $0x68] sm:$0xff]   ;;  %v389_v15 = vld [vmem:[%s8276_s20 + $0x70] sm:$0xff]   ;;  %821 = vst.msk [vmem:[#allocation2 + $0x48] sm:$0xf] %vm801_vm1, %v8201_v17 }
  0x17   : > { %v391_v16 = vld [vmem:[%s8276_s20 + $0x78] sm:$0xff]   ;;  %822 = vst.msk [vmem:[#allocation2 + $0x4c] sm:$0xf] %vm801_vm1, %v8201_v17  ;;  %824 = vst.msk [vmem:[#allocation2 + $0x54] sm:$0xf] %vm801_vm1, %v8201_v17 }
  0x18   : > { %825 = vst.msk [vmem:[#allocation2 + $0x58] sm:$0xf] %vm801_vm1, %v8201_v17  ;;  %827 = vst.msk [vmem:[#allocation2 + $0x60] sm:$0xf] %vm801_vm1, %v8201_v17  ;;  %v1394_v18 = vld [vmem:[#allocation2] sm:$0xf] }
  0x19   : > { %828 = vst.msk [vmem:[#allocation2 + $0x64] sm:$0xf] %vm801_vm1, %v8201_v17  ;;  %830 = vst.msk [vmem:[#allocation2 + $0x6c] sm:$0xf] %vm801_vm1, %v8201_v17  ;;  %v1395_v19 = vld [vmem:[#allocation2 + $0x4] sm:$0xf] }
  0x1a   : > { %831 = vst.msk [vmem:[#allocation2 + $0x70] sm:$0xf] %vm801_vm1, %v8201_v17  ;;  %833 = vst.msk [vmem:[#allocation2 + $0x78] sm:$0xf] %vm801_vm1, %v8201_v17  ;;  %v1447_v20 = vshrl.u32 %v1394_v18, 16  ;;  %v1450_v21 = vshll.u32 %v1394_v18, 16 }
  0x1b   : > { %834 = vst.msk [vmem:[#allocation2 + $0x7c] sm:$0xf] %vm801_vm1, %v8201_v17  ;;  %836 = vst.msk [vmem:[#allocation2 + $0x84] sm:$0xf] %vm801_vm1, %v8201_v17  ;;  %v1456_v22 = vshll.u32 %v1395_v19, 16  ;;  %v1460_v23 = vshrl.u32 %v1395_v19, 16 }
  0x1c   : > { %7415 = vmatmul.mubr.msk.bf16.gmra.mrb[4].mxu0 %vm481_vm0, %v367_v4  ;;  %837 = vst.msk [vmem:[#allocation2 + $0x88] sm:$0xf] %vm801_vm1, %v8201_v17  ;;  %839 = vst.msk [vmem:[#allocation2 + $0x90] sm:$0xf] %vm801_vm1, %v8201_v17  ;;  %v1449_v24 = vrot.slane %v1447_v20, 4  ;;  %v1452_v25 = vrot.slane %v1450_v21, 5 }
  0x1d   : > { %7418 = vmatprep.mubr.msk.bf16.mxu0 %vm481_vm0, %v369_v5  ;;  %840 = vst.msk [vmem:[#allocation2 + $0x94] sm:$0xf] %vm801_vm1, %v8201_v17  ;;  %842 = vst.msk [vmem:[#allocation2 + $0x9c] sm:$0xf] %vm801_vm1, %v8201_v17  ;;  %v1458_v26 = vrot.slane %v1456_v22, 5  ;;  %v1462_v27 = vrot.slane %v1460_v23, 4 }
  0x1e   : > { %843 = vst.msk [vmem:[#allocation2 + $0xa0] sm:$0xf] %vm801_vm1, %v8201_v17  ;;  %845 = vst.msk [vmem:[#allocation2 + $0xa8] sm:$0xf] %vm801_vm1, %v8201_v17  ;;  %v1453_v29 = vor.u32 %v1452_v25, %v1449_v24  ;;  %v6757_v32 = vld [vmem:[%s10263_s4 + $0x2] sm:$0x3] }
  0x1f   : > { %846 = vst.msk [vmem:[#allocation2 + $0xac] sm:$0xf] %vm801_vm1, %v8201_v17  ;;  %848 = vst.msk [vmem:[#allocation2 + $0xb4] sm:$0xf] %vm801_vm1, %v8201_v17  ;;  %v1463_v30 = vor.u32 %v1462_v27, %v1458_v26  ;;  %8040 = vmatprep.subr.msk.bf16.mxu0 %vm1929_vm5, %v6757_v32  ;;  %v1931_v37 = vsel %vm1929_vm5, %v6757_v32, 0 }
  0x20   : > { %849 = vst.msk [vmem:[#allocation2 + $0xb8] sm:$0xf] %vm801_vm1, %v8201_v17  ;;  %851 = vst.msk [vmem:[#allocation2 + $0xc0] sm:$0xf] %vm801_vm1, %v8201_v17  ;;  %v1454_v33 = vrot.slane %v1453_v29, 4  ;;  %7443 = vmatpush3.bf16.msra.mxu0 %v1931_v37 }
  0x21   : > { %852 = vst.msk [vmem:[#allocation2 + $0xc4] sm:$0xf] %vm801_vm1, %v8201_v17  ;;  %854 = vst.msk [vmem:[#allocation2 + $0xcc] sm:$0xf] %vm801_vm1, %v8201_v17  ;;  %v1464_v34 = vrot.slane %v1463_v30, 4 }
  0x22   : > { %855 = vst.msk [vmem:[#allocation2 + $0xd0] sm:$0xf] %vm801_vm1, %v8201_v17  ;;  %vm8368_vm6 = vmor %vm1443_vm3, %vm1444_vm4  ;;  %v6871_v41 = vld [vmem:[%s10263_s4 + $0x6] sm:$0x3]  ;;  %v6904_v43 = vld [vmem:[%s10263_s4 + $0x8] sm:$0x3] }
  0x23   : > { %811 = vst.msk [vmem:[#allocation2 + $0x20] sm:$0x1] %vm804_vm2, %v8201_v17  ;;  %805 = vst.msk [vmem:[#allocation2 + $0x8] sm:$0x1] %vm804_vm2, %v8201_v17  ;;  %v1459_v38 = vsel %vm8368_vm6, %v1454_v33, %v1458_v26  ;;  %8044 = vmatprep.subr.msk.bf16.mxu1 %vm1929_vm5, %v6871_v41  ;;  %v8383_v42 = vsel %vm1929_vm5, %v6871_v41, 0  ;;  %v8409_v1 = vsel %vm1929_vm5, %v6904_v43, 0 }
  0x24   : > { %7419 = vmatmul.mubr.msk.bf16.gmra.mrb[8].mxu0 %vm481_vm0, %v371_v6  ;;  %808 = vst.msk [vmem:[#allocation2 + $0x14] sm:$0x1] %vm804_vm2, %v8201_v17  ;;  %814 = vst.msk [vmem:[#allocation2 + $0x2c] sm:$0x1] %vm804_vm2, %v8201_v17  ;;  %7783 = vmatpush3.bf16.msra.mxu1 %v8383_v42  ;;  %v8393_v44 = vld [vmem:[%s10261_s2] ss:$0 sm:$0xff] }
  0x25   : > { %7422 = vmatprep.mubr.msk.bf16.mxu0 %vm481_vm0, %v373_v7  ;;  %817 = vst.msk [vmem:[#allocation2 + $0x38] sm:$0x1] %vm804_vm2, %v8201_v17  ;;  %820 = vst.msk [vmem:[#allocation2 + $0x44] sm:$0x1] %vm804_vm2, %v8201_v17  ;;  %8045 = vmatprep.subr.msk.bf16.mxu1 %vm1929_vm5, %v6904_v43  ;;  %v8398_v46 = vld [vmem:[%s10262_s3] ss:$0 sm:$0xff] }
  0x26   : > { %823 = vst.msk [vmem:[#allocation2 + $0x50] sm:$0x1] %vm804_vm2, %v8201_v17  ;;  %826 = vst.msk [vmem:[#allocation2 + $0x5c] sm:$0x1] %vm804_vm2, %v8201_v17  ;;  %vm1278_vm8 = vsmask.f32 7938 }
  0x27   : > { %829 = vst.msk [vmem:[#allocation2 + $0x68] sm:$0x1] %vm804_vm2, %v8201_v17  ;;  %832 = vst.msk [vmem:[#allocation2 + $0x74] sm:$0x1] %vm804_vm2, %v8201_v17  ;;  %vm953_vm9 = vsmask.f32 256 }
  0x28   : > { %835 = vst.msk [vmem:[#allocation2 + $0x80] sm:$0x1] %vm804_vm2, %v8201_v17  ;;  %838 = vst.msk [vmem:[#allocation2 + $0x8c] sm:$0x1] %vm804_vm2, %v8201_v17  ;;  %vm954_vm10 = vsmask.f32 4368 }
  0x29   : > { %841 = vst.msk [vmem:[#allocation2 + $0x98] sm:$0x1] %vm804_vm2, %v8201_v17  ;;  %844 = vst.msk [vmem:[#allocation2 + $0xa4] sm:$0x1] %vm804_vm2, %v8201_v17  ;;  %v1289_v18 = vld [vmem:[#allocation2 + $0x18] sm:$0xf] }
  0x2a   : > { %847 = vst.msk [vmem:[#allocation2 + $0xb0] sm:$0x1] %vm804_vm2, %v8201_v17  ;;  %850 = vst.msk [vmem:[#allocation2 + $0xbc] sm:$0x1] %vm804_vm2, %v8201_v17  ;;  %v1427_v28 = vld [vmem:[#allocation2 + $0x8] sm:$0x1] }
  0x2b   : > { %853 = vst.msk [vmem:[#allocation2 + $0xc8] sm:$0x1] %vm804_vm2, %v8201_v17  ;;  %856 = vst.msk [vmem:[#allocation2 + $0xd4] sm:$0x1] %vm804_vm2, %v8201_v17  ;;  %v1466_v31 = vshll.u32 %v1427_v28, 16 }
  0x2c   : > { %7423 = vmatmul.mubr.msk.bf16.gmra.mrb[12].mxu0 %vm481_vm0, %v375_v8  ;;  %10295 = vst [vmem:[#allocation3_spill] sm:$0xff] %v8383_v42  ;;  %vm8416_vm11 = vmand %vm801_vm1, %vm1278_vm8  ;;  %v1280_v25 = vld [vmem:[#allocation2 + $0xc] sm:$0xf]  ;;  %v1293_v32 = vld [vmem:[#allocation2 + $0x20] sm:$0x1] }
  0x2d   : > { %7426 = vmatprep.mubr.msk.bf16.mxu0 %vm481_vm0, %v377_v9  ;;  %v1468_v36 = vrot.slane %v1466_v31, 5  ;;  %vm8423_vm12 = vmor %vm953_vm9, %vm954_vm10 }
  0x2e   : > { %vm8429_vm13 = vmand %vm804_vm2, %vm953_vm9 }
  0x2f   : > { %v1469_v39 = vsel %vm8368_vm6, %v1464_v34, %v1468_v36 }
  0x30   : > { %v6758_v40 = vcombine.low %v1459_v38, %v1469_v39  ;;  %v1286_v39 = vld [vmem:[#allocation2 + $0x14] sm:$0x1] }
  0x34   : > { %7427 = vmatmul.mubr.msk.bf16.gmra.mrb[16].mxu0 %vm481_vm0, %v379_v10 }
  0x35   : > { %7430 = vmatprep.mubr.msk.bf16.mxu0 %vm481_vm0, %v381_v11 }
  0x3c   : > { %7431 = vmatmul.mubr.msk.bf16.gmra.mrb[20].mxu0 %vm481_vm0, %v383_v12 }
  0x3d   : > { %7434 = vmatprep.mubr.msk.bf16.mxu0 %vm481_vm0, %v385_v13 }
  0x44   : > { %7435 = vmatmul.mubr.msk.bf16.gmra.mrb[24].mxu0 %vm481_vm0, %v387_v14 }
  0x45   : > { %7438 = vmatprep.mubr.msk.bf16.mxu0 %vm481_vm0, %v389_v15 }
  0x4c   : > { %7439 = vmatmul.mubr.msk.bf16.gmra.mrb[28].mxu0 %vm481_vm0, %v391_v16  ;;  %vm9096_vm0 = vmor %vm2434_vm14, %vm2435_vm15 }
  0x4d   : > { %7444 = vmatprep.mubr.msk.bf16.mxu0 %vm1880_vm7, %v6758_v40 }
  0xe7   : > { %v7412_v45 = vpop.f32.mrb[0].mxu0 }
  0xe8   : > { %v700_v47 = vmul.f32 %v7412_v45, %v8393_v44  ;;  %v564_v48 = vpop.f32.mrb[1].mxu0 }
  0xe9   : > { %v698_v49 = vmul.f32 %v8393_v44, %v564_v48  ;;  %v7413_v50 = vpop.f32.mrb[2].mxu0 }
  0xea   : > { %v739_v51 = vadd.f32 %v8398_v46, %v700_v47  ;;  %v701_v52 = vmul.f32 %v7413_v50, %v8393_v44  ;;  %v567_v53 = vpop.f32.mrb[3].mxu0 }
  0xeb   : > { %v737_v54 = vadd.f32 %v8398_v46, %v698_v49  ;;  %v699_v55 = vmul.f32 %v8393_v44, %v567_v53 }
  0xec   : > { %v771_v56 = vmax.f32 %v739_v51, 0.0  ;;  %v740_v57 = vadd.f32 %v8398_v46, %v701_v52 }
  0xed   : > { %v769_v58 = vmax.f32 %v737_v54, 0.0  ;;  %v738_v59 = vadd.f32 %v8398_v46, %v699_v55 }
  0xee   : > { %v7159_v60 = vpack.c.bf16 %v771_v56, %v771_v56  ;;  %v772_v61 = vmax.f32 %v740_v57, 0.0 }
  0xef   : > { %v7157_v62 = vpack.c.bf16 %v769_v58, %v769_v58  ;;  %v770_v63 = vmax.f32 %v738_v59, 0.0  ;;  %v7416_v0 = vpop.f32.mrb[4].mxu0 }
  0xf0   : > { %v974_v2 = vshrl.u32 %v7159_v60, 16  ;;  %v977_v3 = vshll.u32 %v7159_v60, 16  ;;  %v7160_v4 = vpack.c.bf16 %v772_v61, %v772_v61  ;;  %v704_v5 = vmul.f32 %v7416_v0, %v8393_v44  ;;  %v580_v6 = vpop.f32.mrb[5].mxu0  ;;  %v1303_v0 = vld [vmem:[#allocation2 + $0x30] sm:$0xf] }
  0xf1   : > { %v957_v7 = vshrl.u32 %v7157_v62, 16  ;;  %v960_v8 = vshll.u32 %v7157_v62, 16  ;;  %v7158_v9 = vpack.c.bf16 %v770_v63, %v770_v63  ;;  %v702_v10 = vmul.f32 %v8393_v44, %v580_v6  ;;  %v7417_v11 = vpop.f32.mrb[6].mxu0 }
  0xf2   : > { %v976_v12 = vrot.slane %v974_v2, 7  ;;  %v982_v13 = vshrl.u32 %v7160_v4, 16  ;;  %v985_v14 = vshll.u32 %v7160_v4, 16  ;;  %v743_v15 = vadd.f32 %v8398_v46, %v704_v5  ;;  %v583_v16 = vpop.f32.mrb[7].mxu0 }
  0xf3   : > { %v959_v19 = vrot.slane %v957_v7, 7  ;;  %v965_v20 = vshrl.u32 %v7158_v9, 16  ;;  %v968_v21 = vshll.u32 %v7158_v9, 16  ;;  %v741_v22 = vadd.f32 %v8398_v46, %v702_v10 }
  0xf4   : > { %v979_v23 = vor.u32 %v977_v3, %v976_v12  ;;  %v980_v24 = vrot.slane %v976_v12, 4  ;;  %v984_v27 = vrot.slane %v982_v13, 7  ;;  %v775_v28 = vmax.f32 %v743_v15, 0.0 }
  0xf5   : > { %v962_v29 = vor.u32 %v960_v8, %v959_v19  ;;  %v963_v30 = vrot.slane %v959_v19, 4  ;;  %v967_v33 = vrot.slane %v965_v20, 7  ;;  %v773_v34 = vmax.f32 %v741_v22, 0.0  ;;  %v1296_v8 = vld [vmem:[#allocation2 + $0x24] sm:$0xf] }
  0xf6   : > { %v1290_v36 = vsel %vm8416_vm11, %v979_v23, %v1289_v18  ;;  %v987_v37 = vor.u32 %v985_v14, %v984_v27  ;;  %v989_v38 = vrot.slane %v984_v27, 4  ;;  %v7163_v40 = vpack.c.bf16 %v775_v28, %v775_v28 }
  0xf7   : > { %1291 = vst [vmem:[#allocation2 + $0x18] sm:$0xf] %v1290_v36  ;;  %v1281_v41 = vsel %vm8416_vm11, %v962_v29, %v1280_v25  ;;  %v970_v43 = vor.u32 %v968_v21, %v967_v33  ;;  %v972_v45 = vrot.slane %v967_v33, 4  ;;  %v7161_v47 = vpack.c.bf16 %v773_v34, %v773_v34  ;;  %v7420_v48 = vpop.f32.mrb[8].mxu0 }
  0xf8   : > { %1282 = vst [vmem:[#allocation2 + $0xc] sm:$0xf] %v1281_v41  ;;  %v988_v49 = vsel %vm8423_vm12, %v980_v24, %v987_v37  ;;  %v1294_v50 = vsel %vm8429_vm13, %v989_v38, %v1293_v32  ;;  %v1008_v51 = vshrl.u32 %v7163_v40, 16  ;;  %v1011_v52 = vshll.u32 %v7163_v40, 16  ;;  %v596_v53 = vpop.f32.mrb[9].mxu0 }
  0xf9   : > { %1292 = vst.msk [vmem:[#allocation2 + $0x1c] sm:$0xf] %vm801_vm1, %v988_v49  ;;  %1295 = vst [vmem:[#allocation2 + $0x20] sm:$0x1] %v1294_v50  ;;  %v971_v54 = vsel %vm8423_vm12, %v963_v30, %v970_v43  ;;  %v1287_v55 = vsel %vm8429_vm13, %v972_v45, %v1286_v39  ;;  %v991_v56 = vshrl.u32 %v7161_v47, 16  ;;  %v994_v57 = vshll.u32 %v7161_v47, 16 }
  0xfa   : > { %v7421_v58 = vpop.f32.mrb[10].mxu0  ;;  %1283 = vst.msk [vmem:[#allocation2 + $0x10] sm:$0xf] %vm801_vm1, %v971_v54  ;;  %1288 = vst [vmem:[#allocation2 + $0x14] sm:$0x1] %v1287_v55  ;;  %v8447_v59 = vrot.slane %v1008_v51, 7  ;;  %v705_v60 = vmul.f32 %v7417_v11, %v8393_v44  ;;  %v703_v61 = vmul.f32 %v8393_v44, %v583_v16  ;;  %v708_v62 = vmul.f32 %v7420_v48, %v8393_v44 }
  0xfb   : > { %v599_v63 = vpop.f32.mrb[11].mxu0  ;;  %v8452_v2 = vrot.slane %v991_v56, 7  ;;  %v706_v3 = vmul.f32 %v8393_v44, %v596_v53  ;;  %v709_v4 = vmul.f32 %v7421_v58, %v8393_v44  ;;  %v1307_v51 = vld [vmem:[#allocation2 + $0x38] sm:$0x1]  ;;  %v1300_v55 = vld [vmem:[#allocation2 + $0x2c] sm:$0x1] }
  0xfc   : > { %v707_v5 = vmul.f32 %v8393_v44, %v599_v63  ;;  %v1013_v6 = vor.u32 %v1011_v52, %v8447_v59  ;;  %v1014_v7 = vrot.slane %v8447_v59, 4  ;;  %v744_v9 = vadd.f32 %v8398_v46, %v705_v60 }
  0xfd   : > { %v742_v10 = vadd.f32 %v8398_v46, %v703_v61  ;;  %v996_v11 = vor.u32 %v994_v57, %v8452_v2  ;;  %v997_v12 = vrot.slane %v8452_v2, 4  ;;  %v747_v13 = vadd.f32 %v8398_v46, %v708_v62  ;;  %v1317_v57 = vld [vmem:[#allocation2 + $0x48] sm:$0xf]  ;;  %v1310_v2 = vld [vmem:[#allocation2 + $0x3c] sm:$0xf] }
  0xfe   : > { %v745_v14 = vadd.f32 %v8398_v46, %v706_v3  ;;  %v1304_v15 = vsel %vm8416_vm11, %v1013_v6, %v1303_v0  ;;  %v776_v16 = vmax.f32 %v744_v9, 0.0  ;;  %v748_v19 = vadd.f32 %v8398_v46, %v709_v4 }
  0xff   : > { %v774_v18 = vmax.f32 %v742_v10, 0.0  ;;  %1305 = vst [vmem:[#allocation2 + $0x30] sm:$0xf] %v1304_v15  ;;  %v1297_v20 = vsel %vm8416_vm11, %v996_v11, %v1296_v8  ;;  %v779_v21 = vmax.f32 %v747_v13, 0.0  ;;  %v746_v23 = vadd.f32 %v8398_v46, %v707_v5  ;;  %v7424_v24 = vpop.f32.mrb[12].mxu0 }
 0x100   : > { %v777_v22 = vmax.f32 %v745_v14, 0.0  ;;  %1298 = vst [vmem:[#allocation2 + $0x24] sm:$0xf] %v1297_v20  ;;  %v7164_v25 = vpack.c.bf16 %v776_v16, %v776_v16  ;;  %v780_v28 = vmax.f32 %v748_v19, 0.0  ;;  %v712_v29 = vmul.f32 %v7424_v24, %v8393_v44  ;;  %v612_v30 = vpop.f32.mrb[13].mxu0 }
 0x101   : > { %v7162_v27 = vpack.c.bf16 %v774_v18, %v774_v18  ;;  %v7167_v32 = vpack.c.bf16 %v779_v21, %v779_v21  ;;  %v778_v34 = vmax.f32 %v746_v23, 0.0  ;;  %v710_v36 = vmul.f32 %v8393_v44, %v612_v30  ;;  %v7425_v37 = vpop.f32.mrb[14].mxu0 }
 0x102   : > { %v7165_v33 = vpack.c.bf16 %v777_v22, %v777_v22  ;;  %v1016_v38 = vshrl.u32 %v7164_v25, 16  ;;  %v1019_v39 = vshll.u32 %v7164_v25, 16  ;;  %v615_v43 = vpop.f32.mrb[15].mxu0  ;;  %v7168_v53 = vpack.c.bf16 %v780_v28, %v780_v28 }
 0x103   : > { %v999_v40 = vshrl.u32 %v7162_v27, 16  ;;  %v1002_v41 = vshll.u32 %v7162_v27, 16  ;;  %v1042_v45 = vshrl.u32 %v7167_v32, 16  ;;  %v1045_v47 = vshll.u32 %v7167_v32, 16  ;;  %v1314_v27 = vld [vmem:[#allocation2 + $0x44] sm:$0x1] }
 0x104   : > { %v1025_v48 = vshrl.u32 %v7165_v33, 16  ;;  %v1028_v49 = vshll.u32 %v7165_v33, 16  ;;  %v1018_v50 = vrot.slane %v1016_v38, 7  ;;  %v7166_v54 = vpack.c.bf16 %v778_v34, %v778_v34 }
 0x105   : > { %v1001_v52 = vrot.slane %v999_v40, 7  ;;  %v1044_v56 = vrot.slane %v1042_v45, 7  ;;  %v751_v59 = vadd.f32 %v8398_v46, %v712_v29  ;;  %v749_v60 = vadd.f32 %v8398_v46, %v710_v36 }
 0x106   : > { %v1027_v58 = vrot.slane %v1025_v48, 7  ;;  %v1021_v61 = vor.u32 %v1019_v39, %v1018_v50  ;;  %v1023_v62 = vrot.slane %v1018_v50, 4  ;;  %v1050_v16 = vshrl.u32 %v7168_v53, 16 }
 0x107   : > { %v1004_v63 = vor.u32 %v1002_v41, %v1001_v52  ;;  %v1006_v0 = vrot.slane %v1001_v52, 4  ;;  %v1047_v3 = vor.u32 %v1045_v47, %v1044_v56  ;;  %v1048_v4 = vrot.slane %v1044_v56, 4  ;;  %v7428_v8 = vpop.f32.mrb[16].mxu0 }
 0x108   : > { %v1030_v5 = vor.u32 %v1028_v49, %v1027_v58  ;;  %v1031_v6 = vrot.slane %v1027_v58, 4  ;;  %v1022_v9 = vsel %vm8423_vm12, %v1014_v7, %v1021_v61  ;;  %v1308_v10 = vsel %vm8429_vm13, %v1023_v62, %v1307_v51  ;;  %v628_v14 = vpop.f32.mrb[17].mxu0  ;;  %v1331_v58 = vld [vmem:[#allocation2 + $0x60] sm:$0xf] }
 0x109   : > { %v1005_v11 = vsel %vm8423_vm12, %v997_v12, %v1004_v63  ;;  %v1301_v13 = vsel %vm8429_vm13, %v1006_v0, %v1300_v55  ;;  %1306 = vst.msk [vmem:[#allocation2 + $0x34] sm:$0xf] %vm801_vm1, %v1022_v9  ;;  %1309 = vst [vmem:[#allocation2 + $0x38] sm:$0x1] %v1308_v10  ;;  %v1318_v15 = vsel %vm8416_vm11, %v1047_v3, %v1317_v57  ;;  %v1053_v18 = vshll.u32 %v7168_v53, 16  ;;  %v7429_v19 = vpop.f32.mrb[18].mxu0 }
 0x10a   : > { %1299 = vst.msk [vmem:[#allocation2 + $0x28] sm:$0xf] %vm801_vm1, %v1005_v11  ;;  %1302 = vst [vmem:[#allocation2 + $0x2c] sm:$0x1] %v1301_v13  ;;  %v1311_v7 = vsel %vm8416_vm11, %v1030_v5, %v1310_v2  ;;  %v1321_v12 = vld [vmem:[#allocation2 + $0x50] sm:$0x1]  ;;  %v713_v28 = vmul.f32 %v7425_v37, %v8393_v44  ;;  %v711_v29 = vmul.f32 %v8393_v44, %v615_v43 }
 0x10b   : > { %1319 = vst [vmem:[#allocation2 + $0x48] sm:$0xf] %v1318_v15  ;;  %1312 = vst [vmem:[#allocation2 + $0x3c] sm:$0xf] %v1311_v7  ;;  %v1033_v20 = vshrl.u32 %v7166_v54, 16  ;;  %v1036_v21 = vshll.u32 %v7166_v54, 16  ;;  %v716_v30 = vmul.f32 %v7428_v8, %v8393_v44  ;;  %v714_v36 = vmul.f32 %v8393_v44, %v628_v14 }
 0x10c   : > { %v783_v22 = vmax.f32 %v751_v59, 0.0  ;;  %v781_v23 = vmax.f32 %v749_v60, 0.0  ;;  %v8489_v24 = vpop.f32.mrb[19].mxu0  ;;  %v1052_v25 = vrot.slane %v1050_v16, 7  ;;  %v752_v40 = vadd.f32 %v8398_v46, %v713_v28  ;;  %v1324_v3 = vld [vmem:[#allocation2 + $0x54] sm:$0xf] }
 0x10d   : > { %v1035_v32 = vrot.slane %v1033_v20, 7  ;;  %v750_v41 = vadd.f32 %v8398_v46, %v711_v29  ;;  %v755_v61 = vadd.f32 %v8398_v46, %v716_v30  ;;  %v753_v62 = vadd.f32 %v8398_v46, %v714_v36  ;;  %v8520_v16 = vld [vmem:[#allocation2 + $0xc] sm:$0xf] }
 0x10e   : > { %v7171_v33 = vpack.c.bf16 %v783_v22, %v783_v22  ;;  %v7169_v34 = vpack.c.bf16 %v781_v23, %v781_v23  ;;  %v1055_v38 = vor.u32 %v1053_v18, %v1052_v25  ;;  %v1057_v39 = vrot.slane %v1052_v25, 4  ;;  %v1335_v23 = vld [vmem:[#allocation2 + $0x68] sm:$0x1] }
 0x10f   : > { %v1038_v45 = vor.u32 %v1036_v21, %v1035_v32  ;;  %v1040_v47 = vrot.slane %v1035_v32, 4  ;;  %v8501_v52 = vpop.f32.mrb[20].mxu0  ;;  %v784_v56 = vmax.f32 %v752_v40, 0.0  ;;  %v782_v60 = vmax.f32 %v750_v41, 0.0  ;;  %v1426_v21 = vld [vmem:[%s10263_s4] sm:$0x3] }
 0x110   : > { %v1076_v48 = vshrl.u32 %v7171_v33, 16  ;;  %v1079_v49 = vshll.u32 %v7171_v33, 16  ;;  %v1056_v37 = vsel %vm8423_vm12, %v1048_v4, %v1055_v38  ;;  %v1322_v43 = vsel %vm8429_vm13, %v1057_v39, %v1321_v12  ;;  %v8508_v57 = vpop.f32.mrb[21].mxu0  ;;  %8041 = vmatprep.subr.msk.bf16.mxu0 %vm1929_vm5, %v1426_v21  ;;  %v1328_v39 = vld [vmem:[#allocation2 + $0x5c] sm:$0x1] }
 0x111   : > { %v1059_v50 = vshrl.u32 %v7169_v34, 16  ;;  %v1062_v51 = vshll.u32 %v7169_v34, 16  ;;  %1320 = vst.msk [vmem:[#allocation2 + $0x4c] sm:$0xf] %vm801_vm1, %v1056_v37  ;;  %1323 = vst [vmem:[#allocation2 + $0x50] sm:$0x1] %v1322_v43  ;;  %v1039_v53 = vsel %vm8423_vm12, %v1031_v6, %v1038_v45  ;;  %v1315_v54 = vsel %vm8429_vm13, %v1040_v47, %v1314_v27 }
 0x112   : > { %v1078_v55 = vrot.slane %v1076_v48, 7  ;;  %1313 = vst.msk [vmem:[#allocation2 + $0x40] sm:$0xf] %vm801_vm1, %v1039_v53  ;;  %1316 = vst [vmem:[#allocation2 + $0x44] sm:$0x1] %v1315_v54  ;;  %v8513_v63 = vpop.f32.mrb[22].mxu0  ;;  %v7172_v4 = vpack.c.bf16 %v784_v56, %v784_v56  ;;  %v717_v5 = vmul.f32 %v7429_v19, %v8393_v44  ;;  %v7170_v10 = vpack.c.bf16 %v782_v60, %v782_v60 }
 0x113   : > { %v1061_v59 = vrot.slane %v1059_v50, 7  ;;  %v8516_v6 = vpop.f32.mrb[23].mxu0  ;;  %v787_v11 = vmax.f32 %v755_v61, 0.0  ;;  %v785_v7 = vmax.f32 %v753_v62, 0.0  ;;  %v715_v28 = vmul.f32 %v8393_v44, %v8489_v24  ;;  %v1338_v62 = vld [vmem:[#allocation2 + $0x6c] sm:$0xf] }
 0x114   : > { %v1081_v0 = vor.u32 %v1079_v49, %v1078_v55  ;;  %v1082_v2 = vrot.slane %v1078_v55, 4  ;;  %v1084_v14 = vshrl.u32 %v7172_v4, 16  ;;  %v1087_v15 = vshll.u32 %v7172_v4, 16  ;;  %v1397_v55 = vld [vmem:[#allocation2 + $0x10] sm:$0xf] }
 0x115   : > { %v1064_v8 = vor.u32 %v1062_v51, %v1061_v59  ;;  %v1065_v9 = vrot.slane %v1061_v59, 4  ;;  %v1067_v12 = vshrl.u32 %v7170_v10, 16  ;;  %v1070_v19 = vshll.u32 %v7170_v10, 16  ;;  %v1345_v51 = vld [vmem:[#allocation2 + $0x78] sm:$0xf] }
 0x116   : > { %v1332_v13 = vsel %vm8416_vm11, %v1081_v0, %v1331_v58  ;;  %v7175_v20 = vpack.c.bf16 %v787_v11, %v787_v11  ;;  %v1086_v22 = vrot.slane %v1084_v14, 7  ;;  %v7173_v25 = vpack.c.bf16 %v785_v7, %v785_v7 }
 0x117   : > { %1333 = vst [vmem:[#allocation2 + $0x60] sm:$0xf] %v1332_v13  ;;  %v1325_v18 = vsel %vm8416_vm11, %v1064_v8, %v1324_v3  ;;  %v756_v27 = vadd.f32 %v8398_v46, %v717_v5  ;;  %v1069_v29 = vrot.slane %v1067_v12, 7  ;;  %v1471_v33 = vshrl.u32 %v8520_v16, 16  ;;  %v8532_v34 = vpop.f32.mrb[24].mxu0 }
 0x118   : > { %1326 = vst [vmem:[#allocation2 + $0x54] sm:$0xf] %v1325_v18  ;;  %v1110_v30 = vshrl.u32 %v7175_v20, 16  ;;  %v1113_v32 = vshll.u32 %v7175_v20, 16  ;;  %v1089_v36 = vor.u32 %v1087_v15, %v1086_v22  ;;  %v1091_v38 = vrot.slane %v1086_v22, 4  ;;  %v8534_v45 = vpop.f32.mrb[25].mxu0 }
 0x119   : > { %v1093_v40 = vshrl.u32 %v7173_v25, 16  ;;  %v1096_v41 = vshll.u32 %v7173_v25, 16  ;;  %v1072_v47 = vor.u32 %v1070_v19, %v1069_v29  ;;  %v1074_v48 = vrot.slane %v1069_v29, 4  ;;  %v8538_v37 = vpop.f32.mrb[26].mxu0  ;;  %v1428_v5 = vld [vmem:[#allocation2 + $0x14] sm:$0x1] }
 0x11a   : > { %v8536_v49 = vrot.slane %v1110_v30, 7  ;;  %v788_v24 = vmax.f32 %v756_v27, 0.0  ;;  %v1090_v43 = vsel %vm8423_vm12, %v1082_v2, %v1089_v36  ;;  %v1336_v50 = vsel %vm8429_vm13, %v1091_v38, %v1335_v23  ;;  %v8547_v56 = vpop.f32.mrb[27].mxu0  ;;  %v1398_v13 = vld [vmem:[#allocation2 + $0x18] sm:$0xf] }
 0x11b   : > { %v8544_v53 = vrot.slane %v1093_v40, 7  ;;  %v754_v54 = vadd.f32 %v8398_v46, %v715_v28  ;;  %1334 = vst.msk [vmem:[#allocation2 + $0x64] sm:$0xf] %vm801_vm1, %v1090_v43  ;;  %1337 = vst [vmem:[#allocation2 + $0x68] sm:$0x1] %v1336_v50  ;;  %v1073_v58 = vsel %vm8423_vm12, %v1065_v9, %v1072_v47  ;;  %v1329_v59 = vsel %vm8429_vm13, %v1074_v48, %v1328_v39 }
 0x11c   : > { %v1115_v60 = vor.u32 %v1113_v32, %v8536_v49  ;;  %v1116_v61 = vrot.slane %v8536_v49, 4  ;;  %1327 = vst.msk [vmem:[#allocation2 + $0x58] sm:$0xf] %vm801_vm1, %v1073_v58  ;;  %1330 = vst [vmem:[#allocation2 + $0x5c] sm:$0x1] %v1329_v59  ;;  %v7176_v3 = vpack.c.bf16 %v788_v24, %v788_v24  ;;  %v1473_v9 = vrot.slane %v1471_v33, 4 }
 0x11d   : > { %v1098_v0 = vor.u32 %v1096_v41, %v8544_v53  ;;  %v1099_v2 = vrot.slane %v8544_v53, 4  ;;  %v786_v4 = vmax.f32 %v754_v54, 0.0  ;;  %v1474_v10 = vshll.u32 %v8520_v16, 16  ;;  %v1399_v12 = vld [vmem:[#allocation2 + $0x1c] sm:$0xf] }
 0x11e   : > { %v1346_v8 = vsel %vm8416_vm11, %v1115_v60, %v1345_v51  ;;  %v1480_v11 = vshll.u32 %v1397_v55, 16  ;;  %v1118_v15 = vshrl.u32 %v7176_v3, 16  ;;  %v1121_v7 = vshll.u32 %v7176_v3, 16  ;;  %v1349_v30 = vld [vmem:[#allocation2 + $0x80] sm:$0x1] }
 0x11f   : > { %1347 = vst [vmem:[#allocation2 + $0x78] sm:$0xf] %v1346_v8  ;;  %v1339_v14 = vsel %vm8416_vm11, %v1098_v0, %v1338_v62  ;;  %v7174_v18 = vpack.c.bf16 %v786_v4, %v786_v4  ;;  %v1476_v19 = vrot.slane %v1474_v10, 5  ;;  %v1484_v21 = vshrl.u32 %v1397_v55, 16  ;;  %v8564_v23 = vpop.f32.mrb[28].mxu0 }
 0x120   : > { %1340 = vst [vmem:[#allocation2 + $0x6c] sm:$0xf] %v1339_v14  ;;  %v1482_v20 = vrot.slane %v1480_v11, 5  ;;  %v1490_v22 = vshll.u32 %v1428_v5, 16  ;;  %v1120_v25 = vrot.slane %v1118_v15, 7  ;;  %v1495_v28 = vshrl.u32 %v1398_v13, 16 }
 0x121   : > { %v1101_v27 = vshrl.u32 %v7174_v18, 16  ;;  %v1104_v16 = vshll.u32 %v7174_v18, 16  ;;  %v8566_v29 = vpop.f32.mrb[29].mxu0  ;;  %v1477_v32 = vor.u32 %v1476_v19, %v1473_v9  ;;  %v1486_v33 = vrot.slane %v1484_v21, 4  ;;  %v1342_v48 = vld [vmem:[#allocation2 + $0x74] sm:$0x1] }
 0x122   : > { %v1492_v36 = vrot.slane %v1490_v22, 5  ;;  %v1498_v38 = vshll.u32 %v1398_v13, 16  ;;  %v8568_v39 = vpop.f32.mrb[30].mxu0  ;;  %v1123_v40 = vor.u32 %v1121_v7, %v1120_v25  ;;  %v1125_v41 = vrot.slane %v1120_v25, 4  ;;  %v1429_v51 = vld [vmem:[#allocation2 + $0x20] sm:$0x1] }
 0x123   : > { %v1103_v47 = vrot.slane %v1101_v27, 7  ;;  %v1497_v49 = vrot.slane %v1495_v28, 4  ;;  %v8570_v24 = vpop.f32.mrb[31].mxu0  ;;  %v1478_v43 = vrot.slane %v1477_v32, 4  ;;  %v1487_v50 = vor.u32 %v1486_v33, %v1482_v20  ;;  %v1400_v15 = vld [vmem:[#allocation2 + $0x24] sm:$0xf] }
 0x124   : > { %v1500_v53 = vrot.slane %v1498_v38, 5  ;;  %v1504_v54 = vshll.u32 %v1399_v12, 16  ;;  %v1124_v55 = vsel %vm8423_vm12, %v1116_v61, %v1123_v40  ;;  %v1350_v58 = vsel %vm8429_vm13, %v1125_v41, %v1349_v30  ;;  %v1401_v19 = vld [vmem:[#allocation2 + $0x28] sm:$0xf] }
 0x125   : > { %v1106_v59 = vor.u32 %v1104_v16, %v1103_v47  ;;  %v1108_v60 = vrot.slane %v1103_v47, 4  ;;  %1348 = vst.msk [vmem:[#allocation2 + $0x7c] sm:$0xf] %vm801_vm1, %v1124_v55  ;;  %1351 = vst [vmem:[#allocation2 + $0x80] sm:$0x1] %v1350_v58  ;;  %v1483_v62 = vsel %vm8368_vm6, %v1478_v43, %v1482_v20  ;;  %v1488_v0 = vrot.slane %v1487_v50, 4 }
 0x126   : > { %v1501_v3 = vor.u32 %v1500_v53, %v1497_v49  ;;  %v1506_v4 = vrot.slane %v1504_v54, 5  ;;  %v1508_v8 = vshrl.u32 %v1399_v12, 16  ;;  %v1514_v9 = vshll.u32 %v1429_v51, 16 }
 0x127   : > { %v1107_v5 = vsel %vm8423_vm12, %v1099_v2, %v1106_v59  ;;  %v1343_v61 = vsel %vm8429_vm13, %v1108_v60, %v1342_v48  ;;  %v1493_v10 = vsel %vm8368_vm6, %v1488_v0, %v1492_v36  ;;  %v720_v13 = vmul.f32 %v8501_v52, %v8393_v44  ;;  %v1430_v60 = vld [vmem:[#allocation2 + $0x2c] sm:$0x1]  ;;  %v1359_v0 = vld [vmem:[#allocation2 + $0x90] sm:$0xf] }
 0x128   : > { %1341 = vst.msk [vmem:[#allocation2 + $0x70] sm:$0xf] %vm801_vm1, %v1107_v5  ;;  %1344 = vst [vmem:[#allocation2 + $0x74] sm:$0x1] %v1343_v61  ;;  %v1502_v11 = vrot.slane %v1501_v3, 4  ;;  %v718_v14 = vmul.f32 %v8393_v44, %v8508_v57  ;;  %v6759_v2 = vcombine.low %v1483_v62, %v1493_v10  ;;  %v1510_v7 = vrot.slane %v1508_v8, 4 }
 0x129   : > { %v1516_v18 = vrot.slane %v1514_v9, 5  ;;  %v721_v12 = vmul.f32 %v8513_v63, %v8393_v44  ;;  %v759_v21 = vadd.f32 %v8398_v46, %v720_v13  ;;  %v719_v52 = vmul.f32 %v8393_v44, %v8516_v6  ;;  %v8609_v8 = vld [vmem:[%s10263_s4 + $0xa] sm:$0x3] }
 0x12a   : > { %v1507_v20 = vsel %vm8368_vm6, %v1502_v11, %v1506_v4  ;;  %v757_v22 = vadd.f32 %v8398_v46, %v718_v14  ;;  %7445 = vmatmul.mubr.msk.bf16.vlgmr.msra.gmra.mrb[32].mxu0 %vm1880_vm7, %v6759_v2  ;;  %v1511_v57 = vor.u32 %v1510_v7, %v1506_v4  ;;  %v1519_v27 = vshrl.u32 %v1400_v15, 16  ;;  %v1352_v11 = vld [vmem:[#allocation2 + $0x84] sm:$0xf]  ;;  %v1363_v2 = vld [vmem:[#allocation2 + $0x98] sm:$0x1] }
 0x12b   : > { %v760_v25 = vadd.f32 %v8398_v46, %v721_v12  ;;  %v1522_v16 = vshll.u32 %v1400_v15, 16  ;;  %v791_v28 = vmax.f32 %v759_v21, 0.0  ;;  %v758_v30 = vadd.f32 %v8398_v46, %v719_v52  ;;  %v1356_v52 = vld [vmem:[#allocation2 + $0x8c] sm:$0x1] }
 0x12c   : > { %v789_v63 = vmax.f32 %v757_v22, 0.0  ;;  %v1528_v32 = vshll.u32 %v1401_v19, 16  ;;  %v1512_v33 = vrot.slane %v1511_v57, 4  ;;  %v1521_v38 = vrot.slane %v1519_v27, 4  ;;  %v8078_v62 = vld [vmem:[#allocation2 + $0x78] sm:$0xff]  }
 0x12d   : > { %v792_v36 = vmax.f32 %v760_v25, 0.0  ;;  %v1524_v40 = vrot.slane %v1522_v16, 5  ;;  %v7179_v41 = vpack.c.bf16 %v791_v28, %v791_v28  ;;  %v790_v48 = vmax.f32 %v758_v30, 0.0  ;;  %v1402_v57 = vld [vmem:[#allocation2 + $0x30] sm:$0xf] }
 0x12e   : > { %v7177_v47 = vpack.c.bf16 %v789_v63, %v789_v63  ;;  %v8601_v6 = vrot.slane %v1528_v32, 5  ;;  %v1517_v49 = vsel %vm8368_vm6, %v1512_v33, %v1516_v18  ;;  %v1532_v51 = vshrl.u32 %v1401_v19, 16  ;;  %v1403_v25 = vld [vmem:[#allocation2 + $0x34] sm:$0xf]  ;;  %v1431_v30 = vld [vmem:[#allocation2 + $0x38] sm:$0x1] }
 0x12f   : > { %v7180_v43 = vpack.c.bf16 %v792_v36, %v792_v36  ;;  %v1525_v50 = vor.u32 %v1524_v40, %v1521_v38  ;;  %v8077_v53 = vld [vmem:[#allocation2 + $0x6c] sm:$0xff]   ;;  %v6760_v54 = vcombine.low %v1507_v20, %v1517_v49  ;;  %v1144_v55 = vshrl.u32 %v7179_v41, 16 }
 0x130   : > { %v1147_v58 = vshll.u32 %v7179_v41, 16  ;;  %v1127_v59 = vshrl.u32 %v7177_v47, 16  ;;  %v1130_v3 = vshll.u32 %v7177_v47, 16  ;;  %v7178_v61 = vpack.c.bf16 %v790_v48, %v790_v48  ;;  %7562 = vmatprep.mubr.msk.bf16.mxu1 %vm1880_vm7, %v8077_v53 }
 0x131   : > { %v1152_v4 = vshrl.u32 %v7180_v43, 16  ;;  %v1155_v5 = vshll.u32 %v7180_v43, 16  ;;  %7448 = vmatprep.mubr.msk.bf16.mxu0 %vm1880_vm7, %v6760_v54  ;;  %v1146_v9 = vrot.slane %v1144_v55, 7  ;;  %v1526_v13 = vrot.slane %v1525_v50, 4  ;;  %7563 = vmatmul.mubr.msk.bf16.vlgmr.msra.gmra.mrb[0].mxu1 %vm1880_vm7, %v8078_v62 }
 0x132   : > { %v1129_v10 = vrot.slane %v1127_v59, 7  ;;  %v1534_v14 = vrot.slane %v1532_v51, 4  ;;  %v1135_v7 = vshrl.u32 %v7178_v61, 16  ;;  %v1138_v18 = vshll.u32 %v7178_v61, 16  ;;  %7579 = vmatpush3.bf16.msra.mxu1 %v8409_v1  ;;  %v1404_v51 = vld [vmem:[#allocation2 + $0x3c] sm:$0xf] }
 0x133   : > { %v1154_v15 = vrot.slane %v1152_v4, 7  ;;  %v1538_v12 = vshll.u32 %v1430_v60, 16  ;;  %v1149_v19 = vor.u32 %v1147_v58, %v1146_v9  ;;  %v1150_v20 = vrot.slane %v1146_v9, 4  ;;  %8046 = vmatprep.subr.msk.bf16.mxu1 %vm1929_vm5, %v8609_v8 }
 0x134   : > { %v1132_v21 = vor.u32 %v1130_v3, %v1129_v10  ;;  %v1133_v22 = vrot.slane %v1129_v10, 4  ;;  %v1137_v28 = vrot.slane %v1135_v7, 7  ;;  %v1531_v63 = vsel %vm8368_vm6, %v1526_v13, %v8601_v6  ;;  %v8644_v13 = vld [vmem:[#allocation2 + $0x40] sm:$0xf] }
 0x135   : > { %v1157_v27 = vor.u32 %v1155_v5, %v1154_v15  ;;  %v1159_v16 = vrot.slane %v1154_v15, 4  ;;  %v1360_v1 = vsel %vm8416_vm11, %v1149_v19, %v1359_v0  ;;  %v1535_v33 = vor.u32 %v1534_v14, %v8601_v6 }
 0x136   : > { %v1353_v32 = vsel %vm8416_vm11, %v1132_v21, %v1352_v11  ;;  %v1540_v36 = vrot.slane %v1538_v12, 5  ;;  %1361 = vst [vmem:[#allocation2 + $0x90] sm:$0xf] %v1360_v1  ;;  %v1140_v41 = vor.u32 %v1138_v18, %v1137_v28  ;;  %v1142_v47 = vrot.slane %v1137_v28, 4 }
 0x137   : > { %1354 = vst [vmem:[#allocation2 + $0x84] sm:$0xf] %v1353_v32  ;;  %v1158_v38 = vsel %vm8423_vm12, %v1150_v20, %v1157_v27  ;;  %v1364_v40 = vsel %vm8429_vm13, %v1159_v16, %v1363_v2  ;;  %v1536_v48 = vrot.slane %v1535_v33, 4  ;;  %v1543_v49 = vshrl.u32 %v1402_v57, 16 }
 0x138   : > { %1362 = vst.msk [vmem:[#allocation2 + $0x94] sm:$0xf] %vm801_vm1, %v1158_v38  ;;  %1365 = vst [vmem:[#allocation2 + $0x98] sm:$0x1] %v1364_v40  ;;  %v1546_v43 = vshll.u32 %v1402_v57, 16  ;;  %v1552_v50 = vshll.u32 %v1403_v25, 16  ;;  %v1141_v6 = vsel %vm8423_vm12, %v1133_v22, %v1140_v41  ;;  %v1357_v53 = vsel %vm8429_vm13, %v1142_v47, %v1356_v52 }
 0x139   : > { %v1556_v54 = vshrl.u32 %v1403_v25, 16  ;;  %v1562_v55 = vshll.u32 %v1431_v30, 16  ;;  %1355 = vst.msk [vmem:[#allocation2 + $0x88] sm:$0xf] %vm801_vm1, %v1141_v6  ;;  %1358 = vst [vmem:[#allocation2 + $0x8c] sm:$0x1] %v1357_v53  ;;  %v1541_v58 = vsel %vm8368_vm6, %v1536_v48, %v1540_v36  ;;  %v724_v5 = vmul.f32 %v8532_v34, %v8393_v44 }
 0x13a   : > { %v1545_v59 = vrot.slane %v1543_v49, 4  ;;  %v1548_v60 = vrot.slane %v1546_v43, 5  ;;  %v1554_v62 = vrot.slane %v1552_v50, 5  ;;  %v6761_v0 = vcombine.low %v1531_v63, %v1541_v58  ;;  %v1432_v38 = vld [vmem:[#allocation2 + $0x44] sm:$0x1] }
 0x13b   : > { %v1558_v3 = vrot.slane %v1556_v54, 4  ;;  %v1564_v4 = vrot.slane %v1562_v55, 5  ;;  %v722_v9 = vmul.f32 %v8393_v44, %v8534_v45  ;;  %v725_v10 = vmul.f32 %v8538_v37, %v8393_v44  ;;  %v1406_v50 = vld [vmem:[#allocation2 + $0x48] sm:$0xf] }
 0x13c   : > { %v1549_v61 = vor.u32 %v1548_v60, %v1545_v59  ;;  %v723_v11 = vmul.f32 %v8393_v44, %v8547_v56  ;;  %7449 = vmatmul.mubr.msk.bf16.gmra.mrb[36].mxu0 %vm1880_vm7, %v6761_v0  ;;  %v763_v15 = vadd.f32 %v8398_v46, %v724_v5  ;;  %v1567_v2 = vshrl.u32 %v1404_v51, 16  ;;  %v1373_v6 = vld [vmem:[#allocation2 + $0xa8] sm:$0xf]  ;;  %v1366_v59 = vld [vmem:[#allocation2 + $0x9c] sm:$0xf] }
 0x13d   : > { %v1559_v14 = vor.u32 %v1558_v3, %v1554_v62  ;;  %v1570_v7 = vshll.u32 %v1404_v51, 16  ;;  %v761_v18 = vadd.f32 %v8398_v46, %v722_v9  ;;  %v764_v45 = vadd.f32 %v8398_v46, %v725_v10  ;;  %v1377_v5 = vld [vmem:[#allocation2 + $0xb0] sm:$0x1] }
 0x13e   : > { %v1550_v34 = vrot.slane %v1549_v61, 4  ;;  %v762_v12 = vadd.f32 %v8398_v46, %v723_v11  ;;  %v795_v19 = vmax.f32 %v763_v15, 0.0  ;;  %v1569_v20 = vrot.slane %v1567_v2, 4  ;;  %v1370_v2 = vld [vmem:[#allocation2 + $0xa4] sm:$0x1] }
 0x13f   : > { %v1560_v37 = vrot.slane %v1559_v14, 4  ;;  %v1572_v44 = vrot.slane %v1570_v7, 5  ;;  %v793_v21 = vmax.f32 %v761_v18, 0.0  ;;  %v796_v22 = vmax.f32 %v764_v45, 0.0  ;;  %v8080_v32 = vld [vmem:[#allocation2 + $0x90] sm:$0xff]  }
 0x140   : > { %v1555_v56 = vsel %vm8368_vm6, %v1550_v34, %v1554_v62  ;;  %v794_v52 = vmax.f32 %v762_v12, 0.0  ;;  %v7183_v25 = vpack.c.bf16 %v795_v19, %v795_v19  ;;  %v1576_v16 = vshll.u32 %v8644_v13, 16  ;;  %v8079_v28 = vld [vmem:[#allocation2 + $0x84] sm:$0xff]   ;;  %v8670_v12 = vld [vmem:[#allocation2 + $0x4c] sm:$0xf] }
 0x141   : > { %v1565_v57 = vsel %vm8368_vm6, %v1560_v37, %v1564_v4  ;;  %v1573_v27 = vor.u32 %v1572_v44, %v1569_v20  ;;  %v7181_v46 = vpack.c.bf16 %v793_v21, %v793_v21  ;;  %v7184_v30 = vpack.c.bf16 %v796_v22, %v796_v22  ;;  %7566 = vmatprep.mubr.msk.bf16.mxu1 %vm1880_vm7, %v8079_v28 }
 0x142   : > { %v6762_v63 = vcombine.low %v1555_v56, %v1565_v57  ;;  %v7182_v1 = vpack.c.bf16 %v794_v52, %v794_v52  ;;  %v1178_v33 = vshrl.u32 %v7183_v25, 16  ;;  %v1181_v36 = vshll.u32 %v7183_v25, 16  ;;  %7567 = vmatmul.mubr.msk.bf16.gmra.mrb[4].mxu1 %vm1880_vm7, %v8080_v32 }
 0x143   : > { %v8656_v40 = vrot.slane %v1573_v27, 4  ;;  %v8658_v41 = vrot.slane %v1576_v16, 5  ;;  %v1161_v47 = vshrl.u32 %v7181_v46, 16  ;;  %v1164_v48 = vshll.u32 %v7181_v46, 16 }
 0x144   : > { %7452 = vmatprep.mubr.msk.bf16.mxu0 %vm1880_vm7, %v6762_v63  ;;  %v1186_v49 = vshrl.u32 %v7184_v30, 16  ;;  %v1189_v43 = vshll.u32 %v7184_v30, 16  ;;  %v1180_v51 = vrot.slane %v1178_v33, 7  ;;  %v1169_v53 = vshrl.u32 %v7182_v1, 16  ;;  %v8134_v63 = vld [vmem:[%s10261_s2] ss:$0 sm:$0xff] }
 0x145   : > { %v1172_v54 = vshll.u32 %v7182_v1, 16  ;;  %v1579_v55 = vsel %vm8368_vm6, %v8656_v40, %v8658_v41  ;;  %v1163_v58 = vrot.slane %v1161_v47, 7  ;;  %v1580_v62 = vshrl.u32 %v8644_v13, 16  ;;  %v1433_v13 = vld [vmem:[#allocation2 + $0x50] sm:$0x1] }
 0x146   : > { %v1188_v60 = vrot.slane %v1186_v49, 7  ;;  %v1586_v0 = vshll.u32 %v1432_v38, 16  ;;  %v1183_v3 = vor.u32 %v1181_v36, %v1180_v51  ;;  %v1184_v4 = vrot.slane %v1180_v51, 4  ;;  %v8693_v40 = vld [vmem:[#allocation2 + $0x54] sm:$0xf] }
 0x147   : > { %v1171_v61 = vrot.slane %v1169_v53, 7  ;;  %v1591_v9 = vshrl.u32 %v1406_v50, 16  ;;  %v1166_v10 = vor.u32 %v1164_v48, %v1163_v58  ;;  %v1167_v11 = vrot.slane %v1163_v58, 4  ;;  %v8135_v47 = vld [vmem:[%s10262_s3] ss:$0 sm:$0xff] }
 0x148   : > { %v1191_v14 = vor.u32 %v1189_v43, %v1188_v60  ;;  %v1193_v15 = vrot.slane %v1188_v60, 4  ;;  %v1374_v7 = vsel %vm8416_vm11, %v1183_v3, %v1373_v6  ;;  %v1582_v45 = vrot.slane %v1580_v62, 4 }
 0x149   : > { %v1174_v34 = vor.u32 %v1172_v54, %v1171_v61  ;;  %v1176_v18 = vrot.slane %v1171_v61, 4  ;;  %1375 = vst [vmem:[#allocation2 + $0xa8] sm:$0xf] %v1374_v7  ;;  %v1367_v37 = vsel %vm8416_vm11, %v1166_v10, %v1366_v59  ;;  %v1588_v44 = vrot.slane %v1586_v0, 5  ;;  %v8708_v10 = vld [vmem:[#allocation2 + $0x58] sm:$0xf] }
 0x14a   : > { %v1192_v19 = vsel %vm8423_vm12, %v1184_v4, %v1191_v14  ;;  %v1378_v20 = vsel %vm8429_vm13, %v1193_v15, %v1377_v5  ;;  %1368 = vst [vmem:[#allocation2 + $0x9c] sm:$0xf] %v1367_v37  ;;  %v1583_v22 = vor.u32 %v1582_v45, %v8658_v41  ;;  %v1593_v52 = vrot.slane %v1591_v9, 4 }
 0x14b   : > { %1376 = vst.msk [vmem:[#allocation2 + $0xac] sm:$0xf] %vm801_vm1, %v1192_v19  ;;  %1379 = vst [vmem:[#allocation2 + $0xb0] sm:$0x1] %v1378_v20  ;;  %v1175_v56 = vsel %vm8423_vm12, %v1167_v11, %v1174_v34  ;;  %v1371_v21 = vsel %vm8429_vm13, %v1176_v18, %v1370_v2  ;;  %v1594_v57 = vshll.u32 %v1406_v50, 16  ;;  %v1600_v25 = vshll.u32 %v8670_v12, 16 }
 0x14c   : > { %1369 = vst.msk [vmem:[#allocation2 + $0xa0] sm:$0xf] %vm801_vm1, %v1175_v56  ;;  %1372 = vst [vmem:[#allocation2 + $0xa4] sm:$0x1] %v1371_v21  ;;  %v1604_v27 = vshrl.u32 %v8670_v12, 16  ;;  %v1610_v16 = vshll.u32 %v1433_v13, 16  ;;  %v728_v46 = vmul.f32 %v8134_v63, %v8564_v23  ;;  %v726_v30 = vmul.f32 %v8134_v63, %v8566_v29 }
 0x14d   : > { %v1584_v28 = vrot.slane %v1583_v22, 4  ;;  %v729_v1 = vmul.f32 %v8134_v63, %v8568_v39  ;;  %v1596_v32 = vrot.slane %v1594_v57, 5  ;;  %v1602_v33 = vrot.slane %v1600_v25, 5  ;;  %v1387_v20 = vld [vmem:[#allocation2 + $0xc0] sm:$0xf] }
 0x14e   : > { %v1606_v36 = vrot.slane %v1604_v27, 4  ;;  %v1612_v38 = vrot.slane %v1610_v16, 5  ;;  %v767_v48 = vadd.f32 %v8135_v47, %v728_v46  ;;  %v765_v49 = vadd.f32 %v8135_v47, %v726_v30  ;;  %v1380_v22 = vld [vmem:[#allocation2 + $0xb4] sm:$0xf]  ;;  %v1391_v30 = vld [vmem:[#allocation2 + $0xc8] sm:$0x1] }
 0x14f   : > { %v1589_v41 = vsel %vm8368_vm6, %v1584_v28, %v1588_v44  ;;  %v768_v23 = vadd.f32 %v8135_v47, %v729_v1  ;;  %v1597_v29 = vor.u32 %v1596_v32, %v1593_v52  ;;  %v727_v39 = vmul.f32 %v8134_v63, %v8570_v24  ;;  %v8715_v1 = vld [vmem:[#allocation2 + $0x60] sm:$0xf] }
 0x150   : > { %v6763_v43 = vcombine.low %v1579_v55, %v1589_v41  ;;  %v1607_v50 = vor.u32 %v1606_v36, %v1602_v33  ;;  %v799_v51 = vmax.f32 %v767_v48, 0.0  ;;  %v797_v6 = vmax.f32 %v765_v49, 0.0  ;;  %v1384_v49 = vld [vmem:[#allocation2 + $0xbc] sm:$0x1] }
 0x151   : > { %v800_v53 = vmax.f32 %v768_v23, 0.0  ;;  %v1615_v54 = vshrl.u32 %v8693_v40, 16  ;;  %v1598_v58 = vrot.slane %v1597_v29, 4  ;;  %v766_v60 = vadd.f32 %v8135_v47, %v727_v39  ;;  %v8721_v29 = vld [vmem:[#allocation2 + $0x64] sm:$0xf] }
 0x152   : > { %7453 = vmatmul.mubr.msk.bf16.gmra.mrb[40].mxu0 %vm1880_vm7, %v6763_v43  ;;  %v1608_v59 = vrot.slane %v1607_v50, 4  ;;  %v1618_v62 = vshll.u32 %v8693_v40, 16  ;;  %v7187_v0 = vpack.c.bf16 %v799_v51, %v799_v51  ;;  %v7185_v3 = vpack.c.bf16 %v797_v6, %v797_v6  ;;  %v8082_v14 = vld [vmem:[#allocation2 + $0xa8] sm:$0xff]  }
 0x153   : > { %v7188_v4 = vpack.c.bf16 %v800_v53, %v800_v53  ;;  %v1617_v55 = vrot.slane %v1615_v54, 4  ;;  %v8081_v5 = vld [vmem:[#allocation2 + $0x9c] sm:$0xff]   ;;  %v1603_v24 = vsel %vm8368_vm6, %v1598_v58, %v1602_v33  ;;  %v798_v9 = vmax.f32 %v766_v60, 0.0  ;;  %v1435_v58 = vld [vmem:[#allocation2 + $0x68] sm:$0x1] }
 0x154   : > { %v1613_v61 = vsel %vm8368_vm6, %v1608_v59, %v1612_v38  ;;  %v1620_v11 = vrot.slane %v1618_v62, 5  ;;  %v1212_v2 = vshrl.u32 %v7187_v0, 16  ;;  %v1215_v7 = vshll.u32 %v7187_v0, 16  ;;  %7570 = vmatprep.mubr.msk.bf16.mxu1 %vm1880_vm7, %v8081_v5  ;;  %v1434_v38 = vld [vmem:[#allocation2 + $0x5c] sm:$0x1] }
 0x155   : > { %v6764_v15 = vcombine.low %v1603_v24, %v1613_v61  ;;  %v1195_v34 = vshrl.u32 %v7185_v3, 16  ;;  %v1198_v18 = vshll.u32 %v7185_v3, 16  ;;  %v1220_v45 = vshrl.u32 %v7188_v4, 16  ;;  %7571 = vmatmul.mubr.msk.bf16.gmra.mrb[8].mxu1 %vm1880_vm7, %v8082_v14  ;;  %v8731_v60 = vld [vmem:[#allocation2 + $0x6c] sm:$0xf] }
 0x156   : > { %v1223_v13 = vshll.u32 %v7188_v4, 16  ;;  %v7186_v37 = vpack.c.bf16 %v798_v9, %v798_v9  ;;  %v1214_v19 = vrot.slane %v1212_v2, 7  ;;  %v1621_v56 = vor.u32 %v1620_v11, %v1617_v55  ;;  %v8739_v55 = vld [vmem:[#allocation2 + $0x70] sm:$0xf] }
 0x157   : > { %7456 = vmatprep.mubr.msk.bf16.mxu0 %vm1880_vm7, %v6764_v15  ;;  %v1197_v44 = vrot.slane %v1195_v34, 7  ;;  %v1624_v21 = vshll.u32 %v8708_v10, 16  ;;  %v1222_v52 = vrot.slane %v1220_v45, 7  ;;  %v1628_v27 = vshrl.u32 %v8708_v10, 16  ;;  %v8744_v15 = vld [vmem:[#allocation2 + $0x78] sm:$0xf] }
 0x158   : > { %v1203_v57 = vshrl.u32 %v7186_v37, 16  ;;  %v1206_v25 = vshll.u32 %v7186_v37, 16  ;;  %v1217_v16 = vor.u32 %v1215_v7, %v1214_v19  ;;  %v1218_v28 = vrot.slane %v1214_v19, 4  ;;  %v1436_v34 = vld [vmem:[#allocation2 + $0x74] sm:$0x1] }
 0x159   : > { %v1200_v63 = vor.u32 %v1198_v18, %v1197_v44  ;;  %v1201_v46 = vrot.slane %v1197_v44, 4  ;;  %v1225_v32 = vor.u32 %v1223_v13, %v1222_v52  ;;  %v1227_v33 = vrot.slane %v1222_v52, 4  ;;  %v8750_v44 = vld [vmem:[#allocation2 + $0x7c] sm:$0xf] }
 0x15a   : > { %v1205_v36 = vrot.slane %v1203_v57, 7  ;;  %v1622_v41 = vrot.slane %v1621_v56, 4  ;;  %v1388_v47 = vsel %vm8416_vm11, %v1217_v16, %v1387_v20  ;;  %v1626_v23 = vrot.slane %v1624_v21, 5  ;;  %v1437_v57 = vld [vmem:[#allocation2 + $0x80] sm:$0x1] }
 0x15b   : > { %v1381_v48 = vsel %vm8416_vm11, %v1200_v63, %v1380_v22  ;;  %v1630_v43 = vrot.slane %v1628_v27, 4  ;;  %1389 = vst [vmem:[#allocation2 + $0xc0] sm:$0xf] %v1388_v47  ;;  %v1226_v50 = vsel %vm8423_vm12, %v1218_v28, %v1225_v32  ;;  %v1392_v39 = vsel %vm8429_vm13, %v1227_v33, %v1391_v30  ;;  %v8756_v63 = vld [vmem:[#allocation2 + $0x84] sm:$0xf] }
 0x15c   : > { %1382 = vst [vmem:[#allocation2 + $0xb4] sm:$0xf] %v1381_v48  ;;  %v1208_v51 = vor.u32 %v1206_v25, %v1205_v36  ;;  %v1210_v6 = vrot.slane %v1205_v36, 4  ;;  %1390 = vst.msk [vmem:[#allocation2 + $0xc4] sm:$0xf] %vm801_vm1, %v1226_v50  ;;  %v1627_v17 = vsel %vm8368_vm6, %v1622_v41, %v1626_v23  ;;  %v1634_v54 = vshll.u32 %v1434_v38, 16 }
 0x15d   : > { %1393 = vst [vmem:[#allocation2 + $0xc8] sm:$0x1] %v1392_v39  ;;  %v1631_v53 = vor.u32 %v1630_v43, %v1626_v23  ;;  %v1639_v59 = vshrl.u32 %v8715_v1, 16  ;;  %v1642_v3 = vshll.u32 %v8715_v1, 16  ;;  %v1648_v4 = vshll.u32 %v8721_v29, 16 }
 0x15e   : > { %v1209_v62 = vsel %vm8423_vm12, %v1201_v46, %v1208_v51  ;;  %v1385_v0 = vsel %vm8429_vm13, %v1210_v6, %v1384_v49  ;;  %v1636_v24 = vrot.slane %v1634_v54, 5  ;;  %v1652_v9 = vshrl.u32 %v8721_v29, 16  ;;  %v8763_v39 = vld [vmem:[#allocation2 + $0x88] sm:$0xf] }
 0x15f   : > { %1383 = vst.msk [vmem:[#allocation2 + $0xb8] sm:$0xf] %vm801_vm1, %v1209_v62  ;;  %1386 = vst [vmem:[#allocation2 + $0xbc] sm:$0x1] %v1385_v0  ;;  %v1632_v5 = vrot.slane %v1631_v53, 4  ;;  %v1641_v61 = vrot.slane %v1639_v59, 4 }
 0x160   : > { %v1644_v11 = vrot.slane %v1642_v3, 5  ;;  %v1650_v26 = vrot.slane %v1648_v4, 5  ;;  %v1658_v14 = vshll.u32 %v1435_v58, 16  ;;  %v1663_v31 = vshrl.u32 %v8731_v60, 16  ;;  %v1438_v62 = vld [vmem:[#allocation2 + $0x8c] sm:$0x1] }
 0x161   : > { %v1637_v2 = vsel %vm8368_vm6, %v1632_v5, %v1636_v24  ;;  %v1654_v7 = vrot.slane %v1652_v9, 4  ;;  %v1666_v18 = vshll.u32 %v8731_v60, 16  ;;  %v1672_v45 = vshll.u32 %v8739_v55, 16  ;;  %v8774_v9 = vld [vmem:[#allocation2 + $0x90] sm:$0xf] }
 0x162   : > { %v6765_v13 = vcombine.low %v1627_v17, %v1637_v2  ;;  %v1645_v37 = vor.u32 %v1644_v11, %v1641_v61  ;;  %v1660_v19 = vrot.slane %v1658_v14, 5  ;;  %v1665_v20 = vrot.slane %v1663_v31, 4  ;;  %v8779_v2 = vld [vmem:[#allocation2 + $0x94] sm:$0xf] }
 0x163   : > { %v1655_v56 = vor.u32 %v1654_v7, %v1650_v26  ;;  %v1668_v21 = vrot.slane %v1666_v18, 5  ;;  %v1674_v22 = vrot.slane %v1672_v45, 5  ;;  %v1676_v52 = vshrl.u32 %v8739_v55, 16  ;;  %v8084_v51 = vld [vmem:[#allocation2 + $0xc0] sm:$0xff]  }
 0x164   : > { %7457 = vmatmul.mubr.msk.bf16.gmra.mrb[44].mxu0 %vm1880_vm7, %v6765_v13  ;;  %v1646_v25 = vrot.slane %v1645_v37, 4  ;;  %v1682_v27 = vshll.u32 %v1436_v34, 16  ;;  %v1687_v16 = vshrl.u32 %v8744_v15, 16  ;;  %v1690_v28 = vshll.u32 %v8744_v15, 16 }
 0x165   : > { %v1656_v46 = vrot.slane %v1655_v56, 4  ;;  %v1669_v30 = vor.u32 %v1668_v21, %v1665_v20  ;;  %v1678_v32 = vrot.slane %v1676_v52, 4  ;;  %v1696_v33 = vshll.u32 %v8750_v44, 16  ;;  %v1439_v21 = vld [vmem:[#allocation2 + $0x98] sm:$0x1] }
 0x166   : > { %v1651_v36 = vsel %vm8368_vm6, %v1646_v25, %v1650_v26  ;;  %v1684_v38 = vrot.slane %v1682_v27, 5  ;;  %v1689_v41 = vrot.slane %v1687_v16, 4  ;;  %v1692_v47 = vrot.slane %v1690_v28, 5  ;;  %v8083_v48 = vld [vmem:[#allocation2 + $0xb4] sm:$0xff]  }
 0x167   : > { %v1661_v49 = vsel %vm8368_vm6, %v1656_v46, %v1660_v19  ;;  %v1670_v23 = vrot.slane %v1669_v30, 4  ;;  %v1679_v43 = vor.u32 %v1678_v32, %v1674_v22  ;;  %v1698_v50 = vrot.slane %v1696_v33, 5  ;;  %7574 = vmatprep.mubr.msk.bf16.mxu1 %vm1880_vm7, %v8083_v48  ;;  %v8788_v46 = vld [vmem:[#allocation2 + $0x9c] sm:$0xf] }
 0x168   : > { %v6766_v6 = vcombine.low %v1651_v36, %v1661_v49  ;;  %v1693_v17 = vor.u32 %v1692_v47, %v1689_v41  ;;  %v1700_v53 = vshrl.u32 %v8750_v44, 16  ;;  %v1706_v54 = vshll.u32 %v1437_v57, 16  ;;  %7575 = vmatmul.mubr.msk.bf16.gmra.mrb[12].mxu1 %vm1880_vm7, %v8084_v51 }
 0x169   : > { %v1675_v58 = vsel %vm8368_vm6, %v1670_v23, %v1674_v22  ;;  %v1680_v59 = vrot.slane %v1679_v43, 4  ;;  %v1711_v0 = vshrl.u32 %v8756_v63, 16  ;;  %v1714_v3 = vshll.u32 %v8756_v63, 16 }
 0x16a   : > { %7460 = vmatprep.mubr.msk.bf16.mxu0 %vm1880_vm7, %v6766_v6  ;;  %v1694_v4 = vrot.slane %v1693_v17, 4  ;;  %v1702_v5 = vrot.slane %v1700_v53, 4  ;;  %v1708_v24 = vrot.slane %v1706_v54, 5  ;;  %v1720_v61 = vshll.u32 %v8763_v39, 16 }
 0x16b   : > { %v1685_v11 = vsel %vm8368_vm6, %v1680_v59, %v1684_v38  ;;  %v1713_v26 = vrot.slane %v1711_v0, 4  ;;  %v1716_v14 = vrot.slane %v1714_v3, 5  ;;  %v1724_v31 = vshrl.u32 %v8763_v39, 16  ;;  %v8792_v38 = vld [vmem:[#allocation2 + $0xa0] sm:$0xf] }
 0x16c   : > { %v6767_v7 = vcombine.low %v1675_v58, %v1685_v11  ;;  %v1699_v34 = vsel %vm8368_vm6, %v1694_v4, %v1698_v50  ;;  %v1703_v18 = vor.u32 %v1702_v5, %v1698_v50  ;;  %v1722_v45 = vrot.slane %v1720_v61, 5  ;;  %v1440_v50 = vld [vmem:[#allocation2 + $0xa4] sm:$0x1]  ;;  %v8803_v59 = vld [vmem:[#allocation2 + $0xa8] sm:$0xf] }
 0x16d   : > { %v1717_v13 = vor.u32 %v1716_v14, %v1713_v26  ;;  %v1726_v37 = vrot.slane %v1724_v31, 4  ;;  %v1730_v19 = vshll.u32 %v1438_v62, 16  ;;  %v1735_v20 = vshrl.u32 %v8774_v9, 16  ;;  %v8805_v5 = vld [vmem:[#allocation2 + $0xac] sm:$0xf] }
 0x16e   : > { %7461 = vmatmul.mubr.msk.bf16.gmra.mrb[48].mxu0 %vm1880_vm7, %v6767_v7  ;;  %v1704_v56 = vrot.slane %v1703_v18, 4  ;;  %v1738_v22 = vshll.u32 %v8774_v9, 16  ;;  %v1744_v52 = vshll.u32 %v8779_v2, 16  ;;  %v1748_v57 = vshrl.u32 %v8779_v2, 16  ;;  %v1441_v31 = vld [vmem:[#allocation2 + $0xb0] sm:$0x1] }
 0x16f   : > { %v1718_v25 = vrot.slane %v1717_v13, 4  ;;  %v1727_v27 = vor.u32 %v1726_v37, %v1722_v45  ;;  %v1732_v16 = vrot.slane %v1730_v19, 5  ;;  %v1737_v28 = vrot.slane %v1735_v20, 4 }
 0x170   : > { %v1709_v30 = vsel %vm8368_vm6, %v1704_v56, %v1708_v24  ;;  %v1740_v32 = vrot.slane %v1738_v22, 5  ;;  %v1746_v33 = vrot.slane %v1744_v52, 5  ;;  %v1750_v36 = vrot.slane %v1748_v57, 4  ;;  %v3201_v24 = vld [vmem:[#allocation2 + $0xc] sm:$0xf] }
 0x171   : > { %v6768_v41 = vcombine.low %v1699_v34, %v1709_v30  ;;  %v1723_v47 = vsel %vm8368_vm6, %v1718_v25, %v1722_v45  ;;  %v1728_v48 = vrot.slane %v1727_v27, 4  ;;  %v1754_v49 = vshll.u32 %v1439_v21, 16  ;;  %v8816_v57 = vld [vmem:[#allocation2 + $0x10] sm:$0xf]  ;;  %v8818_v25 = vld [vmem:[#allocation2 + $0x14] sm:$0x1] }
 0x172   : > { %v1741_v23 = vor.u32 %v1740_v32, %v1737_v28  ;;  %v1751_v43 = vor.u32 %v1750_v36, %v1746_v33  ;;  %v1759_v51 = vshrl.u32 %v8788_v46, 16  ;;  %v1762_v6 = vshll.u32 %v8788_v46, 16 }
 0x173   : > { %7464 = vmatprep.mubr.msk.bf16.mxu0 %vm1880_vm7, %v6768_v41  ;;  %v1733_v17 = vsel %vm8368_vm6, %v1728_v48, %v1732_v16  ;;  %v1756_v53 = vrot.slane %v1754_v49, 5  ;;  %v1768_v54 = vshll.u32 %v8792_v38, 16  ;;  %v1772_v58 = vshrl.u32 %v8792_v38, 16 }
 0x174   : > { %v6769_v62 = vcombine.low %v1723_v47, %v1733_v17  ;;  %v1742_v0 = vrot.slane %v1741_v23, 4  ;;  %v1752_v3 = vrot.slane %v1751_v43, 4  ;;  %v1761_v4 = vrot.slane %v1759_v51, 4  ;;  %v8821_v47 = vld [vmem:[#allocation2 + $0xb4] sm:$0xf] }
 0x175   : > { %v1764_v61 = vrot.slane %v1762_v6, 5  ;;  %v1770_v11 = vrot.slane %v1768_v54, 5  ;;  %v1774_v26 = vrot.slane %v1772_v58, 4  ;;  %v1778_v14 = vshll.u32 %v1440_v50, 16 }
 0x176   : > { %7465 = vmatmul.mubr.msk.bf16.gmra.mrb[52].mxu0 %vm1880_vm7, %v6769_v62  ;;  %v1747_v7 = vsel %vm8368_vm6, %v1742_v0, %v1746_v33  ;;  %v1757_v34 = vsel %vm8368_vm6, %v1752_v3, %v1756_v53  ;;  %v1783_v18 = vshrl.u32 %v8803_v59, 16  ;;  %v1786_v45 = vshll.u32 %v8803_v59, 16  ;;  %v8827_v53 = vld [vmem:[#allocation2 + $0xb8] sm:$0xf]  ;;  %v1442_v0 = vld [vmem:[#allocation2 + $0xbc] sm:$0x1] }
 0x177   : > { %v6770_v13 = vcombine.low %v1747_v7, %v1757_v34  ;;  %v1765_v37 = vor.u32 %v1764_v61, %v1761_v4  ;;  %v1775_v19 = vor.u32 %v1774_v26, %v1770_v11  ;;  %v1780_v20 = vrot.slane %v1778_v14, 5  ;;  %v3204_v34 = vld [vmem:[#allocation2 + $0x18] sm:$0xf] }
 0x178   : > { %v1785_v56 = vrot.slane %v1783_v18, 4  ;;  %v1788_v21 = vrot.slane %v1786_v45, 5  ;;  %v1792_v22 = vshll.u32 %v8805_v5, 16  ;;  %v1796_v52 = vshrl.u32 %v8805_v5, 16 }
 0x179   : > { %7468 = vmatprep.mubr.msk.bf16.mxu0 %vm1880_vm7, %v6770_v13  ;;  %v1766_v27 = vrot.slane %v1765_v37, 4  ;;  %v1776_v16 = vrot.slane %v1775_v19, 4  ;;  %v1802_v28 = vshll.u32 %v1441_v31, 16  ;;  %v3250_v30 = vshrl.u32 %v3201_v24, 16 }
 0x17a   : > { %v1789_v32 = vor.u32 %v1788_v21, %v1785_v56  ;;  %v1794_v33 = vrot.slane %v1792_v22, 5  ;;  %v1798_v36 = vrot.slane %v1796_v52, 4  ;;  %v3253_v41 = vshll.u32 %v3201_v24, 16  ;;  %v8841_v22 = vld [vmem:[#allocation2 + $0x1c] sm:$0xf] }
 0x17b   : > { %v1771_v48 = vsel %vm8368_vm6, %v1766_v27, %v1770_v11  ;;  %v1781_v49 = vsel %vm8368_vm6, %v1776_v16, %v1780_v20  ;;  %v1804_v23 = vrot.slane %v1802_v28, 5  ;;  %v3252_v43 = vrot.slane %v3250_v30, 4  ;;  %v8845_v28 = vld [vmem:[#allocation2 + $0x20] sm:$0x1] }
 0x17c   : > { %v6771_v50 = vcombine.low %v1771_v48, %v1781_v49  ;;  %v1790_v51 = vrot.slane %v1789_v32, 4  ;;  %v1799_v6 = vor.u32 %v1798_v36, %v1794_v33  ;;  %v3255_v17 = vrot.slane %v3253_v41, 5 }
 0x17d   : > { %v3259_v54 = vshll.u32 %v8816_v57, 16  ;;  %v3263_v58 = vshrl.u32 %v8816_v57, 16  ;;  %v3269_v62 = vshll.u32 %v8818_v25, 16  ;;  %v1807_v3 = vshrl.u32 %v8821_v47, 16 }
 0x17e   : > { %7469 = vmatmul.mubr.msk.bf16.gmra.mrb[56].mxu0 %vm1880_vm7, %v6771_v50  ;;  %v1795_v4 = vsel %vm8368_vm6, %v1790_v51, %v1794_v33  ;;  %v1800_v24 = vrot.slane %v1799_v6, 4  ;;  %v3256_v61 = vor.u32 %v3255_v17, %v3252_v43  ;;  %v1810_v11 = vshll.u32 %v8821_v47, 16 }
 0x17f   : > { %v3261_v26 = vrot.slane %v3259_v54, 5  ;;  %v3265_v14 = vrot.slane %v3263_v58, 4  ;;  %v3271_v31 = vrot.slane %v3269_v62, 5  ;;  %v1809_v7 = vrot.slane %v1807_v3, 4  ;;  %v3207_v54 = vld [vmem:[#allocation2 + $0x24] sm:$0xf] }
 0x180   : > { %v1805_v18 = vsel %vm8368_vm6, %v1800_v24, %v1804_v23  ;;  %v3257_v45 = vrot.slane %v3256_v61, 4  ;;  %v1812_v13 = vrot.slane %v1810_v11, 5  ;;  %v1816_v37 = vshll.u32 %v8827_v53, 16  ;;  %v8853_v58 = vld [vmem:[#allocation2 + $0x28] sm:$0xf] }
 0x181   : > { %v6772_v19 = vcombine.low %v1795_v4, %v1805_v18  ;;  %v3266_v20 = vor.u32 %v3265_v14, %v3261_v26  ;;  %v1820_v56 = vshrl.u32 %v8827_v53, 16  ;;  %v1826_v21 = vshll.u32 %v1442_v0, 16  ;;  %v8857_v24 = vld [vmem:[#allocation2 + $0x2c] sm:$0x1] }
 0x182   : > { %v3262_v52 = vsel %vm8368_vm6, %v3257_v45, %v3261_v26  ;;  %v1813_v27 = vor.u32 %v1812_v13, %v1809_v7  ;;  %v1818_v16 = vrot.slane %v1816_v37, 5  ;;  %v3274_v30 = vshrl.u32 %v3204_v34, 16 }
 0x183   : > { %7472 = vmatprep.mubr.msk.bf16.mxu0 %vm1880_vm7, %v6772_v19  ;;  %v3267_v32 = vrot.slane %v3266_v20, 4  ;;  %v1822_v33 = vrot.slane %v1820_v56, 4  ;;  %v1828_v36 = vrot.slane %v1826_v21, 5  ;;  %v3277_v41 = vshll.u32 %v3204_v34, 16  ;;  %v3210_v20 = vld [vmem:[#allocation2 + $0x30] sm:$0xf] }
 0x184   : > { %v1814_v48 = vrot.slane %v1813_v27, 4  ;;  %v3276_v49 = vrot.slane %v3274_v30, 4  ;;  %v3283_v23 = vshll.u32 %v8841_v22, 16  ;;  %v3287_v43 = vshrl.u32 %v8841_v22, 16  ;;  %v8867_v27 = vld [vmem:[#allocation2 + $0x34] sm:$0xf] }
 0x185   : > { %v3272_v50 = vsel %vm8368_vm6, %v3267_v32, %v3271_v31  ;;  %v1823_v51 = vor.u32 %v1822_v33, %v1818_v16  ;;  %v3279_v6 = vrot.slane %v3277_v41, 5  ;;  %v3293_v17 = vshll.u32 %v8845_v28, 16 }
 0x186   : > { %v6905_v62 = vcombine.low %v3262_v52, %v3272_v50  ;;  %v1819_v0 = vsel %vm8368_vm6, %v1814_v48, %v1818_v16  ;;  %v3285_v3 = vrot.slane %v3283_v23, 5  ;;  %v3289_v4 = vrot.slane %v3287_v43, 4  ;;  %v8137_v43 = vld [vmem:[#allocation2] sm:$0xf]  ;;  %v8883_v50 = vld [vmem:[#allocation2 + $0x4] sm:$0xf] }
 0x187   : > { %v1824_v61 = vrot.slane %v1823_v51, 4  ;;  %v3280_v11 = vor.u32 %v3279_v6, %v3276_v49  ;;  %v3295_v26 = vrot.slane %v3293_v17, 5  ;;  %v4202_v14 = vsel %vm1929_vm5, %v8609_v8, 0  ;;  %v8136_v49 = vld [vmem:[%s10263_s4] sm:$0x3] }
 0x188   : > { %7580 = vmatprep.mubr.msk.bf16.mxu1 %vm1880_vm7, %v6905_v62  ;;  %v3290_v31 = vor.u32 %v3289_v4, %v3285_v3  ;;  %v3298_v7 = vshrl.u32 %v3207_v54, 16  ;;  %v3301_v34 = vshll.u32 %v3207_v54, 16  ;;  %v3307_v18 = vshll.u32 %v8853_v58, 16  ;;  %v8886_v6 = vld [vmem:[#allocation2 + $0x38] sm:$0x1] }
 0x189   : > { %v1829_v45 = vsel %vm8368_vm6, %v1824_v61, %v1828_v36  ;;  %v3281_v13 = vrot.slane %v3280_v11, 4  ;;  %v3311_v37 = vshrl.u32 %v8853_v58, 16  ;;  %v3317_v19 = vshll.u32 %v8857_v24, 16  ;;  %v8874_v36 = vld [vmem:[%s10263_s4 + $0x4] sm:$0x3] }
 0x18a   : > { %v6773_v56 = vcombine.low %v1819_v0, %v1829_v45  ;;  %v3291_v21 = vrot.slane %v3290_v31, 4  ;;  %v3300_v52 = vrot.slane %v3298_v7, 4  ;;  %v3303_v8 = vrot.slane %v3301_v34, 5  ;;  %v8139_v62 = vld [vmem:[#allocation2 + $0xc] sm:$0xf] }
 0x18b   : > { %v3286_v16 = vsel %vm8368_vm6, %v3281_v13, %v3285_v3  ;;  %v3309_v30 = vrot.slane %v3307_v18, 5  ;;  %v3313_v32 = vrot.slane %v3311_v37, 4  ;;  %v3319_v33 = vrot.slane %v3317_v19, 5  ;;  %v8888_v0 = vld [vmem:[#allocation2 + $0x10] sm:$0xf] }
 0x18c   : > { %7473 = vmatmul.mubr.msk.bf16.gmra.mrb[60].mxu0 %vm1880_vm7, %v6773_v56  ;;  %v3296_v41 = vsel %vm8368_vm6, %v3291_v21, %v3295_v26  ;;  %v3304_v48 = vor.u32 %v3303_v8, %v3300_v52  ;;  %v2223_v23 = vsel %vm1929_vm5, %v8136_v49, 0  ;;  %v6790_v51 = vcombine.low %v8137_v43, %v8883_v50  ;;  %v3213_v61 = vld [vmem:[#allocation2 + $0x3c] sm:$0xf]  ;;  %v8897_v34 = vld [vmem:[%s10263_s4 + $0xc] sm:$0x3] }
 0x18d   : > { %v6906_v17 = vcombine.low %v3286_v16, %v3296_v41  ;;  %v3314_v54 = vor.u32 %v3313_v32, %v3309_v30  ;;  %7477 = vmatpush3.bf16.msra.mxu0 %v2223_v23  ;;  %v6791_v3 = vcombine.low %v8139_v62, %v8888_v0  ;;  %v3322_v4 = vshrl.u32 %v3210_v20, 16  ;;  %v8141_v37 = vld [vmem:[#allocation2 + $0x18] sm:$0xf]  ;;  %v8903_v19 = vld [vmem:[#allocation2 + $0x1c] sm:$0xf] }
 0x18e   : > { %v3305_v11 = vrot.slane %v3304_v48, 4  ;;  %7478 = vmatprep.mubr.msk.bf16.mxu0 %vm1880_vm7, %v6790_v51  ;;  %v3325_v26 = vshll.u32 %v3210_v20, 16  ;;  %v3331_v31 = vshll.u32 %v8867_v27, 16  ;;  %v3335_v7 = vshrl.u32 %v8867_v27, 16  ;;  %8042 = vmatprep.subr.msk.bf16.mxu0 %vm1929_vm5, %v8874_v36  ;;  %v8906_v56 = vld [vmem:[#allocation2 + $0x40] sm:$0xf] }
 0x18f   : > { %7581 = vmatmul.mubr.msk.bf16.vlgmr.msra.gmra.mrb[16].mxu1 %vm1880_vm7, %v6906_v17  ;;  %v3315_v18 = vrot.slane %v3314_v54, 4  ;;  %v3324_v45 = vrot.slane %v3322_v4, 4  ;;  %v3341_v13 = vshll.u32 %v8886_v6, 16  ;;  %v6792_v20 = vcombine.low %v8141_v37, %v8903_v19  ;;  %v8910_v32 = vld [vmem:[#allocation2 + $0x44] sm:$0x1] }
 0x190   : > { %7613 = vmatpush3.bf16.msra.mxu1 %v4202_v14  ;;  %v3310_v21 = vsel %vm8368_vm6, %v3305_v11, %v3309_v30  ;;  %v3327_v52 = vrot.slane %v3325_v26, 5  ;;  %v3333_v8 = vrot.slane %v3331_v31, 5  ;;  %v3337_v16 = vrot.slane %v3335_v7, 4  ;;  %v3216_v30 = vld [vmem:[#allocation2 + $0x48] sm:$0xf] }
 0x191   : > { %v3320_v41 = vsel %vm8368_vm6, %v3315_v18, %v3319_v33  ;;  %v3343_v48 = vrot.slane %v3341_v13, 5  ;;  %v3346_v49 = vshrl.u32 %v3213_v61, 16  ;;  %v3349_v23 = vshll.u32 %v3213_v61, 16  ;;  %8047 = vmatprep.subr.msk.bf16.mxu1 %vm1929_vm5, %v8897_v34  ;;  %v8919_v26 = vld [vmem:[#allocation2 + $0x4c] sm:$0xf] }
 0x192   : > { %v6907_v43 = vcombine.low %v3310_v21, %v3320_v41  ;;  %v3328_v51 = vor.u32 %v3327_v52, %v3324_v45  ;;  %v3338_v14 = vor.u32 %v3337_v16, %v3333_v8  ;;  %v3355_v17 = vshll.u32 %v8906_v56, 16  ;;  %v8143_v7 = vld [vmem:[#allocation2 + $0x24] sm:$0xf]  ;;  %v8923_v18 = vld [vmem:[#allocation2 + $0x28] sm:$0xf] }
 0x193   : > { %v3348_v54 = vrot.slane %v3346_v49, 4  ;;  %v3351_v62 = vrot.slane %v3349_v23, 5  ;;  %v3359_v4 = vshrl.u32 %v8906_v56, 16  ;;  %v3365_v11 = vshll.u32 %v8910_v32, 16  ;;  %v8927_v52 = vld [vmem:[#allocation2 + $0x50] sm:$0x1] }
 0x194   : > { %7584 = vmatprep.mubr.msk.bf16.mxu1 %vm1880_vm7, %v6907_v43  ;;  %7479 = vmatmul.mubr.msk.bf16.vlgmr.msra.gmra.mrb[32].mxu0 %vm1880_vm7, %v6791_v3  ;;  %v3329_v33 = vrot.slane %v3328_v51, 4  ;;  %v3339_v61 = vrot.slane %v3338_v14, 4  ;;  %v3357_v31 = vrot.slane %v3355_v17, 5  ;;  %v6793_v45 = vcombine.low %v8143_v7, %v8923_v18  ;;  %10302 = vst [vmem:[#allocation4_spill] sm:$0xff] %v8927_v52  ;;  %v3219_v43 = vld [vmem:[#allocation2 + $0x54] sm:$0xf] }
 0x195   : > { %7482 = vmatprep.mubr.msk.bf16.mxu0 %vm1880_vm7, %v6792_v20  ;;  %v3352_v13 = vor.u32 %v3351_v62, %v3348_v54  ;;  %v3361_v37 = vrot.slane %v3359_v4, 4  ;;  %v3367_v21 = vrot.slane %v3365_v11, 5  ;;  %v3370_v16 = vshrl.u32 %v3216_v30, 16  ;;  %v8936_v7 = vld [vmem:[#allocation2 + $0x58] sm:$0xf] }
 0x196   : > { %v3334_v41 = vsel %vm8368_vm6, %v3329_v33, %v3333_v8  ;;  %v3344_v3 = vsel %vm8368_vm6, %v3339_v61, %v3343_v48  ;;  %v3373_v49 = vshll.u32 %v3216_v30, 16  ;;  %v3379_v23 = vshll.u32 %v8919_v26, 16  ;;  %10303 = vst [vmem:[#allocation5_spill] sm:$0xff] %v8936_v7  ;;  %v8145_v30 = vld [vmem:[#allocation2 + $0x30] sm:$0xf] }
 0x197   : > { %v6908_v51 = vcombine.low %v3334_v41, %v3344_v3  ;;  %v3353_v14 = vrot.slane %v3352_v13, 4  ;;  %v3362_v17 = vor.u32 %v3361_v37, %v3357_v31  ;;  %v3372_v20 = vrot.slane %v3370_v16, 4  ;;  %v8941_v33 = vld [vmem:[#allocation2 + $0x34] sm:$0xf]  ;;  %v8944_v3 = vld [vmem:[#allocation2 + $0x5c] sm:$0x1] }
 0x198   : > { %v3375_v54 = vrot.slane %v3373_v49, 5  ;;  %v3381_v62 = vrot.slane %v3379_v23, 5  ;;  %v3383_v4 = vshrl.u32 %v8919_v26, 16  ;;  %v3389_v11 = vshll.u32 %v8927_v52, 16  ;;  %10304 = vst [vmem:[#allocation6_spill] sm:$0xff] %v8941_v33  ;;  %10305 = vst [vmem:[#allocation7_spill] sm:$0xff] %v8944_v3 }
 0x199   : > { %7585 = vmatmul.mubr.msk.bf16.gmra.mrb[20].mxu1 %vm1880_vm7, %v6908_v51  ;;  %v3358_v8 = vsel %vm8368_vm6, %v3353_v14, %v3357_v31  ;;  %v3363_v48 = vrot.slane %v3362_v17, 4  ;;  %v6794_v61 = vcombine.low %v8145_v30, %v8941_v33  ;;  %v3394_v13 = vshrl.u32 %v3219_v43, 16  ;;  %v3222_v14 = vld [vmem:[#allocation2 + $0x60] sm:$0xf] }
 0x19a   : > { %v3376_v37 = vor.u32 %v3375_v54, %v3372_v20  ;;  %v3385_v16 = vrot.slane %v3383_v4, 4  ;;  %v3391_v41 = vrot.slane %v3389_v11, 5  ;;  %v3397_v49 = vshll.u32 %v3219_v43, 16  ;;  %v8951_v54 = vld [vmem:[#allocation2 + $0x64] sm:$0xf] }
 0x19b   : > { %v3368_v23 = vsel %vm8368_vm6, %v3363_v48, %v3367_v21  ;;  %v3396_v51 = vrot.slane %v3394_v13, 4  ;;  %v3403_v52 = vshll.u32 %v8936_v7, 16  ;;  %v3407_v31 = vshrl.u32 %v8936_v7, 16  ;;  %v8147_v11 = vld [vmem:[#allocation2 + $0x3c] sm:$0xf] }
 0x19c   : > { %v6909_v17 = vcombine.low %v3358_v8, %v3368_v23  ;;  %7483 = vmatmul.mubr.msk.bf16.gmra.mrb[36].mxu0 %vm1880_vm7, %v6793_v45  ;;  %v3377_v30 = vrot.slane %v3376_v37, 4  ;;  %v3386_v33 = vor.u32 %v3385_v16, %v3381_v62  ;;  %v3399_v20 = vrot.slane %v3397_v49, 5  ;;  %v8955_v48 = vld [vmem:[#allocation2 + $0x40] sm:$0xf] }
 0x19d   : > { %7486 = vmatprep.mubr.msk.bf16.mxu0 %vm1880_vm7, %v6794_v61  ;;  %v3405_v43 = vrot.slane %v3403_v52, 5  ;;  %v3409_v4 = vrot.slane %v3407_v31, 4  ;;  %v3413_v21 = vshll.u32 %v8944_v3, 16  ;;  %10306 = vst [vmem:[#allocation8_spill] sm:$0xff] %v8955_v48  ;;  %v6795_v13 = vcombine.low %v8147_v11, %v8955_v48  ;;  %v8961_v61 = vld [vmem:[#allocation2 + $0x68] sm:$0x1] }
 0x19e   : > { %7588 = vmatprep.mubr.msk.bf16.mxu1 %vm1880_vm7, %v6909_v17  ;;  %v3382_v45 = vsel %vm8368_vm6, %v3377_v30, %v3381_v62  ;;  %v3387_v8 = vrot.slane %v3386_v33, 4  ;;  %v3400_v37 = vor.u32 %v3399_v20, %v3396_v51  ;;  %v3418_v16 = vshrl.u32 %v3222_v14, 16  ;;  %v3225_v48 = vld [vmem:[#allocation2 + $0x6c] sm:$0xf]  ;;  %v8967_v30 = vld [vmem:[#allocation2 + $0x70] sm:$0xf] }
 0x19f   : > { %v3410_v49 = vor.u32 %v3409_v4, %v3405_v43  ;;  %v3415_v23 = vrot.slane %v3413_v21, 5  ;;  %v3421_v52 = vshll.u32 %v3222_v14, 16  ;;  %v3427_v31 = vshll.u32 %v8951_v54, 16  ;;  %10307 = vst [vmem:[#allocation9_spill] sm:$0xff] %v8967_v30  ;;  %v8149_v21 = vld [vmem:[#allocation2 + $0x48] sm:$0xf] }
 0x1a0   : > { %v3392_v3 = vsel %vm8368_vm6, %v3387_v8, %v3391_v41  ;;  %v3401_v7 = vrot.slane %v3400_v37, 4  ;;  %v3420_v11 = vrot.slane %v3418_v16, 4  ;;  %v3431_v17 = vshrl.u32 %v8951_v54, 16 }
 0x1a1   : > { %v6910_v42 = vcombine.low %v3382_v45, %v3392_v3  ;;  %v3411_v62 = vrot.slane %v3410_v49, 4  ;;  %v3423_v33 = vrot.slane %v3421_v52, 5  ;;  %v3429_v51 = vrot.slane %v3427_v31, 5  ;;  %v8976_v45 = vld [vmem:[#allocation2 + $0x74] sm:$0x1] }
 0x1a2   : > { %v3406_v20 = vsel %vm8368_vm6, %v3401_v7, %v3405_v43  ;;  %v3433_v14 = vrot.slane %v3431_v17, 4  ;;  %v3437_v4 = vshll.u32 %v8961_v61, 16  ;;  %v6796_v41 = vcombine.low %v8149_v21, %v8670_v12  ;;  %10308 = vst [vmem:[#allocation10_spill] sm:$0xff] %v8976_v45  ;;  %v3228_v31 = vld [vmem:[#allocation2 + $0x78] sm:$0xf] }
 0x1a3   : > { %7589 = vmatmul.mubr.msk.bf16.gmra.mrb[24].mxu1 %vm1880_vm7, %v6910_v42  ;;  %v3416_v8 = vsel %vm8368_vm6, %v3411_v62, %v3415_v23  ;;  %v3424_v3 = vor.u32 %v3423_v33, %v3420_v11  ;;  %v3442_v37 = vshrl.u32 %v3225_v48, 16  ;;  %v3445_v16 = vshll.u32 %v3225_v48, 16  ;;  %v8982_v11 = vld [vmem:[#allocation2 + $0x7c] sm:$0xf]  ;;  %v8990_v21 = vld [vmem:[#allocation2 + $0x80] sm:$0x1] }
 0x1a4   : > { %v6911_v49 = vcombine.low %v3406_v20, %v3416_v8  ;;  %7487 = vmatmul.mubr.msk.bf16.gmra.mrb[40].mxu0 %vm1880_vm7, %v6795_v13  ;;  %v3434_v7 = vor.u32 %v3433_v14, %v3429_v51  ;;  %v3439_v43 = vrot.slane %v3437_v4, 5  ;;  %v3451_v52 = vshll.u32 %v8967_v30, 16 }
 0x1a5   : > { %v3425_v17 = vrot.slane %v3424_v3, 4  ;;  %7490 = vmatprep.mubr.msk.bf16.mxu0 %vm1880_vm7, %v6796_v41  ;;  %v3444_v42 = vrot.slane %v3442_v37, 4  ;;  %v3447_v12 = vrot.slane %v3445_v16, 5  ;;  %v3455_v23 = vshrl.u32 %v8967_v30, 16 }
 0x1a6   : > { %7592 = vmatprep.mubr.msk.bf16.mxu1 %vm1880_vm7, %v6911_v49  ;;  %v3435_v48 = vrot.slane %v3434_v7, 4  ;;  %v3453_v62 = vrot.slane %v3451_v52, 5  ;;  %v3461_v13 = vshll.u32 %v8976_v45, 16  ;;  %v6797_v33 = vcombine.low %v8693_v40, %v8708_v10  ;;  %v3231_v49 = vld [vmem:[#allocation2 + $0x84] sm:$0xf] }
 0x1a7   : > { %v3430_v20 = vsel %vm8368_vm6, %v3425_v17, %v3429_v51  ;;  %v3448_v14 = vor.u32 %v3447_v12, %v3444_v42  ;;  %v3457_v4 = vrot.slane %v3455_v23, 4  ;;  %v3466_v41 = vshrl.u32 %v3228_v31, 16  ;;  %v8997_v42 = vld [vmem:[#allocation2 + $0x88] sm:$0xf] }
 0x1a8   : > { %v3440_v8 = vsel %vm8368_vm6, %v3435_v48, %v3439_v43  ;;  %v3463_v3 = vrot.slane %v3461_v13, 5  ;;  %v3469_v37 = vshll.u32 %v3228_v31, 16  ;;  %v3475_v16 = vshll.u32 %v8982_v11, 16 }
 0x1a9   : > { %v6912_v7 = vcombine.low %v3430_v20, %v3440_v8  ;;  %v3449_v52 = vrot.slane %v3448_v14, 4  ;;  %v3458_v45 = vor.u32 %v3457_v4, %v3453_v62  ;;  %v3468_v40 = vrot.slane %v3466_v41, 4  ;;  %v9005_v14 = vld [vmem:[#allocation2 + $0x8c] sm:$0x1] }
 0x1aa   : > { %v3471_v10 = vrot.slane %v3469_v37, 5  ;;  %v3477_v30 = vrot.slane %v3475_v16, 5  ;;  %v3479_v51 = vshrl.u32 %v8982_v11, 16  ;;  %v3485_v17 = vshll.u32 %v8990_v21, 16 }
 0x1ab   : > { %7593 = vmatmul.mubr.msk.bf16.gmra.mrb[28].mxu1 %vm1880_vm7, %v6912_v7  ;;  %v3454_v43 = vsel %vm8368_vm6, %v3449_v52, %v3453_v62  ;;  %v3459_v31 = vrot.slane %v3458_v45, 4  ;;  %v6798_v12 = vcombine.low %v8715_v1, %v8721_v29  ;;  %v3490_v23 = vshrl.u32 %v3231_v49, 16  ;;  %v3234_v1 = vld [vmem:[#allocation2 + $0x90] sm:$0xf]  ;;  %v9012_v7 = vld [vmem:[#allocation2 + $0x94] sm:$0xf] }
 0x1ac   : > { %7491 = vmatmul.mubr.msk.bf16.gmra.mrb[44].mxu0 %vm1880_vm7, %v6797_v33  ;;  %v3472_v48 = vor.u32 %v3471_v10, %v3468_v40  ;;  %v3481_v13 = vrot.slane %v3479_v51, 4  ;;  %v3487_v20 = vrot.slane %v3485_v17, 5  ;;  %v3493_v4 = vshll.u32 %v3231_v49, 16 }
 0x1ad   : > { %v3464_v41 = vsel %vm8368_vm6, %v3459_v31, %v3463_v3  ;;  %7494 = vmatprep.mubr.msk.bf16.mxu0 %vm1880_vm7, %v6798_v12  ;;  %v3492_v8 = vrot.slane %v3490_v23, 4  ;;  %v3499_v45 = vshll.u32 %v8997_v42, 16  ;;  %v3503_v62 = vshrl.u32 %v8997_v42, 16  ;;  %v9020_v23 = vld [vmem:[#allocation2 + $0x98] sm:$0x1] }
 0x1ae   : > { %v6913_v29 = vcombine.low %v3454_v43, %v3464_v41  ;;  %v3473_v37 = vrot.slane %v3472_v48, 4  ;;  %v3482_v33 = vor.u32 %v3481_v13, %v3477_v30  ;;  %v3495_v16 = vrot.slane %v3493_v4, 5 }
 0x1af   : > { %v3501_v52 = vrot.slane %v3499_v45, 5  ;;  %v3505_v40 = vrot.slane %v3503_v62, 4  ;;  %v3509_v49 = vshll.u32 %v9005_v14, 16  ;;  %v6799_v3 = vcombine.low %v8731_v60, %v8739_v55  ;;  %v3237_v45 = vld [vmem:[#allocation2 + $0x9c] sm:$0xf] }
 0x1b0   : > { %7596 = vmatprep.mubr.msk.bf16.mxu1 %vm1880_vm7, %v6913_v29  ;;  %v3478_v10 = vsel %vm8368_vm6, %v3473_v37, %v3477_v30  ;;  %v3483_v51 = vrot.slane %v3482_v33, 4  ;;  %v3496_v17 = vor.u32 %v3495_v16, %v3492_v8  ;;  %v3514_v43 = vshrl.u32 %v3234_v1, 16  ;;  %v9026_v37 = vld [vmem:[#allocation2 + $0xa0] sm:$0xf] }
 0x1b1   : > { %v3506_v31 = vor.u32 %v3505_v40, %v3501_v52  ;;  %v3511_v12 = vrot.slane %v3509_v49, 5  ;;  %v3517_v48 = vshll.u32 %v3234_v1, 16  ;;  %v3523_v13 = vshll.u32 %v9012_v7, 16 }
 0x1b2   : > { %v3488_v4 = vsel %vm8368_vm6, %v3483_v51, %v3487_v20  ;;  %v3497_v41 = vrot.slane %v3496_v17, 4  ;;  %v3516_v60 = vrot.slane %v3514_v43, 4  ;;  %v3527_v55 = vshrl.u32 %v9012_v7, 16 }
 0x1b3   : > { %v6914_v62 = vcombine.low %v3478_v10, %v3488_v4  ;;  %v3507_v30 = vrot.slane %v3506_v31, 4  ;;  %v3519_v29 = vrot.slane %v3517_v48, 5  ;;  %v3525_v8 = vrot.slane %v3523_v13, 5  ;;  %v9037_v10 = vld [vmem:[#allocation2 + $0xa4] sm:$0x1] }
 0x1b4   : > { %v3502_v33 = vsel %vm8368_vm6, %v3497_v41, %v3501_v52  ;;  %7495 = vmatmul.mubr.msk.bf16.gmra.mrb[48].mxu0 %vm1880_vm7, %v6799_v3  ;;  %v3529_v1 = vrot.slane %v3527_v55, 4  ;;  %v3533_v16 = vshll.u32 %v9020_v23, 16  ;;  %v6800_v20 = vcombine.low %v8744_v15, %v8750_v44  ;;  %v3240_v48 = vld [vmem:[#allocation2 + $0xa8] sm:$0xf]  ;;  %v9042_v41 = vld [vmem:[#allocation2 + $0xac] sm:$0xf] }
 0x1b5   : > { %7597 = vmatmul.mubr.msk.bf16.gmra.mrb[0].mxu1 %vm1880_vm7, %v6914_v62  ;;  %v3512_v40 = vsel %vm8368_vm6, %v3507_v30, %v3511_v12  ;;  %v3520_v49 = vor.u32 %v3519_v29, %v3516_v60  ;;  %v3538_v51 = vshrl.u32 %v3237_v45, 16  ;;  %v3541_v17 = vshll.u32 %v3237_v45, 16 }
 0x1b6   : > { %v6915_v43 = vcombine.low %v3502_v33, %v3512_v40  ;;  %v3530_v52 = vor.u32 %v3529_v1, %v3525_v8  ;;  %v3535_v31 = vrot.slane %v3533_v16, 5  ;;  %7498 = vmatprep.mubr.msk.bf16.mxu0 %vm1880_vm7, %v6800_v20  ;;  %v3547_v3 = vshll.u32 %v9026_v37, 16  ;;  %v9050_v33 = vld [vmem:[#allocation2 + $0xb0] sm:$0x1] }
 0x1b7   : > { %v3521_v13 = vrot.slane %v3520_v49, 4  ;;  %v3540_v15 = vrot.slane %v3538_v51, 4  ;;  %v3543_v44 = vrot.slane %v3541_v17, 5  ;;  %v3551_v4 = vshrl.u32 %v9026_v37, 16  ;;  %v3243_v51 = vld [vmem:[#allocation2 + $0xb4] sm:$0xf] }
 0x1b8   : > { %7600 = vmatprep.mubr.msk.bf16.mxu1 %vm1880_vm7, %v6915_v43  ;;  %v3531_v12 = vrot.slane %v3530_v52, 4  ;;  %v3549_v60 = vrot.slane %v3547_v3, 5  ;;  %v3557_v55 = vshll.u32 %v9037_v10, 16  ;;  %v6801_v45 = vcombine.low %v8756_v63, %v8763_v39 }
 0x1b9   : > { %v3526_v62 = vsel %vm8368_vm6, %v3521_v13, %v3525_v8  ;;  %v3544_v30 = vor.u32 %v3543_v44, %v3540_v15  ;;  %v3553_v29 = vrot.slane %v3551_v4, 4  ;;  %v3562_v1 = vshrl.u32 %v3240_v48, 16  ;;  %v9058_v15 = vld [vmem:[#allocation2 + $0xb8] sm:$0xf] }
 0x1ba   : > { %v3536_v16 = vsel %vm8368_vm6, %v3531_v12, %v3535_v31  ;;  %v3559_v20 = vrot.slane %v3557_v55, 5  ;;  %v3565_v40 = vshll.u32 %v3240_v48, 16  ;;  %v3571_v49 = vshll.u32 %v9042_v41, 16 }
 0x1bb   : > { %v6916_v17 = vcombine.low %v3526_v62, %v3536_v16  ;;  %v3545_v43 = vrot.slane %v3544_v30, 4  ;;  %v3554_v52 = vor.u32 %v3553_v29, %v3549_v60  ;;  %v3564_v63 = vrot.slane %v3562_v1, 4  ;;  %v9065_v62 = vld [vmem:[#allocation2 + $0xbc] sm:$0x1] }
 0x1bc   : > { %7499 = vmatmul.mubr.msk.bf16.gmra.mrb[52].mxu0 %vm1880_vm7, %v6801_v45  ;;  %v3567_v39 = vrot.slane %v3565_v40, 5  ;;  %v3573_v8 = vrot.slane %v3571_v49, 5  ;;  %v3575_v3 = vshrl.u32 %v9042_v41, 16  ;;  %v3581_v13 = vshll.u32 %v9050_v33, 16  ;;  %v3246_v40 = vld [vmem:[#allocation2 + $0xc0] sm:$0xf] }
 0x1bd   : > { %7601 = vmatmul.mubr.msk.bf16.gmra.mrb[4].mxu1 %vm1880_vm7, %v6916_v17  ;;  %v3550_v31 = vsel %vm8368_vm6, %v3545_v43, %v3549_v60  ;;  %v3555_v48 = vrot.slane %v3554_v52, 4  ;;  %v6802_v44 = vcombine.low %v8774_v9, %v8779_v2  ;;  %v3586_v4 = vshrl.u32 %v3243_v51, 16  ;;  %v9072_v43 = vld [vmem:[#allocation2 + $0xc4] sm:$0xf] }
 0x1be   : > { %v3568_v12 = vor.u32 %v3567_v39, %v3564_v63  ;;  %v3577_v55 = vrot.slane %v3575_v3, 4  ;;  %v3583_v45 = vrot.slane %v3581_v13, 5  ;;  %v3589_v30 = vshll.u32 %v3243_v51, 16 }
 0x1bf   : > { %v3560_v29 = vsel %vm8368_vm6, %v3555_v48, %v3559_v20  ;;  %7502 = vmatprep.mubr.msk.bf16.mxu0 %vm1880_vm7, %v6802_v44  ;;  %v3588_v1 = vrot.slane %v3586_v4, 4  ;;  %v3595_v16 = vshll.u32 %v9058_v15, 16  ;;  %v3599_v60 = vshrl.u32 %v9058_v15, 16  ;;  %v9080_v4 = vld [vmem:[#allocation2 + $0xc8] sm:$0x1] }
 0x1c0   : > { %v6917_v49 = vcombine.low %v3550_v31, %v3560_v29  ;;  %v3569_v9 = vrot.slane %v3568_v12, 4  ;;  %v3578_v2 = vor.u32 %v3577_v55, %v3573_v8  ;;  %v3591_v17 = vrot.slane %v3589_v30, 5 }
 0x1c1   : > { %v3597_v52 = vrot.slane %v3595_v16, 5  ;;  %v3601_v63 = vrot.slane %v3599_v60, 4  ;;  %v3605_v51 = vshll.u32 %v9065_v62, 16  ;;  %v6803_v20 = vcombine.low %v8788_v46, %v8792_v38 }
 0x1c2   : > { %7604 = vmatprep.mubr.msk.bf16.mxu1 %vm1880_vm7, %v6917_v49  ;;  %v3574_v39 = vsel %vm8368_vm6, %v3569_v9, %v3573_v8  ;;  %v3579_v3 = vrot.slane %v3578_v2, 4  ;;  %v3592_v13 = vor.u32 %v3591_v17, %v3588_v1  ;;  %v3610_v31 = vshrl.u32 %v3246_v40, 16 }
 0x1c3   : > { %v3602_v48 = vor.u32 %v3601_v63, %v3597_v52  ;;  %v3607_v44 = vrot.slane %v3605_v51, 5  ;;  %v3613_v12 = vshll.u32 %v3246_v40, 16  ;;  %v3619_v55 = vshll.u32 %v9072_v43, 16  ;;  %v3927_v63 = vld [vmem:[#allocation2 + $0xc] sm:$0xe] }
 0x1c4   : > { %v3584_v30 = vsel %vm8368_vm6, %v3579_v3, %v3583_v45  ;;  %v3593_v29 = vrot.slane %v3592_v13, 4  ;;  %7503 = vmatmul.mubr.msk.bf16.gmra.mrb[56].mxu0 %vm1880_vm7, %v6803_v20  ;;  %v3612_v46 = vrot.slane %v3610_v31, 4  ;;  %v3623_v38 = vshrl.u32 %v9072_v43, 16 }
 0x1c5   : > { %v6918_v8 = vcombine.low %v3574_v39, %v3584_v30  ;;  %v3603_v16 = vrot.slane %v3602_v48, 4  ;;  %v3615_v1 = vrot.slane %v3613_v12, 5  ;;  %v3621_v60 = vrot.slane %v3619_v55, 5 }
 0x1c6   : > { %v3598_v49 = vsel %vm8368_vm6, %v3593_v29, %v3597_v52  ;;  %v3625_v9 = vrot.slane %v3623_v38, 4  ;;  %v3629_v40 = vshll.u32 %v9080_v4, 16  ;;  %v6804_v2 = vcombine.low %v8803_v59, %v8805_v5  ;;  %v3928_v52 = vld [vmem:[#allocation2 + $0x18] sm:$0xe] }
 0x1c7   : > { %7605 = vmatmul.mubr.msk.bf16.gmra.mrb[8].mxu1 %vm1880_vm7, %v6918_v8  ;;  %v3608_v45 = vsel %vm8368_vm6, %v3603_v16, %v3607_v44  ;;  %v3616_v17 = vor.u32 %v3615_v1, %v3612_v46  ;;  %v3993_v59 = vrot.slane %v8816_v57, 5  ;;  %v6937_v31 = vrot.slane %v3927_v63, 9  ;;  %v2386_v46 = vld [vmem:[#allocation2] sm:$0xe] }
 0x1c8   : > { %v6919_v51 = vcombine.low %v3598_v49, %v3608_v45  ;;  %v3626_v20 = vor.u32 %v3625_v9, %v3621_v60  ;;  %7506 = vmatprep.mubr.msk.bf16.mxu0 %vm1880_vm7, %v6804_v2  ;;  %v3631_v3 = vrot.slane %v3629_v40, 5  ;;  %v6805_v48 = vcombine.low %v8821_v47, %v8827_v53  ;;  %v3929_v53 = vld [vmem:[#allocation2 + $0x24] sm:$0xe]  ;;  %v2387_v40 = vld [vmem:[#allocation2 + $0xc] sm:$0xe] }
 0x1c9   : > { %v3617_v39 = vrot.slane %v3616_v17, 4  ;;  %v4000_v44 = vrot.slane %v8841_v22, 5  ;;  %v3995_v12 = vrot.slane %v3993_v59, 4  ;;  %v3996_v55 = vrot.slane %v8818_v25, 5 }
 0x1ca   : > { %7608 = vmatprep.mubr.msk.bf16.mxu1 %vm1880_vm7, %v6919_v51  ;;  %v3627_v5 = vrot.slane %v3626_v20, 4  ;;  %v6938_v30 = vrot.slane %v3928_v52, 9  ;;  %v4003_v29 = vrot.slane %v8845_v28, 5  ;;  %v3994_v8 = vsel %vm9096_vm0, %v6937_v31, %v3993_v59  ;;  %v8150_v51 = vld [vmem:[#allocation2 + $0x8] sm:$0x1] }
 0x1cb   : > { %v3622_v38 = vsel %vm8368_vm6, %v3617_v39, %v3621_v60  ;;  %v4002_v47 = vrot.slane %v4000_v44, 4  ;;  %v3997_v25 = vsel %vm9096_vm0, %v3995_v12, %v3996_v55  ;;  %v4561_v28 = vsel %vm1929_vm5, %v8897_v34, 0  ;;  %v3930_v52 = vld [vmem:[#allocation2 + $0x30] sm:$0xe]  ;;  %v8151_v39 = vld [vmem:[%s10263_s4 + $0x6] sm:$0x3] }
 0x1cc   : > { %v3632_v57 = vsel %vm8368_vm6, %v3627_v5, %v3631_v3  ;;  %7507 = vmatmul.mubr.msk.bf16.gmra.mrb[60].mxu0 %vm1880_vm7, %v6805_v48  ;;  %v4007_v16 = vrot.slane %v8853_v58, 5  ;;  %v6954_v1 = vcombine.low %v3994_v8, %v3997_v25  ;;  %v2648_v49 = vsel %vm1929_vm5, %v8874_v36, 0  ;;  %v2388_v12 = vld [vmem:[#allocation2 + $0x18] sm:$0xe]  ;;  %v8153_v25 = vld [vmem:[#allocation2 + $0x20] sm:$0x1] }
 0x1cd   : > { %v6920_v22 = vcombine.low %v3622_v38, %v3632_v57  ;;  %v4004_v60 = vsel %vm9096_vm0, %v4002_v47, %v4003_v29  ;;  %v6822_v9 = vrot.slane %v2386_v46, 9  ;;  %v4001_v2 = vsel %vm9096_vm0, %v6938_v30, %v4000_v44  ;;  %7511 = vmatpush3.bf16.msra.mxu0 %v2648_v49 }
 0x1ce   : > { %v6939_v45 = vrot.slane %v3929_v53, 9  ;;  %v4009_v17 = vrot.slane %v4007_v16, 4  ;;  %v2439_v34 = vrot.slane %v8883_v50, 5  ;;  %v6955_v58 = vcombine.low %v4001_v2, %v4004_v60  ;;  %8043 = vmatprep.subr.msk.bf16.mxu0 %vm1929_vm5, %v8151_v39 }
 0x1cf   : > { %7609 = vmatmul.mubr.msk.bf16.gmra.mrb[12].mxu1 %vm1880_vm7, %v6920_v22  ;;  %v4010_v63 = vrot.slane %v8857_v24, 5  ;;  %v2442_v20 = vrot.slane %v8150_v51, 5  ;;  %v2446_v36 = vrot.slane %v8888_v0, 5  ;;  %v6823_v5 = vrot.slane %v2387_v40, 9  ;;  %v8152_v0 = vld [vmem:[#allocation2 + $0x14] sm:$0x1] }
 0x1d0   : > { %7614 = vmatprep.mubr.msk.bf16.mxu1 %vm1880_vm7, %v6954_v1  ;;  %v4008_v3 = vsel %vm9096_vm0, %v6939_v45, %v4007_v16  ;;  %v2440_v50 = vsel %vm9096_vm0, %v6822_v9, %v2439_v34  ;;  %v2441_v59 = vrot.slane %v2439_v34, 4  ;;  %v2449_v48 = vrot.slane %v8152_v0, 5  ;;  %v3931_v1 = vld [vmem:[#allocation2 + $0x3c] sm:$0xe]  ;;  %v2389_v9 = vld [vmem:[#allocation2 + $0x24] sm:$0xe] }
 0x1d1   : > { %v4011_v24 = vsel %vm9096_vm0, %v4009_v17, %v4010_v63  ;;  %v2448_v31 = vrot.slane %v2446_v36, 4  ;;  %v4014_v44 = vrot.slane %v8867_v27, 5  ;;  %v2447_v30 = vsel %vm9096_vm0, %v6823_v5, %v2446_v36  ;;  %v9156_v40 = vld [vmem:[%s10263_s4 + $0xe] sm:$0x3]  ;;  %v3932_v51 = vld [vmem:[#allocation2 + $0x48] sm:$0xe] }
 0x1d2   : > { %v2443_v55 = vsel %vm9096_vm0, %v2441_v59, %v2442_v20  ;;  %v6940_v29 = vrot.slane %v3930_v52, 9  ;;  %v2453_v46 = vrot.slane %v8903_v19, 5  ;;  %v4017_v47 = vrot.slane %v8886_v6, 5  ;;  %v8154_v52 = vld [vmem:[#allocation2 + $0x2c] sm:$0x1]  ;;  %v10312_v5 = vld [vmem:[#allocation6_spill] sm:$0xff] }
 0x1d3   : > { %v6839_v38 = vcombine.low %v2440_v50, %v2443_v55  ;;  %v2450_v57 = vsel %vm9096_vm0, %v2448_v31, %v2449_v48  ;;  %v4016_v8 = vrot.slane %v4014_v44, 4  ;;  %v6824_v22 = vrot.slane %v2388_v12, 9  ;;  %v2390_v50 = vld [vmem:[#allocation2 + $0x30] sm:$0xe] }
 0x1d4   : > { %v6840_v53 = vcombine.low %v2447_v30, %v2450_v57  ;;  %v2455_v27 = vrot.slane %v2453_v46, 4  ;;  %v2456_v16 = vrot.slane %v8153_v25, 5  ;;  %v6956_v60 = vcombine.low %v4008_v3, %v4011_v24 }
 0x1d5   : > { %7512 = vmatprep.mubr.msk.bf16.mxu0 %vm1880_vm7, %v6839_v38  ;;  %v4015_v49 = vsel %vm9096_vm0, %v6940_v29, %v4014_v44  ;;  %v4021_v19 = vrot.slane %v8906_v56, 5  ;;  %v4018_v6 = vsel %vm9096_vm0, %v4016_v8, %v4017_v47  ;;  %v2454_v2 = vsel %vm9096_vm0, %v6824_v22, %v2453_v46  ;;  %v10313_v44 = vld [vmem:[#allocation4_spill] sm:$0xff]  ;;  %v8155_v29 = vld [vmem:[#allocation2 + $0x38] sm:$0x1]  ;;  %v3933_v38 = vld [vmem:[#allocation2 + $0x54] sm:$0xe] }
 0x1d6   : > { %7513 = vmatmul.mubr.msk.bf16.vlgmr.msra.gmra.mrb[32].mxu0 %vm1880_vm7, %v6840_v53  ;;  %v2457_v45 = vsel %vm9096_vm0, %v2455_v27, %v2456_v16  ;;  %v2460_v56 = vrot.slane %v8923_v18, 5  ;;  %v6941_v34 = vrot.slane %v3931_v1, 9  ;;  %v6825_v20 = vrot.slane %v2389_v9, 9  ;;  %v10311_v18 = vld [vmem:[#allocation3_spill] sm:$0xff]  ;;  %v10314_v53 = vld [vmem:[#allocation5_spill] sm:$0xff] }
 0x1d7   : > { %7615 = vmatmul.mubr.msk.bf16.vlgmr.msra.gmra.mrb[16].mxu1 %vm1880_vm7, %v6955_v58  ;;  %v6841_v17 = vcombine.low %v2454_v2, %v2457_v45  ;;  %v4023_v63 = vrot.slane %v4021_v19, 4  ;;  %v4024_v58 = vrot.slane %v8910_v32, 5  ;;  %v2463_v39 = vrot.slane %v8154_v52, 5  ;;  %7545 = vmatpush3.bf16.msra.mxu0 %v10311_v18  ;;  %v2391_v27 = vld [vmem:[#allocation2 + $0x3c] sm:$0xe] }
 0x1d8   : > { %7647 = vmatpush3.bf16.msra.mxu1 %v4561_v28  ;;  %7618 = vmatprep.mubr.msk.bf16.mxu1 %vm1880_vm7, %v6956_v60  ;;  %v2462_v36 = vrot.slane %v2460_v56, 4  ;;  %v4028_v3 = vrot.slane %v8919_v26, 5  ;;  %v6957_v28 = vcombine.low %v4015_v49, %v4018_v6  ;;  %v4022_v59 = vsel %vm9096_vm0, %v6941_v34, %v4021_v19  ;;  %v10315_v60 = vld [vmem:[#allocation8_spill] sm:$0xff]  ;;  %v10316_v2 = vld [vmem:[#allocation7_spill] sm:$0xff] }
 0x1d9   : > { %8048 = vmatprep.subr.msk.bf16.mxu1 %vm1929_vm5, %v9156_v40  ;;  %7516 = vmatprep.mubr.msk.bf16.mxu0 %vm1880_vm7, %v6841_v17  ;;  %v4025_v32 = vsel %vm9096_vm0, %v4023_v63, %v4024_v58  ;;  %v2467_v24 = vrot.slane %v10312_v5, 5  ;;  %v2461_v26 = vsel %vm9096_vm0, %v6825_v20, %v2460_v56  ;;  %v6942_v0 = vrot.slane %v3932_v51, 9  ;;  %v3934_v56 = vld [vmem:[#allocation2 + $0x60] sm:$0xe]  ;;  %v8156_v63 = vld [vmem:[#allocation2 + $0x44] sm:$0x1] }
 0x1da   : > { %v2464_v31 = vsel %vm9096_vm0, %v2462_v36, %v2463_v39  ;;  %v4030_v48 = vrot.slane %v4028_v3, 4  ;;  %v4031_v12 = vrot.slane %v10313_v44, 5  ;;  %v6826_v55 = vrot.slane %v2390_v50, 9  ;;  %v2392_v20 = vld [vmem:[#allocation2 + $0x48] sm:$0xe] }
 0x1db   : > { %v2469_v30 = vrot.slane %v2467_v24, 4  ;;  %v2470_v46 = vrot.slane %v8155_v29, 5  ;;  %v6958_v57 = vcombine.low %v4022_v59, %v4025_v32  ;;  %v6842_v8 = vcombine.low %v2461_v26, %v2464_v31  ;;  %v8158_v26 = vld [vmem:[#allocation2 + $0x50] sm:$0x1]  ;;  %v2393_v29 = vld [vmem:[#allocation2 + $0x54] sm:$0xe] }
 0x1dc   : > { %v4029_v47 = vsel %vm9096_vm0, %v6942_v0, %v4028_v3  ;;  %v4035_v22 = vrot.slane %v10314_v53, 5  ;;  %v4032_v25 = vsel %vm9096_vm0, %v4030_v48, %v4031_v12  ;;  %v2468_v16 = vsel %vm9096_vm0, %v6826_v55, %v2467_v24  ;;  %v8157_v3 = vld [vmem:[#allocation2 + $0x4c] sm:$0xf] }
 0x1dd   : > { %v2471_v1 = vsel %vm9096_vm0, %v2469_v30, %v2470_v46  ;;  %v2474_v49 = vrot.slane %v10315_v60, 5  ;;  %v6943_v9 = vrot.slane %v3933_v38, 9  ;;  %v4038_v45 = vrot.slane %v10316_v2, 5  ;;  %v3935_v0 = vld [vmem:[#allocation2 + $0x6c] sm:$0xe] }
 0x1de   : > { %7517 = vmatmul.mubr.msk.bf16.gmra.mrb[36].mxu0 %vm1880_vm7, %v6842_v8  ;;  %v6843_v19 = vcombine.low %v2468_v16, %v2471_v1  ;;  %v4037_v6 = vrot.slane %v4035_v22, 4  ;;  %v6827_v17 = vrot.slane %v2391_v27, 9  ;;  %v2477_v58 = vrot.slane %v8156_v63, 5  ;;  %v10317_v55 = vld [vmem:[#allocation9_spill] sm:$0xff] }
 0x1df   : > { %7619 = vmatmul.mubr.msk.bf16.gmra.mrb[20].mxu1 %vm1880_vm7, %v6957_v28  ;;  %v2476_v34 = vrot.slane %v2474_v49, 4  ;;  %v4042_v51 = vrot.slane %v8951_v54, 5  ;;  %v6959_v36 = vcombine.low %v4029_v47, %v4032_v25  ;;  %v4036_v52 = vsel %vm9096_vm0, %v6943_v9, %v4035_v22  ;;  %v3936_v47 = vld [vmem:[#allocation2 + $0x78] sm:$0xe]  ;;  %v10318_v25 = vld [vmem:[#allocation10_spill] sm:$0xff] }
 0x1e0   : > { %7622 = vmatprep.mubr.msk.bf16.mxu1 %vm1880_vm7, %v6958_v57  ;;  %7520 = vmatprep.mubr.msk.bf16.mxu0 %vm1880_vm7, %v6843_v19  ;;  %v4039_v39 = vsel %vm9096_vm0, %v4037_v6, %v4038_v45  ;;  %v2481_v50 = vrot.slane %v8157_v3, 5  ;;  %v2475_v18 = vsel %vm9096_vm0, %v6827_v17, %v2474_v49  ;;  %v6944_v59 = vrot.slane %v3934_v56, 9  ;;  %v8159_v57 = vld [vmem:[#allocation2 + $0x58] sm:$0xf]  ;;  %v8160_v49 = vld [vmem:[#allocation2 + $0x5c] sm:$0x1] }
 0x1e1   : > { %v2478_v28 = vsel %vm9096_vm0, %v2476_v34, %v2477_v58  ;;  %v4044_v54 = vrot.slane %v4042_v51, 4  ;;  %v4045_v32 = vrot.slane %v8961_v61, 5  ;;  %v6828_v5 = vrot.slane %v2392_v20, 9  ;;  %v2394_v56 = vld [vmem:[#allocation2 + $0x60] sm:$0xe] }
 0x1e2   : > { %v2483_v24 = vrot.slane %v2481_v50, 4  ;;  %v2484_v31 = vrot.slane %v8158_v26, 5  ;;  %v6960_v48 = vcombine.low %v4036_v52, %v4039_v39  ;;  %v6844_v44 = vcombine.low %v2475_v18, %v2478_v28  ;;  %v8161_v17 = vld [vmem:[#allocation2 + $0x64] sm:$0xf]  ;;  %v8162_v39 = vld [vmem:[#allocation2 + $0x68] sm:$0x1] }
 0x1e3   : > { %v4043_v12 = vsel %vm9096_vm0, %v6944_v59, %v4042_v51  ;;  %v4049_v30 = vrot.slane %v10317_v55, 5  ;;  %v4046_v46 = vsel %vm9096_vm0, %v4044_v54, %v4045_v32  ;;  %v2482_v38 = vsel %vm9096_vm0, %v6828_v5, %v2481_v50  ;;  %v3937_v50 = vld [vmem:[#allocation2 + $0x84] sm:$0xe] }
 0x1e4   : > { %v2485_v61 = vsel %vm9096_vm0, %v2483_v24, %v2484_v31  ;;  %v2488_v8 = vrot.slane %v8159_v57, 5  ;;  %v6945_v22 = vrot.slane %v3935_v0, 9  ;;  %v4052_v16 = vrot.slane %v10318_v25, 5  ;;  %v8163_v24 = vld [vmem:[#allocation2 + $0x70] sm:$0xf] }
 0x1e5   : > { %v6845_v53 = vcombine.low %v2482_v38, %v2485_v61  ;;  %v4051_v27 = vrot.slane %v4049_v30, 4  ;;  %v6829_v1 = vrot.slane %v2393_v29, 9  ;;  %v2491_v19 = vrot.slane %v8160_v49, 5  ;;  %v8164_v57 = vld [vmem:[#allocation2 + $0x74] sm:$0x1] }
 0x1e6   : > { %7521 = vmatmul.mubr.msk.bf16.gmra.mrb[40].mxu0 %vm1880_vm7, %v6844_v44  ;;  %v2490_v60 = vrot.slane %v2488_v8, 4  ;;  %v4056_v9 = vrot.slane %v8982_v11, 5  ;;  %v4050_v6 = vsel %vm9096_vm0, %v6945_v22, %v4049_v30  ;;  %v6946_v45 = vrot.slane %v3936_v47, 9  ;;  %v2395_v30 = vld [vmem:[#allocation2 + $0x6c] sm:$0xe] }
 0x1e7   : > { %7623 = vmatmul.mubr.msk.bf16.gmra.mrb[24].mxu1 %vm1880_vm7, %v6959_v36  ;;  %7524 = vmatprep.mubr.msk.bf16.mxu0 %vm1880_vm7, %v6845_v53  ;;  %v4053_v2 = vsel %vm9096_vm0, %v4051_v27, %v4052_v16  ;;  %v2495_v34 = vrot.slane %v8161_v17, 5  ;;  %v4059_v11 = vrot.slane %v8990_v21, 5  ;;  %v6961_v20 = vcombine.low %v4043_v12, %v4046_v46  ;;  %v3938_v12 = vld [vmem:[#allocation2 + $0x90] sm:$0xe]  ;;  %v2396_v46 = vld [vmem:[#allocation2 + $0x78] sm:$0xe] }
 0x1e8   : > { %7626 = vmatprep.mubr.msk.bf16.mxu1 %vm1880_vm7, %v6960_v48  ;;  %v6962_v63 = vcombine.low %v4050_v6, %v4053_v2  ;;  %v2492_v58 = vsel %vm9096_vm0, %v2490_v60, %v2491_v19  ;;  %v4058_v51 = vrot.slane %v4056_v9, 4  ;;  %v2489_v36 = vsel %vm9096_vm0, %v6829_v1, %v2488_v8  ;;  %v8166_v60 = vld [vmem:[#allocation2 + $0x80] sm:$0x1]  ;;  %v3939_v19 = vld [vmem:[#allocation2 + $0x9c] sm:$0xe] }
 0x1e9   : > { %v2497_v52 = vrot.slane %v2495_v34, 4  ;;  %v2498_v3 = vrot.slane %v8162_v39, 5  ;;  %v9235_v18 = vsel %vm9096_vm0, %v6946_v45, %v4056_v9  ;;  %v6830_v59 = vrot.slane %v2394_v56, 9  ;;  %v2397_v39 = vld [vmem:[#allocation2 + $0x84] sm:$0xe] }
 0x1ea   : > { %v9239_v28 = vsel %vm9096_vm0, %v4058_v51, %v4059_v11  ;;  %v4063_v54 = vrot.slane %v8997_v42, 5  ;;  %v6846_v21 = vcombine.low %v2489_v36, %v2492_v58  ;;  %v2502_v26 = vrot.slane %v8163_v24, 5  ;;  %v3940_v36 = vld [vmem:[#allocation2 + $0xa8] sm:$0xe] }
 0x1eb   : > { %v6963_v32 = vcombine.low %v9235_v18, %v9239_v28  ;;  %v2499_v5 = vsel %vm9096_vm0, %v2497_v52, %v2498_v3  ;;  %v2496_v31 = vsel %vm9096_vm0, %v6830_v59, %v2495_v34  ;;  %v6947_v0 = vrot.slane %v3937_v50, 9  ;;  %v8167_v34 = vld [vmem:[#allocation2 + $0x88] sm:$0xf]  ;;  %v2398_v18 = vld [vmem:[#allocation2 + $0x90] sm:$0xe] }
 0x1ec   : > { %v4065_v48 = vrot.slane %v4063_v54, 4  ;;  %v4066_v44 = vrot.slane %v9005_v14, 5  ;;  %v6847_v55 = vcombine.low %v2496_v31, %v2499_v5  ;;  %v2504_v42 = vrot.slane %v2502_v26, 4  ;;  %v8165_v14 = vld [vmem:[#allocation2 + $0x7c] sm:$0xf] }
 0x1ed   : > { %v4070_v29 = vrot.slane %v9012_v7, 5  ;;  %v4064_v38 = vsel %vm9096_vm0, %v6947_v0, %v4063_v54  ;;  %v2505_v8 = vrot.slane %v8164_v57, 5  ;;  %v2509_v47 = vrot.slane %v8165_v14, 5  ;;  %v8168_v54 = vld [vmem:[#allocation2 + $0x8c] sm:$0x1] }
 0x1ee   : > { %7525 = vmatmul.mubr.msk.bf16.gmra.mrb[44].mxu0 %vm1880_vm7, %v6846_v21  ;;  %v4067_v61 = vsel %vm9096_vm0, %v4065_v48, %v4066_v44  ;;  %v6948_v53 = vrot.slane %v3938_v12, 9  ;;  %v4073_v27 = vrot.slane %v9020_v23, 5  ;;  %v6831_v25 = vrot.slane %v2395_v30, 9  ;;  %v8169_v5 = vld [vmem:[#allocation2 + $0x94] sm:$0xf] }
 0x1ef   : > { %7627 = vmatmul.mubr.msk.bf16.gmra.mrb[28].mxu1 %vm1880_vm7, %v6961_v20  ;;  %7528 = vmatprep.mubr.msk.bf16.mxu0 %vm1880_vm7, %v6847_v55  ;;  %v6964_v7 = vcombine.low %v4064_v38, %v4067_v61  ;;  %v4072_v22 = vrot.slane %v4070_v29, 4  ;;  %v6832_v16 = vrot.slane %v2396_v46, 9  ;;  %v2511_v1 = vrot.slane %v2509_v47, 4  ;;  %v8170_v12 = vld [vmem:[#allocation2 + $0x98] sm:$0x1] }
 0x1f0   : > { %7630 = vmatprep.mubr.msk.bf16.mxu1 %vm1880_vm7, %v6962_v63  ;;  %v2512_v49 = vrot.slane %v8166_v60, 5  ;;  %v2506_v9 = vsel %vm9096_vm0, %v2504_v42, %v2505_v8  ;;  %v9263_v6 = vsel %vm9096_vm0, %v6948_v53, %v4070_v29  ;;  %v4077_v45 = vrot.slane %v9026_v37, 5  ;;  %v3941_v30 = vld [vmem:[#allocation2 + $0xb4] sm:$0xe]  ;;  %v8171_v57 = vld [vmem:[#allocation2 + $0xa0] sm:$0xf] }
 0x1f1   : > { %v9267_v2 = vsel %vm9096_vm0, %v4072_v22, %v4073_v27  ;;  %v2503_v23 = vsel %vm9096_vm0, %v6831_v25, %v2502_v26  ;;  %v2516_v63 = vrot.slane %v8167_v34, 5  ;;  %v2510_v58 = vsel %vm9096_vm0, %v6832_v16, %v2509_v47  ;;  %v3942_v22 = vld [vmem:[#allocation2 + $0xc0] sm:$0xe] }
 0x1f2   : > { %v6965_v56 = vcombine.low %v9263_v6, %v9267_v2  ;;  %v2513_v17 = vsel %vm9096_vm0, %v2511_v1, %v2512_v49  ;;  %v6949_v51 = vrot.slane %v3939_v19, 9  ;;  %v4079_v11 = vrot.slane %v4077_v45, 4  ;;  %v8172_v49 = vld [vmem:[#allocation2 + $0xac] sm:$0xf] }
 0x1f3   : > { %v4080_v20 = vrot.slane %v9037_v10, 5  ;;  %v6848_v37 = vcombine.low %v2503_v23, %v2506_v9  ;;  %v6849_v52 = vcombine.low %v2510_v58, %v2513_v17  ;;  %v2518_v3 = vrot.slane %v2516_v63, 4  ;;  %v8173_v23 = vld [vmem:[#allocation2 + $0xa4] sm:$0x1]  ;;  %v2400_v58 = vld [vmem:[#allocation2 + $0xa8] sm:$0xe] }
 0x1f4   : > { %v4084_v50 = vrot.slane %v9042_v41, 5  ;;  %v4078_v28 = vsel %vm9096_vm0, %v6949_v51, %v4077_v45  ;;  %v2519_v21 = vrot.slane %v8168_v54, 5  ;;  %v2523_v24 = vrot.slane %v8169_v5, 5  ;;  %v8174_v51 = vld [vmem:[#allocation2 + $0xb0] sm:$0x1] }
 0x1f5   : > { %v4081_v59 = vsel %vm9096_vm0, %v4079_v11, %v4080_v20  ;;  %v6950_v26 = vrot.slane %v3940_v36, 9  ;;  %v4087_v41 = vrot.slane %v9050_v33, 5  ;;  %v6833_v0 = vrot.slane %v2397_v39, 9  ;;  %v8175_v36 = vld [vmem:[#allocation2 + $0xb8] sm:$0xf] }
 0x1f6   : > { %7529 = vmatmul.mubr.msk.bf16.gmra.mrb[48].mxu0 %vm1880_vm7, %v6848_v37  ;;  %v6966_v10 = vcombine.low %v4078_v28, %v4081_v59  ;;  %v4086_v31 = vrot.slane %v4084_v50, 4  ;;  %v6834_v48 = vrot.slane %v2398_v18, 9  ;;  %v2525_v44 = vrot.slane %v2523_v24, 4  ;;  %v2401_v54 = vld [vmem:[#allocation2 + $0xb4] sm:$0xe] }
 0x1f7   : > { %7631 = vmatmul.mubr.msk.bf16.gmra.mrb[0].mxu1 %vm1880_vm7, %v6963_v32  ;;  %7532 = vmatprep.mubr.msk.bf16.mxu0 %vm1880_vm7, %v6849_v52  ;;  %v2526_v55 = vrot.slane %v8170_v12, 5  ;;  %v2520_v32 = vsel %vm9096_vm0, %v2518_v3, %v2519_v21  ;;  %v4085_v42 = vsel %vm9096_vm0, %v6950_v26, %v4084_v50  ;;  %v4091_v33 = vrot.slane %v9058_v15, 5  ;;  %v8176_v21 = vld [vmem:[#allocation2 + $0xbc] sm:$0x1] }
 0x1f8   : > { %7634 = vmatprep.mubr.msk.bf16.mxu1 %vm1880_vm7, %v6964_v7  ;;  %v4088_v29 = vsel %vm9096_vm0, %v4086_v31, %v4087_v41  ;;  %v2517_v46 = vsel %vm9096_vm0, %v6833_v0, %v2516_v63  ;;  %v2530_v8 = vrot.slane %v8171_v57, 5  ;;  %v2524_v14 = vsel %vm9096_vm0, %v6834_v48, %v2523_v24  ;;  %v8094_v41 = vld [vmem:[#allocation2 + $0x18] sm:$0xff]   ;;  %v8096_v0 = vld [vmem:[#allocation2 + $0xc] sm:$0xff]   ;;  %v8095_v48 = vld [vmem:[#allocation2 + $0x24] sm:$0xff]  }
 0x1f9   : > { %v6967_v38 = vcombine.low %v4085_v42, %v4088_v29  ;;  %v2527_v61 = vsel %vm9096_vm0, %v2525_v44, %v2526_v55  ;;  %v6951_v47 = vrot.slane %v3941_v30, 9  ;;  %v4093_v7 = vrot.slane %v4091_v33, 4  ;;  %v8098_v12 = vld [vmem:[#allocation2 + $0x18] sm:$0xff]   ;;  %v8097_v55 = vld [vmem:[#allocation2 + $0x30] sm:$0xff]  }
 0x1fa   : > { %v4094_v53 = vrot.slane %v9065_v62, 5  ;;  %v6850_v27 = vcombine.low %v2517_v46, %v2520_v32  ;;  %v6851_v25 = vcombine.low %v2524_v14, %v2527_v61  ;;  %v4098_v15 = vrot.slane %v9072_v43, 5  ;;  %v2399_v62 = vld [vmem:[#allocation2 + $0x9c] sm:$0xe]  ;;  %v9342_v30 = vld [vmem:[%s10263_s4 + $0x10] sm:$0x3] }
 0x1fb   : > { %v4092_v16 = vsel %vm9096_vm0, %v6951_v47, %v4091_v33  ;;  %v2532_v60 = vrot.slane %v2530_v8, 4  ;;  %v2537_v19 = vrot.slane %v8172_v49, 5  ;;  %v6952_v6 = vrot.slane %v3942_v22, 9  ;;  %v8100_v32 = vld [vmem:[#allocation2 + $0x24] sm:$0xff]   ;;  %v9350_v42 = vld [vmem:[#allocation2 + $0x1c] sm:$0xf] }
 0x1fc   : > { %v4095_v1 = vsel %vm9096_vm0, %v4093_v7, %v4094_v53  ;;  %v4100_v2 = vrot.slane %v4098_v15, 4  ;;  %v4101_v45 = vrot.slane %v9080_v4, 5  ;;  %v2533_v17 = vrot.slane %v8173_v23, 5  ;;  %v8099_v29 = vld [vmem:[#allocation2 + $0x3c] sm:$0xff]   ;;  %v8102_v33 = vld [vmem:[#allocation2 + $0x30] sm:$0xff]   ;;  %v8101_v46 = vld [vmem:[#allocation2 + $0x48] sm:$0xff]  }
 0x1fd   : > { %v6968_v9 = vcombine.low %v4092_v16, %v4095_v1  ;;  %v2539_v43 = vrot.slane %v2537_v19, 4  ;;  %v4099_v34 = vsel %vm9096_vm0, %v6952_v6, %v4098_v15  ;;  %v6835_v11 = vrot.slane %v2399_v62, 9  ;;  %v4759_v47 = vld [vmem:[#allocation2 + $0x24] sm:$0xf]  ;;  %v9358_v7 = vld [vmem:[#allocation2 + $0x28] sm:$0xf] }
 0x1fe   : > { %7533 = vmatmul.mubr.msk.bf16.gmra.mrb[52].mxu0 %vm1880_vm7, %v6850_v27  ;;  %v4102_v63 = vsel %vm9096_vm0, %v4100_v2, %v4101_v45  ;;  %v2534_v20 = vsel %vm9096_vm0, %v2532_v60, %v2533_v17  ;;  %v2544_v37 = vrot.slane %v8175_v36, 5  ;;  %v6836_v52 = vrot.slane %v2400_v58, 9  ;;  %v8103_v49 = vld [vmem:[#allocation2 + $0x54] sm:$0xff]   ;;  %v8105_v6 = vld [vmem:[#allocation2 + $0x60] sm:$0xff]  }
 0x1ff   : > { %7635 = vmatmul.mubr.msk.bf16.gmra.mrb[4].mxu1 %vm1880_vm7, %v6965_v56  ;;  %7536 = vmatprep.mubr.msk.bf16.mxu0 %vm1880_vm7, %v6851_v25  ;;  %v6969_v4 = vcombine.low %v4099_v34, %v4102_v63  ;;  %v2540_v56 = vrot.slane %v8174_v51, 5  ;;  %v2531_v3 = vsel %vm9096_vm0, %v6835_v11, %v2530_v8  ;;  %v2547_v5 = vrot.slane %v8176_v21, 5  ;;  %v8108_v2 = vld [vmem:[#allocation2 + $0x54] sm:$0xff]   ;;  %v9364_v45 = vld [vmem:[#allocation2 + $0x20] sm:$0x1]  ;;  %v8107_v21 = vld [vmem:[#allocation2 + $0x6c] sm:$0xff]  }
 0x200   : > { %7638 = vmatprep.mubr.msk.bf16.mxu1 %vm1880_vm7, %v6966_v10  ;;  %v6852_v50 = vcombine.low %v2531_v3, %v2534_v20  ;;  %v2538_v18 = vsel %vm9096_vm0, %v6836_v52, %v2537_v19  ;;  %v2546_v59 = vrot.slane %v2544_v37, 4  ;;  %v6837_v24 = vrot.slane %v2401_v54, 9  ;;  %v8106_v19 = vld [vmem:[#allocation2 + $0x48] sm:$0xff]   ;;  %v9373_v58 = vld [vmem:[#allocation2 + $0x34] sm:$0xf] }
 0x201   : > { %v2541_v39 = vsel %vm9096_vm0, %v2539_v43, %v2540_v56  ;;  %v5287_v44 = vsel %vm1929_vm5, %v9156_v40, 0  ;;  %v4756_v40 = vld [vmem:[#allocation2 + $0x18] sm:$0xf]  ;;  %v4814_v8 = vshll.u32 %v9350_v42, 16  ;;  %v4818_v14 = vshrl.u32 %v9350_v42, 16 }
 0x202   : > { %v6853_v28 = vcombine.low %v2538_v18, %v2541_v39  ;;  %v2548_v10 = vsel %vm9096_vm0, %v2546_v59, %v2547_v5  ;;  %v2545_v26 = vsel %vm9096_vm0, %v6837_v24, %v2544_v37  ;;  %v4805_v61 = vshrl.u32 %v4756_v40, 16  ;;  %v9376_v36 = vld [vmem:[#allocation2 + $0x40] sm:$0xf]  ;;  %v9378_v52 = vld [vmem:[#allocation2 + $0x2c] sm:$0x1] }
 0x203   : > { %v6854_v31 = vcombine.low %v2545_v26, %v2548_v10  ;;  %v4808_v57 = vshll.u32 %v4756_v40, 16  ;;  %v4829_v27 = vshrl.u32 %v4759_v47, 16  ;;  %v4832_v25 = vshll.u32 %v4759_v47, 16  ;;  %v9382_v18 = vld [vmem:[#allocation2 + $0x38] sm:$0x1] }
 0x204   : > { %v4807_v53 = vrot.slane %v4805_v61, 4  ;;  %v9360_v15 = vrot.slane %v4814_v8, 5  ;;  %v4820_v16 = vrot.slane %v4818_v14, 4  ;;  %v4838_v1 = vshll.u32 %v9358_v7, 16  ;;  %v4765_v24 = vld [vmem:[#allocation2 + $0x3c] sm:$0xf] }
 0x205   : > { %v4810_v22 = vrot.slane %v4808_v57, 5  ;;  %v4842_v60 = vshrl.u32 %v9358_v7, 16  ;;  %v4831_v43 = vrot.slane %v4829_v27, 4  ;;  %v4834_v23 = vrot.slane %v4832_v25, 5  ;;  %v9405_v57 = vld [vmem:[#allocation2 + $0x58] sm:$0xf] }
 0x206   : > { %7537 = vmatmul.mubr.msk.bf16.gmra.mrb[56].mxu0 %vm1880_vm7, %v6852_v50  ;;  %v4821_v17 = vor.u32 %v4820_v16, %v9360_v15  ;;  %v9369_v34 = vrot.slane %v4838_v1, 5  ;;  %v4824_v56 = vshll.u32 %v9364_v45, 16  ;;  %v4862_v3 = vshll.u32 %v9373_v58, 16  ;;  %v8110_v50 = vld [vmem:[#allocation2 + $0x60] sm:$0xff]  }
 0x207   : > { %7639 = vmatmul.mubr.msk.bf16.gmra.mrb[8].mxu1 %vm1880_vm7, %v6967_v38  ;;  %7540 = vmatprep.mubr.msk.bf16.mxu0 %vm1880_vm7, %v6853_v28  ;;  %v8104_v38 = vld [vmem:[#allocation2 + $0x3c] sm:$0xff]   ;;  %v4811_v62 = vor.u32 %v4810_v22, %v4807_v53  ;;  %v4844_v63 = vrot.slane %v4842_v60, 4  ;;  %v4835_v20 = vor.u32 %v4834_v23, %v4831_v43  ;;  %v4866_v54 = vshrl.u32 %v9373_v58, 16  ;;  %v4771_v60 = vld [vmem:[#allocation2 + $0x54] sm:$0xf] }
 0x208   : > { %7642 = vmatprep.mubr.msk.bf16.mxu1 %vm1880_vm7, %v6968_v9  ;;  %v4762_v9 = vld [vmem:[#allocation2 + $0x30] sm:$0xf]  ;;  %v4822_v37 = vrot.slane %v4821_v17, 4  ;;  %v4826_v5 = vrot.slane %v4824_v56, 5  ;;  %v4886_v10 = vshll.u32 %v9376_v36, 16  ;;  %v4890_v26 = vshrl.u32 %v9376_v36, 16 }
 0x209   : > { %v4856_v51 = vshll.u32 %v4762_v9, 16  ;;  %v4812_v11 = vrot.slane %v4811_v62, 4  ;;  %v4845_v39 = vor.u32 %v4844_v63, %v9369_v34  ;;  %v9401_v40 = vrot.slane %v4862_v3, 5  ;;  %v4774_v23 = vld [vmem:[#allocation2 + $0x60] sm:$0xf]  ;;  %v8111_v17 = vld [vmem:[#allocation2 + $0x84] sm:$0xff]  }
 0x20a   : > { %v4880_v61 = vshll.u32 %v4765_v24, 16  ;;  %v9407_v8 = vrot.slane %v4886_v10, 5  ;;  %v4892_v14 = vrot.slane %v4890_v26, 4  ;;  %v9428_v56 = vld [vmem:[#allocation2 + $0x64] sm:$0xf]  ;;  %v4928_v3 = vshll.u32 %v4771_v60, 16 }
 0x20b   : > { %v4858_v59 = vrot.slane %v4856_v51, 5  ;;  %v4958_v10 = vshll.u32 %v9428_v56, 16  ;;  %v4962_v26 = vshrl.u32 %v9428_v56, 16  ;;  %v5558_v35 = vrot.slane %v9378_v52, 5 }
 0x20c   : > { %v4882_v63 = vrot.slane %v4880_v61, 5  ;;  %vm6593_vm1 = vcmask 125952  }
 0x20e   : > { %7541 = vmatmul.mubr.msk.bf16.gmra.mrb[60].mxu0 %vm1880_vm7, %v6854_v31  ;;  %v8109_v31 = vld [vmem:[#allocation2 + $0x78] sm:$0xff]  }
 0x20f   : > { %7643 = vmatmul.mubr.msk.bf16.gmra.mrb[12].mxu1 %vm1880_vm7, %v6969_v4  ;;  %7546 = vmatprep.mubr.msk.bf16.mxu0 %vm1880_vm7, %v8096_v0  ;;  %v4853_v4 = vshrl.u32 %v4762_v9, 16  ;;  %v4836_v0 = vrot.slane %v4835_v20, 4  ;;  %v8112_v9 = vld [vmem:[#allocation2 + $0x90] sm:$0xff]  }
 0x210   : > { %7648 = vmatprep.mubr.msk.bf16.mxu1 %vm1880_vm7, %v8094_v41  ;;  %v4817_v41 = vsel %vm8368_vm6, %v4812_v11, %v9360_v15  ;;  %v9430_v11 = vld [vmem:[#allocation2 + $0x44] sm:$0x1] }
 0x211   : > { %v4855_v28 = vrot.slane %v4853_v4, 4  ;;  %v4841_v16 = vsel %vm8368_vm6, %v4836_v0, %v9369_v34  ;;  %v4893_v34 = vor.u32 %v4892_v14, %v9407_v8  ;;  %v4896_v0 = vshll.u32 %v9430_v11, 16 }
 0x216   : > { %7547 = vmatmul.mubr.msk.bf16.vlgmr.msra.gmra.mrb[32].mxu0 %vm1880_vm7, %v8098_v12  ;;  %v9395_v12 = vld [vmem:[#allocation2 + $0x4c] sm:$0xf] }
 0x217   : > { %7649 = vmatmul.mubr.msk.bf16.vlgmr.msra.gmra.mrb[16].mxu1 %vm1880_vm7, %v8095_v48  ;;  %7550 = vmatprep.mubr.msk.bf16.mxu0 %vm1880_vm7, %v8100_v32  ;;  %v4848_v48 = vshll.u32 %v9378_v52, 16  ;;  %v4846_v32 = vrot.slane %v4845_v39, 4  ;;  %v4910_v47 = vshll.u32 %v9395_v12, 16  ;;  %v4914_v53 = vshrl.u32 %v9395_v12, 16 }
 0x218   : > { %7681 = vmatpush3.bf16.msra.mxu1 %v5287_v44  ;;  %7652 = vmatprep.mubr.msk.bf16.mxu1 %vm1880_vm7, %v8097_v55  ;;  %v9393_v44 = vsel %vm1929_vm5, %v9342_v30, 0  ;;  %v4827_v55 = vsel %vm8368_vm6, %v4822_v37, %v4826_v5  ;;  %v4925_v39 = vshrl.u32 %v4771_v60, 16  ;;  %v8113_v60 = vld [vmem:[#allocation2 + $0x9c] sm:$0xff]  }
 0x219   : > { %8049 = vmatprep.subr.msk.bf16.mxu1 %vm1929_vm5, %v9342_v30  ;;  %v4868_v30 = vrot.slane %v4866_v54, 4  ;;  %v9411_v22 = vcombine.low %v4817_v41, %v4827_v55  ;;  %v4850_v27 = vrot.slane %v4848_v48, 5  ;;  %v9426_v4 = vrot.slane %v4910_v47, 5  ;;  %v9448_v55 = vld [vmem:[#allocation2 + $0x5c] sm:$0x1] }
 0x21a   : > { %v4916_v51 = vrot.slane %v4914_v53, 4  ;;  %v4949_v54 = vshrl.u32 %v4774_v23, 16 }
 0x21b   : > { %v4869_v62 = vor.u32 %v4868_v30, %v9401_v40  ;;  %v4930_v30 = vrot.slane %v4928_v3, 5  ;;  %v9465_v3 = vld [vmem:[#allocation2 + $0x7c] sm:$0xf] }
 0x21c   : > { %v4917_v48 = vor.u32 %v4916_v51, %v9426_v4  ;;  %v4951_v47 = vrot.slane %v4949_v54, 4 }
 0x21e   : > { %7551 = vmatmul.mubr.msk.bf16.gmra.mrb[36].mxu0 %vm1880_vm7, %v8102_v33  ;;  %v4768_v33 = vld [vmem:[#allocation2 + $0x48] sm:$0xf] }
 0x21f   : > { %7653 = vmatmul.mubr.msk.bf16.gmra.mrb[20].mxu1 %vm1880_vm7, %v8099_v29  ;;  %7554 = vmatprep.mubr.msk.bf16.mxu0 %vm1880_vm7, %v8104_v38  ;;  %v4872_v29 = vshll.u32 %v9382_v18, 16  ;;  %v4877_v38 = vshrl.u32 %v4765_v24, 16  ;;  %v4901_v25 = vshrl.u32 %v4768_v33, 16  ;;  %v4904_v15 = vshll.u32 %v4768_v33, 16 }
 0x220   : > { %7656 = vmatprep.mubr.msk.bf16.mxu1 %vm1880_vm7, %v8101_v46  ;;  %v4859_v46 = vor.u32 %v4858_v59, %v4855_v28 }
 0x221   : > { %v9416_v1 = vrot.slane %v4872_v29, 5  ;;  %v4879_v43 = vrot.slane %v4877_v38, 4  ;;  %v4903_v20 = vrot.slane %v4901_v25, 4  ;;  %v4906_v37 = vrot.slane %v4904_v15, 5  ;;  %v9451_v38 = vld [vmem:[#allocation2 + $0x70] sm:$0xf] }
 0x222   : > { %v4894_v29 = vrot.slane %v4893_v34, 4  ;;  %v4964_v25 = vrot.slane %v4962_v26, 4  ;;  %v9462_v34 = vld [vmem:[#allocation2 + $0x68] sm:$0x1] }
 0x223   : > { %v4883_v41 = vor.u32 %v4882_v63, %v4879_v43  ;;  %v4907_v61 = vor.u32 %v4906_v37, %v4903_v20 }
 0x225   : > { %v4908_v51 = vrot.slane %v4907_v61, 4 }
 0x226   : > { %7555 = vmatmul.mubr.msk.bf16.gmra.mrb[40].mxu0 %vm1880_vm7, %v8106_v19  ;;  %v4938_v19 = vshrl.u32 %v9405_v57, 16 }
 0x227   : > { %7657 = vmatmul.mubr.msk.bf16.gmra.mrb[24].mxu1 %vm1880_vm7, %v8103_v49  ;;  %7558 = vmatprep.mubr.msk.bf16.mxu0 %vm1880_vm7, %v8108_v2  ;;  %v4934_v49 = vshll.u32 %v9405_v57, 16  ;;  %v9422_v2 = vrot.slane %v4859_v46, 4  ;;  %v4927_v46 = vrot.slane %v4925_v39, 4 }
 0x228   : > { %7660 = vmatprep.mubr.msk.bf16.mxu1 %vm1880_vm7, %v8105_v6  ;;  %v4851_v6 = vsel %vm8368_vm6, %v4846_v32, %v4850_v27  ;;  %v4940_v59 = vrot.slane %v4938_v19, 4  ;;  %v4777_v32 = vld [vmem:[#allocation2 + $0x6c] sm:$0xf]  ;;  %v9454_v27 = vrot.slane %v4958_v10, 5  ;;  %v4944_v19 = vshll.u32 %v9448_v55, 16 }
 0x229   : > { %v9435_v28 = vrot.slane %v4934_v49, 5  ;;  %v9438_v5 = vcombine.low %v4841_v16, %v4851_v6  ;;  %v4865_v24 = vsel %vm8368_vm6, %v9422_v2, %v9401_v40  ;;  %v4973_v15 = vshrl.u32 %v4777_v32, 16 }
 0x22a   : > { %v4976_v16 = vshll.u32 %v4777_v32, 16  ;;  %v4918_v49 = vrot.slane %v4917_v48, 4  ;;  %v4986_v6 = vshrl.u32 %v9451_v38, 16  ;;  %v4931_v63 = vor.u32 %v4930_v30, %v4927_v46 }
 0x22b   : > { %v4941_v14 = vor.u32 %v4940_v59, %v9435_v28  ;;  %v4975_v54 = vrot.slane %v4973_v15, 4  ;;  %v4946_v26 = vrot.slane %v4944_v19, 5  ;;  %v4968_v32 = vshll.u32 %v9462_v34, 16 }
 0x22c   : > { %v4932_v48 = vrot.slane %v4931_v63, 4  ;;  %v5010_v46 = vshrl.u32 %v9465_v3, 16  ;;  %v4913_v30 = vsel %vm8368_vm6, %v4908_v51, %v9426_v4 }
 0x22d   : > { %v4942_v37 = vrot.slane %v4941_v14, 4 }
 0x22e   : > { %7559 = vmatmul.mubr.msk.bf16.gmra.mrb[44].mxu0 %vm1880_vm7, %v8110_v50  ;;  %v9433_v50 = vld [vmem:[#allocation2 + $0x50] sm:$0x1]  ;;  %v9515_v40 = vrot.slane %v5010_v46, 4 }
 0x22f   : > { %7661 = vmatmul.mubr.msk.bf16.gmra.mrb[28].mxu1 %vm1880_vm7, %v8107_v21  ;;  %v4952_v21 = vshll.u32 %v4774_v23, 16  ;;  %v4920_v33 = vshll.u32 %v9433_v50, 16  ;;  %v4884_v23 = vrot.slane %v4883_v41, 4  ;;  %v4988_v41 = vrot.slane %v4986_v6, 4  ;;  %v8116_v6 = vld [vmem:[#allocation2 + $0xc0] sm:$0xff]  }
 0x230   : > { %7664 = vmatprep.mubr.msk.bf16.mxu1 %vm1880_vm7, %v8109_v31  ;;  %v4870_v31 = vrot.slane %v4869_v62, 4  ;;  %v8114_v62 = vld [vmem:[#allocation2 + $0xa8] sm:$0xff]   ;;  %v4947_v61 = vsel %vm8368_vm6, %v4942_v37, %v4946_v26 }
 0x231   : > { %v4954_v53 = vrot.slane %v4952_v21, 5  ;;  %v4922_v20 = vrot.slane %v4920_v33, 5  ;;  %v4978_v21 = vrot.slane %v4976_v16, 5  ;;  %v5006_v33 = vshll.u32 %v9465_v3, 16 }
 0x232   : > { %v4875_v43 = vsel %vm8368_vm6, %v4870_v31, %v9416_v1  ;;  %v4965_v1 = vor.u32 %v4964_v25, %v9454_v27 }
 0x233   : > { %v4955_v39 = vor.u32 %v4954_v53, %v4951_v47  ;;  %v4923_v10 = vsel %vm8368_vm6, %v4918_v49, %v4922_v20  ;;  %v9488_v47 = vld [vmem:[#allocation2 + $0x74] sm:$0x1]  ;;  %v4979_v25 = vor.u32 %v4978_v21, %v4975_v54  ;;  %v9513_v63 = vrot.slane %v5006_v33, 5  ;;  %v5484_v20 = vld [vmem:[#allocation2 + $0x30] sm:$0xe] }
 0x234   : > { %v9490_v53 = vrot.slane %v4965_v1, 4  ;;  %v8115_v49 = vld [vmem:[#allocation2 + $0xb4] sm:$0xff]   ;;  %v9503_v19 = vcombine.low %v4913_v30, %v4923_v10  ;;  %v5486_v30 = vld [vmem:[#allocation2 + $0x48] sm:$0xe]  ;;  %v5576_v10 = vrot.slane %v9395_v12, 5 }
 0x235   : > { %v9486_v14 = vrot.slane %v4955_v39, 4  ;;  %v9533_v39 = vrot.slane %v4979_v25, 4  ;;  %v9539_v54 = vld [vmem:[#allocation2 + $0x94] sm:$0xf]  ;;  %v9624_v25 = vld [vmem:[#allocation2 + $0xa0] sm:$0xf] }
 0x236   : > { %v5578_v12 = vrot.slane %v5576_v10, 4  ;;  %v9672_v33 = vld [vmem:[#allocation2 + $0xc4] sm:$0xf] }
 0x237   : > { %7665 = vmatmul.mubr.msk.bf16.gmra.mrb[0].mxu1 %vm1880_vm7, %v8111_v17  ;;  %v4898_v17 = vrot.slane %v4896_v0, 5  ;;  %v4780_v0 = vld [vmem:[#allocation2 + $0x78] sm:$0xf] }
 0x238   : > { %7668 = vmatprep.mubr.msk.bf16.mxu1 %vm1880_vm7, %v8112_v9  ;;  %v4982_v9 = vshll.u32 %v9451_v38, 16  ;;  %v4997_v15 = vshrl.u32 %v4780_v0, 16  ;;  %v5000_v16 = vshll.u32 %v4780_v0, 16  ;;  %v5485_v0 = vld [vmem:[#allocation2 + $0x3c] sm:$0xe] }
 0x239   : > { %v4899_v59 = vsel %vm8368_vm6, %v4894_v29, %v4898_v17  ;;  %v4889_v29 = vsel %vm8368_vm6, %v4884_v23, %v9407_v8  ;;  %v9499_v8 = vcombine.low %v4865_v24, %v4875_v43  ;;  %v9509_v23 = vrot.slane %v4968_v32, 5  ;;  %v9511_v17 = vld [vmem:[#allocation2 + $0x80] sm:$0x1]  ;;  %v9626_v43 = vld [vmem:[#allocation2 + $0xac] sm:$0xf] }
 0x23a   : > { %v9473_v31 = vrot.slane %v4982_v9, 5  ;;  %v9501_v4 = vcombine.low %v4889_v29, %v4899_v59  ;;  %v9535_v59 = vrot.slane %v4997_v15, 4  ;;  %v9537_v1 = vrot.slane %v5000_v16, 5 }
 0x23b   : > { %v7054_v29 = vrot.slane %v5484_v20, 9  ;;  %v5565_v16 = vrot.slane %v9382_v18, 5  ;;  %v5579_v32 = vrot.slane %v9433_v50, 5  ;;  %v5488_v18 = vld [vmem:[#allocation2 + $0x60] sm:$0xe]  ;;  %v5586_v50 = vrot.slane %v9448_v55, 5 }
 0x23c   : > { %v4989_v9 = vor.u32 %v4988_v41, %v9473_v31  ;;  %v5562_v41 = vrot.slane %v9373_v58, 5 }
 0x23e   : > { %v9541_v21 = vrot.slane %v4989_v9, 4  ;;  %v5564_v15 = vrot.slane %v5562_v41, 4  ;;  %v9556_v58 = vsel %vm9096_vm0, %v7054_v29, %v5562_v41  ;;  %v7055_v9 = vrot.slane %v5485_v0, 9 }
 0x23f   : > { %7669 = vmatmul.mubr.msk.bf16.gmra.mrb[4].mxu1 %vm1880_vm7, %v8113_v60  ;;  %v9492_v60 = vld [vmem:[#allocation2 + $0x84] sm:$0xf]  ;;  %v5583_v0 = vrot.slane %v9405_v57, 5 }
 0x240   : > { %7672 = vmatprep.mubr.msk.bf16.mxu1 %vm1880_vm7, %v8114_v62  ;;  %v4937_v62 = vsel %vm8368_vm6, %v4932_v48, %v9435_v28  ;;  %v9525_v28 = vld [vmem:[#allocation2 + $0x88] sm:$0xf]  ;;  %v5021_v51 = vshrl.u32 %v9492_v60, 16  ;;  %v8117_v48 = vld [vmem:[#allocation2 + $0xcc] sm:$0xff]   ;;  %v9562_v20 = vsel %vm9096_vm0, %v5564_v15, %v5565_v16  ;;  %v7058_v15 = vrot.slane %v5488_v18, 9 }
 0x241   : > { %v9518_v2 = vcombine.low %v4937_v62, %v4947_v61  ;;  %v5572_v62 = vrot.slane %v9430_v11, 5  ;;  %v5590_v16 = vrot.slane %v9428_v56, 5  ;;  %v5491_v18 = vld [vmem:[#allocation2 + $0x84] sm:$0xe] }
 0x242   : > { %v9550_v61 = vrot.slane %v5021_v51, 4  ;;  %v7056_v51 = vrot.slane %v5486_v30, 9  ;;  %v5489_v30 = vld [vmem:[#allocation2 + $0x6c] sm:$0xe] }
 0x244   : > { %v9576_v11 = vsel %vm9096_vm0, %v7056_v51, %v5576_v10  ;;  %v9590_v10 = vsel %vm9096_vm0, %v5578_v12, %v5579_v32  ;;  %v7059_v51 = vrot.slane %v5489_v30, 9  ;;  %v5604_v30 = vrot.slane %v9465_v3, 5 }
 0x245   : > { %v7061_v32 = vrot.slane %v5491_v18, 9  ;;  %v9639_v18 = vld [vmem:[#allocation2 + $0xa4] sm:$0x1]  ;;  %v10345_v52 = vcombine.low %v9576_v11, %v9590_v10 }
 0x247   : > { %7673 = vmatmul.mubr.msk.bf16.gmra.mrb[8].mxu1 %vm1880_vm7, %v8115_v49  ;;  %v5487_v49 = vld [vmem:[#allocation2 + $0x54] sm:$0xe] }
 0x248   : > { %7676 = vmatprep.mubr.msk.bf16.mxu1 %vm1880_vm7, %v8116_v6  ;;  %v5569_v6 = vrot.slane %v9376_v36, 5  ;;  %v7057_v29 = vrot.slane %v5487_v49, 9  ;;  %v9619_v49 = vld [vmem:[#allocation2 + $0x98] sm:$0x1] }
 0x24a   : > { %v5571_v41 = vrot.slane %v5569_v6, 4  ;;  %v9572_v36 = vsel %vm9096_vm0, %v7055_v9, %v5569_v6  ;;  %v9594_v55 = vsel %vm9096_vm0, %v7057_v29, %v5583_v0  ;;  %v5490_v9 = vld [vmem:[#allocation2 + $0x78] sm:$0xe]  ;;  %v9609_v29 = vsel %vm9096_vm0, %v7058_v15, %v5590_v16  ;;  %v5492_v6 = vld [vmem:[#allocation2 + $0x90] sm:$0xe] }
 0x24b   : > { %v5493_v15 = vld [vmem:[#allocation2 + $0x9c] sm:$0xe] }
 0x24c   : > { %v9583_v57 = vsel %vm9096_vm0, %v5571_v41, %v5572_v62  ;;  %v5592_v62 = vrot.slane %v5590_v16, 4  ;;  %v9603_v41 = vld [vmem:[#allocation2 + $0x8c] sm:$0x1]  ;;  %v7063_v46 = vrot.slane %v5493_v15, 9 }
 0x24f   : > { %7677 = vmatmul.mubr.msk.bf16.gmra.mrb[12].mxu1 %vm1880_vm7, %v8117_v48  ;;  %v5585_v48 = vrot.slane %v5583_v0, 4  ;;  %v5600_v0 = vrot.slane %v9488_v47, 5 }
 0x250   : > { %7682 = vmatprep.mubr.msk.bf16.mxu1 %vm1880_vm7, %v9411_v22  ;;  %v5593_v22 = vrot.slane %v9462_v34, 5  ;;  %v5597_v34 = vrot.slane %v9451_v38, 5  ;;  %v5611_v38 = vrot.slane %v9525_v28, 5 }
 0x251   : > { %v9601_v56 = vsel %vm9096_vm0, %v5585_v48, %v5586_v50  ;;  %v7060_v50 = vrot.slane %v5490_v9, 9  ;;  %v5607_v48 = vrot.slane %v9511_v17, 5  ;;  %v5606_v9 = vrot.slane %v5604_v30, 4 }
 0x252   : > { %v9615_v12 = vsel %vm9096_vm0, %v5592_v62, %v5593_v22  ;;  %v5599_v16 = vrot.slane %v5597_v34, 4  ;;  %v9630_v22 = vsel %vm9096_vm0, %v7059_v51, %v5597_v34  ;;  %v5614_v62 = vrot.slane %v9603_v41, 5 }
 0x253   : > { %10319 = vst [vmem:[#allocation3_spill] sm:$0xff] %v9615_v12  ;;  %10320 = vst [vmem:[#allocation6_spill] sm:$0xff] %v9630_v22  ;;  %v9634_v3 = vsel %vm9096_vm0, %v7060_v50, %v5604_v30  ;;  %v5613_v37 = vrot.slane %v5611_v38, 4  ;;  %v7062_v51 = vrot.slane %v5492_v6, 9  ;;  %v5618_v34 = vrot.slane %v9539_v54, 5 }
 0x254   : > { %10321 = vst [vmem:[#allocation4_spill] sm:$0xff] %v9634_v3  ;;  %v9643_v24 = vsel %vm9096_vm0, %v5599_v16, %v5600_v0  ;;  %v9649_v50 = vld [vmem:[#allocation2 + $0xb0] sm:$0x1]  ;;  %v9655_v30 = vsel %vm9096_vm0, %v5606_v9, %v5607_v48  ;;  %v9659_v0 = vsel %vm9096_vm0, %v7061_v32, %v5611_v38  ;;  %v5621_v6 = vrot.slane %v9619_v49, 5  ;;  %v5494_v16 = vld [vmem:[#allocation2 + $0xa8] sm:$0xe] }
 0x255   : > { %10322 = vst [vmem:[#allocation5_spill] sm:$0xff] %v9643_v24  ;;  %10323 = vst [vmem:[#allocation8_spill] sm:$0xff] %v9655_v30  ;;  %v9668_v26 = vsel %vm9096_vm0, %v5613_v37, %v5614_v62  ;;  %v5495_v48 = vld [vmem:[#allocation2 + $0xb4] sm:$0xe]  ;;  %v9670_v9 = vld [vmem:[#allocation2 + $0xbc] sm:$0x1]  ;;  %v9678_v38 = vsel %vm9096_vm0, %v7062_v51, %v5618_v34  ;;  %v10346_v13 = vcombine.low %v9594_v55, %v9601_v56 }
 0x256   : > { %10324 = vst [vmem:[#allocation7_spill] sm:$0xff] %v9659_v0  ;;  %10325 = vst [vmem:[#allocation9_spill] sm:$0xff] %v9668_v26  ;;  %v5628_v30 = vrot.slane %v9639_v18, 5  ;;  %v7064_v15 = vrot.slane %v5494_v16, 9  ;;  %v5632_v62 = vrot.slane %v9626_v43, 5  ;;  %v5635_v3 = vrot.slane %v9649_v50, 5 }
 0x257   : > { %7683 = vmatmul.mubr.msk.bf16.vlgmr.msra.gmra.mrb[16].mxu1 %vm1880_vm7, %v9438_v5  ;;  %v5620_v5 = vrot.slane %v5618_v34, 4  ;;  %10326 = vst [vmem:[#allocation10_spill] sm:$0xff] %v9678_v38  ;;  %v5496_v24 = vld [vmem:[#allocation2 + $0xc0] sm:$0xe]  ;;  %v7065_v51 = vrot.slane %v5495_v48, 9  ;;  %v5642_v12 = vrot.slane %v9670_v9, 5 }
 0x258   : > { %7715 = vmatpush3.bf16.msra.mxu1 %v9393_v44  ;;  %7686 = vmatprep.mubr.msk.bf16.mxu1 %vm1880_vm7, %v9499_v8  ;;  %v9662_v44 = vld [vmem:[#allocation2 + $0xb8] sm:$0xf]  ;;  %v5625_v8 = vrot.slane %v9624_v25, 5  ;;  %v5497_v0 = vld [vmem:[#allocation2 + $0xcc] sm:$0xe]  ;;  %v5634_v16 = vrot.slane %v5632_v62, 4 }
 0x259   : > { %v9684_v37 = vsel %vm9096_vm0, %v5620_v5, %v5621_v6  ;;  %v5639_v34 = vrot.slane %v9662_v44, 5  ;;  %v9691_v22 = vld [vmem:[#allocation2 + $0xc8] sm:$0x1]  ;;  %v9699_v6 = vsel %vm9096_vm0, %v7064_v15, %v5632_v62  ;;  %v5646_v38 = vrot.slane %v9672_v33, 5 }
 0x25a   : > { %10327 = vst [vmem:[#allocation11_spill] sm:$0xff] %v9684_v37  ;;  %v5627_v26 = vrot.slane %v5625_v8, 4  ;;  %v9695_v5 = vsel %vm9096_vm0, %v7063_v46, %v5625_v8  ;;  %10328 = vst [vmem:[#allocation12_spill] sm:$0xff] %v9699_v6  ;;  %v7066_v37 = vrot.slane %v5496_v24, 9  ;;  %v9713_v8 = vsel %vm9096_vm0, %v5634_v16, %v5635_v3  ;;  %v9721_v24 = vld [vmem:[#allocation2 + $0xd0] sm:$0xf] }
 0x25b   : > { %v5641_v48 = vrot.slane %v5639_v34, 4  ;;  %10330 = vst [vmem:[#allocation14_spill] sm:$0xff] %v9713_v8  ;;  %v9717_v15 = vsel %vm9096_vm0, %v7065_v51, %v5639_v34  ;;  %v5648_v3 = vrot.slane %v5646_v38, 4  ;;  %v5649_v16 = vrot.slane %v9691_v22, 5  ;;  %v4786_v51 = vld [vmem:[#allocation2 + $0x90] sm:$0xf] }
 0x25c   : > { %v9704_v32 = vsel %vm9096_vm0, %v5627_v26, %v5628_v30  ;;  %10331 = vst [vmem:[#allocation15_spill] sm:$0xff] %v9717_v15  ;;  %v7067_v26 = vrot.slane %v5497_v0, 9  ;;  %v9723_v30 = vld [vmem:[#allocation2 + $0xd4] sm:$0x1]  ;;  %v5058_v0 = vshrl.u32 %v9539_v54, 16  ;;  %v5653_v34 = vrot.slane %v9721_v24, 5 }
 0x25d   : > { %10329 = vst [vmem:[#allocation13_spill] sm:$0xff] %v9704_v32  ;;  %v9729_v62 = vsel %vm9096_vm0, %v5641_v48, %v5642_v12  ;;  %v5656_v46 = vrot.slane %v9723_v30, 5  ;;  %v10333_v32 = vshll.u32 %v9525_v28, 16  ;;  %v10334_v12 = vshrl.u32 %v9525_v28, 16  ;;  %v10355_v10 = vld [vmem:[#allocation7_spill] sm:$0xff] }
 0x25e   : > { %10332 = vst [vmem:[#allocation16_spill] sm:$0xff] %v9729_v62  ;;  %v9745_v8 = vsel %vm9096_vm0, %v7066_v37, %v5646_v38  ;;  %v9749_v6 = vsel %vm9096_vm0, %v5648_v3, %v5649_v16  ;;  %v5655_v28 = vrot.slane %v5653_v34, 4  ;;  %v10337_v38 = vsel %vm8368_vm6, %v9490_v53, %v9509_v23  ;;  %v4789_v53 = vld [vmem:[#allocation2 + $0x9c] sm:$0xf]  ;;  %v10358_v56 = vld [vmem:[#allocation10_spill] sm:$0xff] }
 0x25f   : > { %7687 = vmatmul.mubr.msk.bf16.gmra.mrb[20].mxu1 %vm1880_vm7, %v9501_v4  ;;  %v9739_v4 = vrot.slane %v10333_v32, 5  ;;  %v5036_v48 = vrot.slane %v10334_v12, 4  ;;  %10335 = vst [vmem:[#allocation17_spill] sm:$0xff] %v9749_v6  ;;  %v9757_v32 = vsel %vm9096_vm0, %v7067_v26, %v5653_v34  ;;  %v10338_v37 = vsel %vm8368_vm6, %v9486_v14, %v9454_v27 }
 0x260   : > { %7690 = vmatprep.mubr.msk.bf16.mxu1 %vm1880_vm7, %v9503_v19  ;;  %v10336_v19 = vshll.u32 %v9492_v60, 16  ;;  %v7026_v60 = vcombine.low %v10338_v37, %v10337_v38  ;;  %v10339_v3 = vshll.u32 %v9488_v47, 16  ;;  %v5048_v12 = vshll.u32 %v4786_v51, 16 }
 0x261   : > { %v5003_v26 = vor.u32 %v9537_v1, %v9535_v59  ;;  %v10340_v34 = vshll.u32 %v9539_v54, 16  ;;  %v5060_v6 = vrot.slane %v5058_v0, 4  ;;  %v9779_v23 = vsel %vm9096_vm0, %v5655_v28, %v5656_v46 }
 0x262   : > { %v5026_v62 = vrot.slane %v10336_v19, 5  ;;  %v4994_v16 = vrot.slane %v10339_v3, 5  ;;  %v5045_v19 = vshrl.u32 %v4786_v51, 16  ;;  %v10341_v14 = vor.u32 %v9515_v40, %v9513_v63 }
 0x263   : > { %v9775_v15 = vrot.slane %v10340_v34, 5  ;;  %v5037_v59 = vor.u32 %v5036_v48, %v9739_v4  ;;  %v7084_v1 = vcombine.low %v9757_v32, %v9779_v23  ;;  %v4985_v54 = vsel %vm8368_vm6, %v9533_v39, %v9473_v31 }
 0x264   : > { %v4995_v27 = vsel %vm8368_vm6, %v9541_v21, %v4994_v16  ;;  %v5014_v47 = vrot.slane %v10341_v14, 4  ;;  %v10342_v46 = vshll.u32 %v9511_v17, 16  ;;  %v5027_v51 = vor.u32 %v5026_v62, %v9550_v61  ;;  %v4792_v62 = vld [vmem:[#allocation2 + $0xa8] sm:$0xf] }
 0x265   : > { %v5040_v40 = vshll.u32 %v9603_v41, 16  ;;  %v5047_v0 = vrot.slane %v5045_v19, 4  ;;  %v5050_v48 = vrot.slane %v5048_v12, 5  ;;  %v5069_v28 = vshrl.u32 %v4789_v53, 16 }
 0x266   : > { %v5018_v21 = vrot.slane %v10342_v46, 5  ;;  %v5072_v38 = vshll.u32 %v4789_v53, 16  ;;  %v7027_v37 = vcombine.low %v4985_v54, %v4995_v27  ;;  %v5061_v3 = vor.u32 %v5060_v6, %v9775_v15 }
 0x267   : > { %7691 = vmatmul.mubr.msk.bf16.gmra.mrb[24].mxu1 %vm1880_vm7, %v9518_v2  ;;  %v5004_v2 = vrot.slane %v5003_v26, 4  ;;  %v5038_v39 = vrot.slane %v5037_v59, 4  ;;  %v5078_v17 = vshll.u32 %v9624_v25, 16  ;;  %v5082_v61 = vshrl.u32 %v9624_v25, 16 }
 0x268   : > { %7694 = vmatprep.mubr.msk.bf16.mxu1 %vm1880_vm7, %v7026_v60  ;;  %v5019_v31 = vsel %vm8368_vm6, %v5014_v47, %v5018_v21  ;;  %v5042_v41 = vrot.slane %v5040_v40, 5  ;;  %v5064_v60 = vshll.u32 %v9619_v49, 16  ;;  %v5102_v16 = vshll.u32 %v9626_v43, 16 }
 0x269   : > { %v5106_v19 = vshrl.u32 %v9626_v43, 16  ;;  %v5028_v12 = vrot.slane %v5027_v51, 4  ;;  %v5051_v26 = vor.u32 %v5050_v48, %v5047_v0  ;;  %v5071_v34 = vrot.slane %v5069_v28, 4  ;;  %v4795_v51 = vld [vmem:[#allocation2 + $0xb4] sm:$0xf] }
 0x26a   : > { %v5074_v6 = vrot.slane %v5072_v38, 5  ;;  %v5009_v53 = vsel %vm8368_vm6, %v5004_v2, %v9513_v63  ;;  %v5062_v27 = vrot.slane %v5061_v3, 4  ;;  %v5093_v14 = vshrl.u32 %v4792_v62, 16 }
 0x26b   : > { %v5096_v47 = vshll.u32 %v4792_v62, 16  ;;  %v7028_v25 = vcombine.low %v5009_v53, %v5019_v31  ;;  %v5043_v59 = vsel %vm8368_vm6, %v5038_v39, %v5042_v41  ;;  %v9814_v49 = vrot.slane %v5078_v17, 5  ;;  %v4801_v53 = vld [vmem:[#allocation2 + $0xcc] sm:$0xf] }
 0x26c   : > { %v5084_v54 = vrot.slane %v5082_v61, 4  ;;  %v5066_v43 = vrot.slane %v5064_v60, 5  ;;  %v9817_v46 = vrot.slane %v5102_v16, 5  ;;  %v5108_v21 = vrot.slane %v5106_v19, 4  ;;  %v4798_v61 = vld [vmem:[#allocation2 + $0xc0] sm:$0xf] }
 0x26d   : > { %v5033_v63 = vsel %vm8368_vm6, %v5028_v12, %v9739_v4  ;;  %v5052_v40 = vrot.slane %v5051_v26, 4  ;;  %v5075_v0 = vor.u32 %v5074_v6, %v5071_v34  ;;  %v5088_v48 = vshll.u32 %v9639_v18, 16 }
 0x26e   : > { %v7029_v28 = vcombine.low %v5033_v63, %v5043_v59  ;;  %v5067_v38 = vsel %vm8368_vm6, %v5062_v27, %v5066_v43  ;;  %v5098_v2 = vrot.slane %v5096_v47, 5  ;;  %v5085_v3 = vor.u32 %v5084_v54, %v9814_v49 }
 0x26f   : > { %7695 = vmatmul.mubr.msk.bf16.gmra.mrb[28].mxu1 %vm1880_vm7, %v7027_v37  ;;  %v5095_v37 = vrot.slane %v5093_v14, 4  ;;  %v5117_v31 = vshrl.u32 %v4795_v51, 16  ;;  %v5126_v39 = vshll.u32 %v9662_v44, 16  ;;  %v5130_v17 = vshrl.u32 %v9662_v44, 16 }
 0x270   : > { %7698 = vmatprep.mubr.msk.bf16.mxu1 %vm1880_vm7, %v7028_v25  ;;  %v5109_v4 = vor.u32 %v5108_v21, %v9817_v46  ;;  %v5120_v62 = vshll.u32 %v4795_v51, 16  ;;  %v5150_v41 = vshll.u32 %v9672_v33, 16  ;;  %v5154_v18 = vshrl.u32 %v9672_v33, 16 }
 0x271   : > { %v5057_v60 = vsel %vm8368_vm6, %v5052_v40, %v9775_v15  ;;  %v5076_v16 = vrot.slane %v5075_v0, 4  ;;  %v5090_v19 = vrot.slane %v5088_v48, 5  ;;  %v5112_v12 = vshll.u32 %v9649_v50, 16 }
 0x272   : > { %v7030_v26 = vcombine.low %v5057_v60, %v5067_v38  ;;  %v5099_v34 = vor.u32 %v5098_v2, %v5095_v37  ;;  %v5141_v6 = vshrl.u32 %v4798_v61, 16  ;;  %v5144_v44 = vshll.u32 %v4798_v61, 16 }
 0x273   : > { %v5086_v27 = vrot.slane %v5085_v3, 4  ;;  %v5119_v14 = vrot.slane %v5117_v31, 4  ;;  %v5128_v47 = vrot.slane %v5126_v39, 5  ;;  %v5132_v25 = vrot.slane %v5130_v17, 4 }
 0x274   : > { %v5110_v33 = vrot.slane %v5109_v4, 4  ;;  %v5122_v59 = vrot.slane %v5120_v62, 5  ;;  %v5152_v54 = vrot.slane %v5150_v41, 5  ;;  %v5156_v43 = vrot.slane %v5154_v18, 4 }
 0x275   : > { %v5165_v15 = vshrl.u32 %v4801_v53, 16  ;;  %v5168_v21 = vshll.u32 %v4801_v53, 16  ;;  %v5174_v50 = vshll.u32 %v9721_v24, 16  ;;  %v5178_v51 = vshrl.u32 %v9721_v24, 16 }
 0x276   : > { %v5100_v63 = vrot.slane %v5099_v34, 4  ;;  %v5114_v40 = vrot.slane %v5112_v12, 5  ;;  %v5143_v0 = vrot.slane %v5141_v6, 4  ;;  %v5146_v48 = vrot.slane %v5144_v44, 5 }
 0x277   : > { %7699 = vmatmul.mubr.msk.bf16.gmra.mrb[0].mxu1 %vm1880_vm7, %v7029_v28  ;;  %v5081_v28 = vsel %vm8368_vm6, %v5076_v16, %v9814_v49  ;;  %v5091_v38 = vsel %vm8368_vm6, %v5086_v27, %v5090_v19  ;;  %v5133_v37 = vor.u32 %v5132_v25, %v5128_v47  ;;  %v5123_v3 = vor.u32 %v5122_v59, %v5119_v14 }
 0x278   : > { %7702 = vmatprep.mubr.msk.bf16.mxu1 %vm1880_vm7, %v7030_v26  ;;  %v5115_v2 = vsel %vm8368_vm6, %v5110_v33, %v5114_v40  ;;  %v5136_v31 = vshll.u32 %v9670_v9, 16  ;;  %v5157_v39 = vor.u32 %v5156_v43, %v5152_v54  ;;  %v5167_v24 = vrot.slane %v5165_v15, 4  ;;  %v6078_v15 = vld [vmem:[%s10266_s7] sm:$0x3] }
 0x279   : > { %v5170_v17 = vrot.slane %v5168_v21, 5  ;;  %v5176_v61 = vrot.slane %v5174_v50, 5  ;;  %v5180_v4 = vrot.slane %v5178_v51, 4  ;;  %v7031_v62 = vcombine.low %v5081_v28, %v5091_v38  ;;  %8050 = vmatprep.subr.msk.bf16.mxu0 %vm1929_vm5, %v6078_v15  ;;  %v5482_v51 = vld [vmem:[#allocation2 + $0x18] sm:$0xe] }
 0x27a   : > { %v5105_v49 = vsel %vm8368_vm6, %v5100_v63, %v9817_v46  ;;  %v5147_v41 = vor.u32 %v5146_v48, %v5143_v0  ;;  %v5160_v18 = vshll.u32 %v9691_v22, 16  ;;  %v5134_v16 = vrot.slane %v5133_v37, 4 }
 0x27b   : > { %v7032_v60 = vcombine.low %v5105_v49, %v5115_v2  ;;  %v5138_v19 = vrot.slane %v5136_v31, 5  ;;  %v5158_v12 = vrot.slane %v5157_v39, 4  ;;  %v5124_v9 = vrot.slane %v5123_v3, 4  ;;  %v5483_v3 = vld [vmem:[#allocation2 + $0x24] sm:$0xe]  ;;  %v10356_v49 = vld [vmem:[#allocation9_spill] sm:$0xff] }
 0x27c   : > { %v5171_v26 = vor.u32 %v5170_v17, %v5167_v24  ;;  %v5181_v34 = vor.u32 %v5180_v4, %v5176_v61  ;;  %v5184_v6 = vshll.u32 %v9723_v30, 16  ;;  %v5148_v44 = vrot.slane %v5147_v41, 4  ;;  %v10350_v4 = vld [vmem:[#allocation5_spill] sm:$0xff]  ;;  %v10359_v41 = vld [vmem:[#allocation11_spill] sm:$0xff] }
 0x27d   : > { %v5162_v53 = vrot.slane %v5160_v18, 5  ;;  %v5139_v46 = vsel %vm8368_vm6, %v5134_v16, %v5138_v19  ;;  %v5548_v27 = vrot.slane %v9350_v42, 5  ;;  %v5129_v14 = vsel %vm8368_vm6, %v5124_v9, %v5128_v47  ;;  %v10361_v18 = vld [vmem:[#allocation13_spill] sm:$0xff]  ;;  %v10363_v16 = vld [vmem:[#allocation12_spill] sm:$0xff]  ;;  %v10364_v19 = vld [vmem:[#allocation14_spill] sm:$0xff] }
 0x27e   : > { %v5172_v25 = vrot.slane %v5171_v26, 4  ;;  %v5182_v33 = vrot.slane %v5181_v34, 4  ;;  %v5186_v59 = vrot.slane %v5184_v6, 5  ;;  %v7033_v43 = vcombine.low %v5129_v14, %v5139_v46  ;;  %v10366_v9 = vld [vmem:[#allocation15_spill] sm:$0xff]  ;;  %v10367_v26 = vld [vmem:[#allocation16_spill] sm:$0xff]  ;;  %v10369_v6 = vld [vmem:[#allocation17_spill] sm:$0xff] }
 0x27f   : > { %7703 = vmatmul.mubr.msk.bf16.gmra.mrb[4].mxu1 %vm1880_vm7, %v7031_v62  ;;  %v5163_v22 = vsel %vm8368_vm6, %v5158_v12, %v5162_v53  ;;  %v5153_v30 = vsel %vm8368_vm6, %v5148_v44, %v5152_v54  ;;  %v6128_v50 = vsel %vm1929_vm5, %v6078_v15, 0  ;;  %v5550_v42 = vrot.slane %v5548_v27, 4  ;;  %v10353_v62 = vld [vmem:[#allocation8_spill] sm:$0xff] }
 0x280   : > { %7706 = vmatprep.mubr.msk.bf16.mxu1 %vm1880_vm7, %v7032_v60  ;;  %v7034_v21 = vcombine.low %v5153_v30, %v5163_v22  ;;  %7749 = vmatpush3.bf16.msra.mxu0 %v6128_v50  ;;  %v5177_v47 = vsel %vm8368_vm6, %v5172_v25, %v5176_v61  ;;  %v5187_v54 = vsel %vm8368_vm6, %v5182_v33, %v5186_v59  ;;  %v5551_v63 = vrot.slane %v9364_v45, 5  ;;  %v10347_v61 = vld [vmem:[#allocation3_spill] sm:$0xff] }
 0x281   : > { %v5555_v40 = vrot.slane %v9358_v7, 5  ;;  %v7035_v0 = vcombine.low %v5177_v47, %v5187_v54  ;;  %v7052_v48 = vrot.slane %v5482_v51, 9  ;;  %v7053_v45 = vrot.slane %v5483_v3, 9 }
 0x282   : > { %v5552_v28 = vsel %vm9096_vm0, %v5550_v42, %v5551_v63  ;;  %v10343_v24 = vcombine.low %v9556_v58, %v9562_v20  ;;  %v10344_v17 = vcombine.low %v9572_v36, %v9583_v57  ;;  %v10348_v58 = vcombine.low %v9609_v29, %v10347_v61  ;;  %v10349_v20 = vld [vmem:[#allocation6_spill] sm:$0xff]  ;;  %v10352_v57 = vld [vmem:[#allocation4_spill] sm:$0xff] }
 0x283   : > { %v5549_v38 = vsel %vm9096_vm0, %v7052_v48, %v5548_v27  ;;  %v5557_v2 = vrot.slane %v5555_v40, 4  ;;  %v5556_v31 = vsel %vm9096_vm0, %v7053_v45, %v5555_v40  ;;  %v10351_v36 = vcombine.low %v10349_v20, %v10350_v4 }
 0x284   : > { %v7069_v37 = vcombine.low %v5549_v38, %v5552_v28  ;;  %v10354_v11 = vcombine.low %v10352_v57, %v10353_v62  ;;  %v10357_v55 = vcombine.low %v10355_v10, %v10356_v49  ;;  %v10360_v29 = vcombine.low %v10358_v56, %v10359_v41 }
 0x285   : > { %v5559_v7 = vsel %vm9096_vm0, %v5557_v2, %v5558_v35  ;;  %v10362_v60 = vcombine.low %v9695_v5, %v10361_v18  ;;  %v10365_v12 = vcombine.low %v10363_v16, %v10364_v19  ;;  %v10368_v34 = vcombine.low %v10366_v9, %v10367_v26 }
 0x286   : > { %v7070_v39 = vcombine.low %v5556_v31, %v5559_v7  ;;  %v10370_v44 = vcombine.low %v9745_v8, %v10369_v6  ;;  %v9988_v7 = vld [vmem:[%s10264_s5] ss:$0 sm:$0xff] }
 0x287   : > { %7707 = vmatmul.mubr.msk.bf16.gmra.mrb[8].mxu1 %vm1880_vm7, %v7033_v43 }
 0x288   : > { %7710 = vmatprep.mubr.msk.bf16.mxu1 %vm1880_vm7, %v7034_v21 }
 0x28f   : > { %7711 = vmatmul.mubr.msk.bf16.gmra.mrb[12].mxu1 %vm1880_vm7, %v7035_v0 }
 0x290   : > { %7716 = vmatprep.mubr.msk.bf16.mxu1 %vm1880_vm7, %v7069_v37 }
 0x297   : > { %7717 = vmatmul.mubr.msk.bf16.vlgmr.msra.gmra.mrb[16].mxu1 %vm1880_vm7, %v7070_v39 }
 0x298   : > { %7720 = vmatprep.mubr.msk.bf16.mxu1 %vm1880_vm7, %v10343_v24  ;;  %v9993_v24 = vld [vmem:[%s10265_s6] ss:$0 sm:$0xff] }
 0x29f   : > { %7721 = vmatmul.mubr.msk.bf16.gmra.mrb[20].mxu1 %vm1880_vm7, %v10344_v17 }
 0x2a0   : > { %7724 = vmatprep.mubr.msk.bf16.mxu1 %vm1880_vm7, %v10345_v52 }
 0x2a7   : > { %7725 = vmatmul.mubr.msk.bf16.gmra.mrb[24].mxu1 %vm1880_vm7, %v10346_v13 }
 0x2a8   : > { %7728 = vmatprep.mubr.msk.bf16.mxu1 %vm1880_vm7, %v10348_v58 }
 0x2af   : > { %7729 = vmatmul.mubr.msk.bf16.gmra.mrb[28].mxu1 %vm1880_vm7, %v10351_v36 }
 0x2b0   : > { %7732 = vmatprep.mubr.msk.bf16.mxu1 %vm1880_vm7, %v10354_v11 }
 0x2b7   : > { %7733 = vmatmul.mubr.msk.bf16.gmra.mrb[0].mxu1 %vm1880_vm7, %v10357_v55 }
 0x2b8   : > { %7736 = vmatprep.mubr.msk.bf16.mxu1 %vm1880_vm7, %v10360_v29 }
 0x2bf   : > { %7737 = vmatmul.mubr.msk.bf16.gmra.mrb[4].mxu1 %vm1880_vm7, %v10362_v60 }
 0x2c0   : > { %7740 = vmatprep.mubr.msk.bf16.mxu1 %vm1880_vm7, %v10365_v12 }
 0x2c7   : > { %7741 = vmatmul.mubr.msk.bf16.gmra.mrb[8].mxu1 %vm1880_vm7, %v10368_v34 }
 0x2c8   : > { %7744 = vmatprep.mubr.msk.bf16.mxu1 %vm1880_vm7, %v10370_v44 }
 0x2c9   : > { %v9941_v53 = vpop.f32.mrb[48].mxu0 }
 0x2ca   : > { %v9943_v5 = vpop.f32.mrb[49].mxu0 }
 0x2cb   : > { %v9945_v46 = vpop.f32.mrb[50].mxu0 }
 0x2cc   : > { %v9947_v22 = vpop.f32.mrb[51].mxu0 }
 0x2cf   : > { %7745 = vmatmul.mubr.msk.bf16.gmra.mrb[12].mxu1 %vm1880_vm7, %v7084_v1 }
 0x2d1   : > { %v9953_v27 = vpop.f32.mrb[52].mxu0 }
 0x2d2   : > { %v9955_v14 = vpop.f32.mrb[53].mxu0 }
 0x2d3   : > { %v9957_v8 = vpop.f32.mrb[54].mxu0 }
 0x2d4   : > { %v9959_v25 = vpop.f32.mrb[55].mxu0 }
 0x2d9   : > { %v9961_v33 = vpop.f32.mrb[56].mxu0 }
 0x2da   : > { %v9963_v59 = vpop.f32.mrb[57].mxu0 }
 0x2db   : > { %v9965_v43 = vpop.f32.mrb[58].mxu0 }
 0x2dc   : > { %v9967_v30 = vpop.f32.mrb[59].mxu0 }
 0x2e1   : > { %v9969_v15 = vpop.f32.mrb[60].mxu0 }
 0x2e2   : > { %v9971_v32 = vpop.f32.mrb[61].mxu0 }
 0x2e3   : > { %v9973_v23 = vpop.f32.mrb[62].mxu0 }
 0x2e4   : > { %v9975_v1 = vpop.f32.mrb[63].mxu0 }
 0x2e9   : > { %v7548_v21 = vpop.f32.mrb[32].mxu0 }
 0x2ea   : > { %v3042_v50 = vpop.f32.mrb[33].mxu0 }
 0x2eb   : > { %v7549_v42 = vpop.f32.mrb[34].mxu0 }
 0x2ec   : > { %v3045_v47 = vpop.f32.mrb[35].mxu0 }
 0x2f1   : > { %v7552_v54 = vpop.f32.mrb[36].mxu0 }
 0x2f2   : > { %v3058_v51 = vpop.f32.mrb[37].mxu0 }
 0x2f3   : > { %v7553_v63 = vpop.f32.mrb[38].mxu0 }
 0x2f4   : > { %v3061_v40 = vpop.f32.mrb[39].mxu0 }
 0x2f9   : > { %v7556_v0 = vpop.f32.mrb[40].mxu0 }
 0x2fa   : > { %v3074_v48 = vpop.f32.mrb[41].mxu0 }
 0x2fb   : > { %v7557_v28 = vpop.f32.mrb[42].mxu0 }
 0x2fc   : > { %v3077_v38 = vpop.f32.mrb[43].mxu0 }
 0x301   : > { %v9977_v37 = vpop.f32.mrb[44].mxu0 }
 0x302   : > { %v9979_v2 = vpop.f32.mrb[45].mxu0 }
 0x303   : > { %v9981_v3 = vpop.f32.mrb[46].mxu0 }
 0x304   : > { %v9983_v35 = vpop.f32.mrb[47].mxu0 }
 0x36a   : > { %v7718_v45 = vpop.f32.mrb[16].mxu1 }
 0x36b   : > { %v7784_v31 = vadd.f32 %v7718_v45, %v7548_v21  ;;  %v5793_v39 = vpop.f32.mrb[17].mxu1 }
 0x36c   : > { %v7785_v17 = vadd.f32 %v5793_v39, %v3042_v50  ;;  %v7719_v52 = vpop.f32.mrb[18].mxu1 }
 0x36d   : > { %v5961_v13 = vmul.f32 %v7784_v31, %v9988_v7  ;;  %v7786_v61 = vadd.f32 %v7719_v52, %v7549_v42  ;;  %v5796_v58 = vpop.f32.mrb[19].mxu1 }
 0x36e   : > { %v5959_v20 = vmul.f32 %v7785_v17, %v9988_v7  ;;  %v7787_v4 = vadd.f32 %v5796_v58, %v3045_v47 }
 0x36f   : > { %v6000_v36 = vadd.f32 %v9993_v24, %v5961_v13  ;;  %v5962_v57 = vmul.f32 %v7786_v61, %v9988_v7 }
 0x370   : > { %v5998_v62 = vadd.f32 %v9993_v24, %v5959_v20  ;;  %v5960_v11 = vmul.f32 %v7787_v4, %v9988_v7 }
 0x371   : > { %v6001_v10 = vadd.f32 %v9993_v24, %v5962_v57  ;;  %v6032_v56 = vmax.f32 %v6000_v36, 0.0 }
 0x372   : > { %v5999_v49 = vadd.f32 %v9993_v24, %v5960_v11  ;;  %v7722_v55 = vpop.f32.mrb[20].mxu1  ;;  %v6030_v60 = vmax.f32 %v5998_v62, 0.0 }
 0x373   : > { %v6033_v41 = vmax.f32 %v6001_v10, 0.0  ;;  %v7788_v29 = vadd.f32 %v7722_v55, %v7552_v54  ;;  %v5809_v18 = vpop.f32.mrb[21].mxu1 }
 0x374   : > { %v6031_v16 = vmax.f32 %v5999_v49, 0.0  ;;  %v7789_v19 = vadd.f32 %v5809_v18, %v3058_v51  ;;  %v7723_v12 = vpop.f32.mrb[22].mxu1 }
 0x375   : > { %v6063_v9 = vpack.c.bf16 %v6033_v41, %v6032_v56  ;;  %v5965_v26 = vmul.f32 %v7788_v29, %v9988_v7  ;;  %v7790_v34 = vadd.f32 %v7723_v12, %v7553_v63  ;;  %v5812_v6 = vpop.f32.mrb[23].mxu1 }
 0x376   : > { %v6062_v44 = vpack.c.bf16 %v6031_v16, %v6030_v60  ;;  %v5963_v21 = vmul.f32 %v7789_v19, %v9988_v7  ;;  %v7791_v50 = vadd.f32 %v5812_v6, %v3061_v40 }
 0x377   : > { %v6004_v42 = vadd.f32 %v9993_v24, %v5965_v26  ;;  %v5966_v47 = vmul.f32 %v7790_v34, %v9988_v7 }
 0x378   : > { %v6002_v54 = vadd.f32 %v9993_v24, %v5963_v21  ;;  %v5964_v45 = vmul.f32 %v7791_v50, %v9988_v7  ;;  %7750 = vmatprep.mubr.msk.bf16.mxu0 %vm1880_vm7, %v6062_v44 }
 0x379   : > { %v6005_v51 = vadd.f32 %v9993_v24, %v5966_v47  ;;  %7751 = vmatmul.mubr.msk.bf16.vlgmr.msra.gmra.mrb[64].mxu0 %vm1880_vm7, %v6063_v9  ;;  %v6036_v39 = vmax.f32 %v6004_v42, 0.0 }
 0x37a   : > { %v6003_v63 = vadd.f32 %v9993_v24, %v5964_v45  ;;  %v7726_v31 = vpop.f32.mrb[24].mxu1  ;;  %v6034_v13 = vmax.f32 %v6002_v54, 0.0 }
 0x37b   : > { %v6037_v17 = vmax.f32 %v6005_v51, 0.0  ;;  %v7792_v40 = vadd.f32 %v7726_v31, %v7556_v0  ;;  %v5825_v52 = vpop.f32.mrb[25].mxu1 }
 0x37c   : > { %v6035_v61 = vmax.f32 %v6003_v63, 0.0  ;;  %v7793_v58 = vadd.f32 %v5825_v52, %v3074_v48  ;;  %v7727_v20 = vpop.f32.mrb[26].mxu1 }
 0x37d   : > { %v6065_v4 = vpack.c.bf16 %v6037_v17, %v6036_v39  ;;  %v5969_v36 = vmul.f32 %v7792_v40, %v9988_v7  ;;  %v7794_v57 = vadd.f32 %v7727_v20, %v7557_v28  ;;  %v5828_v62 = vpop.f32.mrb[27].mxu1 }
 0x37e   : > { %v6064_v11 = vpack.c.bf16 %v6035_v61, %v6034_v13  ;;  %v5967_v10 = vmul.f32 %v7793_v58, %v9988_v7  ;;  %v7795_v49 = vadd.f32 %v5828_v62, %v3077_v38 }
 0x37f   : > { %v6008_v55 = vadd.f32 %v9993_v24, %v5969_v36  ;;  %v5970_v56 = vmul.f32 %v7794_v57, %v9988_v7 }
 0x380   : > { %v6006_v0 = vadd.f32 %v9993_v24, %v5967_v10  ;;  %v5968_v41 = vmul.f32 %v7795_v49, %v9988_v7  ;;  %7754 = vmatprep.mubr.msk.bf16.mxu0 %vm1880_vm7, %v6064_v11 }
 0x381   : > { %v6009_v48 = vadd.f32 %v9993_v24, %v5970_v56  ;;  %7755 = vmatmul.mubr.msk.bf16.gmra.mrb[68].mxu0 %vm1880_vm7, %v6065_v4  ;;  %v6040_v18 = vmax.f32 %v6008_v55, 0.0 }
 0x382   : > { %v6007_v28 = vadd.f32 %v9993_v24, %v5968_v41  ;;  %v7730_v29 = vpop.f32.mrb[28].mxu1  ;;  %v6038_v19 = vmax.f32 %v6006_v0, 0.0 }
 0x383   : > { %v6041_v60 = vmax.f32 %v6009_v48, 0.0  ;;  %v7796_v38 = vadd.f32 %v7730_v29, %v9977_v37  ;;  %v5841_v16 = vpop.f32.mrb[29].mxu1 }
 0x384   : > { %v6039_v12 = vmax.f32 %v6007_v28, 0.0  ;;  %v7797_v9 = vadd.f32 %v5841_v16, %v9979_v2  ;;  %v7731_v26 = vpop.f32.mrb[30].mxu1 }
 0x385   : > { %v6067_v34 = vpack.c.bf16 %v6041_v60, %v6040_v18  ;;  %v5973_v6 = vmul.f32 %v7796_v38, %v9988_v7  ;;  %v7798_v44 = vadd.f32 %v7731_v26, %v9981_v3  ;;  %v5844_v21 = vpop.f32.mrb[31].mxu1 }
 0x386   : > { %v6066_v50 = vpack.c.bf16 %v6039_v12, %v6038_v19  ;;  %v5971_v42 = vmul.f32 %v7797_v9, %v9988_v7  ;;  %v7799_v47 = vadd.f32 %v5844_v21, %v9983_v35 }
 0x387   : > { %v6012_v54 = vadd.f32 %v9993_v24, %v5973_v6  ;;  %v5974_v37 = vmul.f32 %v7798_v44, %v9988_v7 }
 0x388   : > { %v6010_v45 = vadd.f32 %v9993_v24, %v5971_v42  ;;  %v5972_v2 = vmul.f32 %v7799_v47, %v9988_v7  ;;  %7758 = vmatprep.mubr.msk.bf16.mxu0 %vm1880_vm7, %v6066_v50 }
 0x389   : > { %v6013_v51 = vadd.f32 %v9993_v24, %v5974_v37  ;;  %7759 = vmatmul.mubr.msk.bf16.gmra.mrb[72].mxu0 %vm1880_vm7, %v6067_v34  ;;  %v6044_v31 = vmax.f32 %v6012_v54, 0.0 }
 0x38a   : > { %v6011_v3 = vadd.f32 %v9993_v24, %v5972_v2  ;;  %v7734_v63 = vpop.f32.mrb[0].mxu1  ;;  %v6042_v40 = vmax.f32 %v6010_v45, 0.0 }
 0x38b   : > { %v6045_v39 = vmax.f32 %v6013_v51, 0.0  ;;  %v7800_v35 = vadd.f32 %v7734_v63, %v9941_v53  ;;  %v5857_v17 = vpop.f32.mrb[1].mxu1 }
 0x38c   : > { %v6043_v52 = vmax.f32 %v6011_v3, 0.0  ;;  %v7801_v13 = vadd.f32 %v5857_v17, %v9943_v5  ;;  %v7735_v61 = vpop.f32.mrb[2].mxu1 }
 0x38d   : > { %v6069_v58 = vpack.c.bf16 %v6045_v39, %v6044_v31  ;;  %v5977_v20 = vmul.f32 %v7800_v35, %v9988_v7  ;;  %v7802_v4 = vadd.f32 %v7735_v61, %v9945_v46  ;;  %v5860_v36 = vpop.f32.mrb[3].mxu1 }
 0x38e   : > { %v6068_v57 = vpack.c.bf16 %v6043_v52, %v6042_v40  ;;  %v5975_v62 = vmul.f32 %v7801_v13, %v9988_v7  ;;  %v7803_v11 = vadd.f32 %v5860_v36, %v9947_v22 }
 0x38f   : > { %v6016_v10 = vadd.f32 %v9993_v24, %v5977_v20  ;;  %v5978_v53 = vmul.f32 %v7802_v4, %v9988_v7 }
 0x390   : > { %v6014_v49 = vadd.f32 %v9993_v24, %v5975_v62  ;;  %v5976_v5 = vmul.f32 %v7803_v11, %v9988_v7  ;;  %7762 = vmatprep.mubr.msk.bf16.mxu0 %vm1880_vm7, %v6068_v57 }
 0x391   : > { %v6017_v55 = vadd.f32 %v9993_v24, %v5978_v53  ;;  %7763 = vmatmul.mubr.msk.bf16.gmra.mrb[76].mxu0 %vm1880_vm7, %v6069_v58  ;;  %v6048_v0 = vmax.f32 %v6016_v10, 0.0 }
 0x392   : > { %v6015_v46 = vadd.f32 %v9993_v24, %v5976_v5  ;;  %v7738_v56 = vpop.f32.mrb[4].mxu1  ;;  %v6046_v28 = vmax.f32 %v6014_v49, 0.0 }
 0x393   : > { %v6049_v41 = vmax.f32 %v6017_v55, 0.0  ;;  %v7804_v22 = vadd.f32 %v7738_v56, %v9953_v27  ;;  %v5873_v48 = vpop.f32.mrb[5].mxu1 }
 0x394   : > { %v6047_v29 = vmax.f32 %v6015_v46, 0.0  ;;  %v7805_v18 = vadd.f32 %v5873_v48, %v9955_v14  ;;  %v7739_v60 = vpop.f32.mrb[6].mxu1 }
 0x395   : > { %v6071_v38 = vpack.c.bf16 %v6049_v41, %v6048_v0  ;;  %v5981_v16 = vmul.f32 %v7804_v22, %v9988_v7  ;;  %v7806_v19 = vadd.f32 %v7739_v60, %v9957_v8  ;;  %v5876_v12 = vpop.f32.mrb[7].mxu1 }
 0x396   : > { %v6070_v9 = vpack.c.bf16 %v6047_v29, %v6046_v28  ;;  %v5979_v26 = vmul.f32 %v7805_v18, %v9988_v7  ;;  %v7807_v34 = vadd.f32 %v5876_v12, %v9959_v25  ;;  %v8177_v12 = vld [vmem:[%s8276_s20 + $0x8] sm:$0xff]  }
 0x397   : > { %v6020_v6 = vadd.f32 %v9993_v24, %v5981_v16  ;;  %v5982_v27 = vmul.f32 %v7806_v19, %v9988_v7 }
 0x398   : > { %v6018_v44 = vadd.f32 %v9993_v24, %v5979_v26  ;;  %v5980_v14 = vmul.f32 %v7807_v34, %v9988_v7  ;;  %7766 = vmatprep.mubr.msk.bf16.mxu0 %vm1880_vm7, %v6070_v9  ;;  %v6371_v9 = vunpack.c.l.bf16 %v8177_v12  ;;  %v8178_v34 = vld [vmem:[%s8276_s20] sm:$0xff]  }
 0x399   : > { %v6021_v21 = vadd.f32 %v9993_v24, %v5982_v27  ;;  %7767 = vmatmul.mubr.msk.bf16.gmra.mrb[80].mxu0 %vm1880_vm7, %v6071_v38  ;;  %v6052_v42 = vmax.f32 %v6020_v6, 0.0  ;;  %v6369_v6 = vunpack.c.l.bf16 %v8178_v34 }
 0x39a   : > { %v6019_v8 = vadd.f32 %v9993_v24, %v5980_v14  ;;  %v7742_v50 = vpop.f32.mrb[8].mxu1  ;;  %v6050_v37 = vmax.f32 %v6018_v44, 0.0 }
 0x39b   : > { %v6053_v47 = vmax.f32 %v6021_v21, 0.0  ;;  %v7808_v25 = vadd.f32 %v7742_v50, %v9961_v33  ;;  %v5889_v54 = vpop.f32.mrb[9].mxu1 }
 0x39c   : > { %v6051_v45 = vmax.f32 %v6019_v8, 0.0  ;;  %v7809_v2 = vadd.f32 %v5889_v54, %v9963_v59  ;;  %v7743_v51 = vpop.f32.mrb[10].mxu1  ;;  %v6372_v8 = vunpack.c.h.bf16 %v8177_v12  ;;  %v8182_v12 = vld [vmem:[%s8276_s20 + $0x20] sm:$0xff]  }
 0x39d   : > { %v6073_v3 = vpack.c.bf16 %v6053_v47, %v6052_v42  ;;  %v5985_v63 = vmul.f32 %v7808_v25, %v9988_v7  ;;  %v7810_v31 = vadd.f32 %v7743_v51, %v9965_v43  ;;  %v5892_v39 = vpop.f32.mrb[11].mxu1  ;;  %v6370_v42 = vunpack.c.h.bf16 %v8178_v34 }
 0x39e   : > { %v6072_v35 = vpack.c.bf16 %v6051_v45, %v6050_v37  ;;  %v5983_v17 = vmul.f32 %v7809_v2, %v9988_v7  ;;  %v7811_v40 = vadd.f32 %v5892_v39, %v9967_v30 }
 0x39f   : > { %v6024_v52 = vadd.f32 %v9993_v24, %v5985_v63  ;;  %v5986_v33 = vmul.f32 %v7810_v31, %v9988_v7 }
 0x3a0   : > { %v6022_v13 = vadd.f32 %v9993_v24, %v5983_v17  ;;  %v5984_v59 = vmul.f32 %v7811_v40, %v9988_v7  ;;  %7770 = vmatprep.mubr.msk.bf16.mxu0 %vm1880_vm7, %v6072_v35 }
 0x3a1   : > { %v6025_v61 = vadd.f32 %v9993_v24, %v5986_v33  ;;  %7771 = vmatmul.mubr.msk.bf16.gmra.mrb[84].mxu0 %vm1880_vm7, %v6073_v3  ;;  %v6056_v20 = vmax.f32 %v6024_v52, 0.0  ;;  %v8179_v52 = vld [vmem:[%s8276_s20 + $0x18] sm:$0xff]  }
 0x3a2   : > { %v6023_v43 = vadd.f32 %v9993_v24, %v5984_v59  ;;  %v7746_v58 = vpop.f32.mrb[12].mxu1  ;;  %v6054_v57 = vmax.f32 %v6022_v13, 0.0  ;;  %v6375_v33 = vunpack.c.l.bf16 %v8179_v52 }
 0x3a3   : > { %v6057_v4 = vmax.f32 %v6025_v61, 0.0  ;;  %v7812_v30 = vadd.f32 %v7746_v58, %v9969_v15  ;;  %v5905_v36 = vpop.f32.mrb[13].mxu1  ;;  %v8180_v58 = vld [vmem:[%s8276_s20 + $0x10] sm:$0xff]  }
 0x3a4   : > { %v6055_v62 = vmax.f32 %v6023_v43, 0.0  ;;  %v7813_v11 = vadd.f32 %v5905_v36, %v9971_v32  ;;  %v7747_v10 = vpop.f32.mrb[14].mxu1 }
 0x3a5   : > { %v6075_v53 = vpack.c.bf16 %v6057_v4, %v6056_v20  ;;  %v5989_v49 = vmul.f32 %v7812_v30, %v9988_v7  ;;  %v7814_v5 = vadd.f32 %v7747_v10, %v9973_v23  ;;  %v5908_v55 = vpop.f32.mrb[15].mxu1  ;;  %v6373_v20 = vunpack.c.l.bf16 %v8180_v58 }
 0x3a6   : > { %v6074_v46 = vpack.c.bf16 %v6055_v62, %v6054_v57  ;;  %v5987_v56 = vmul.f32 %v7813_v11, %v9988_v7  ;;  %v7815_v0 = vadd.f32 %v5908_v55, %v9975_v1  ;;  %v6376_v62 = vunpack.c.h.bf16 %v8179_v52 }
 0x3a7   : > { %v6028_v41 = vadd.f32 %v9993_v24, %v5989_v49  ;;  %v5990_v15 = vmul.f32 %v7814_v5, %v9988_v7  ;;  %v6374_v5 = vunpack.c.h.bf16 %v8180_v58 }
 0x3a8   : > { %v6026_v22 = vadd.f32 %v9993_v24, %v5987_v56  ;;  %v5988_v32 = vmul.f32 %v7815_v0, %v9988_v7  ;;  %7774 = vmatprep.mubr.msk.bf16.mxu0 %vm1880_vm7, %v6074_v46  ;;  %v10098_v7 = vld [vmem:[%s10267_s8] ss:$0 sm:$0xff] }
 0x3a9   : > { %v6029_v48 = vadd.f32 %v9993_v24, %v5990_v15  ;;  %7775 = vmatmul.mubr.msk.bf16.gmra.mrb[88].mxu0 %vm1880_vm7, %v6075_v53  ;;  %v6060_v28 = vmax.f32 %v6028_v41, 0.0 }
 0x3aa   : > { %v6027_v23 = vadd.f32 %v9993_v24, %v5988_v32  ;;  %v6058_v29 = vmax.f32 %v6026_v22, 0.0  ;;  %v10103_v24 = vld [vmem:[%s10268_s9] ss:$0 sm:$0xff] }
 0x3ab   : > { %v6061_v1 = vmax.f32 %v6029_v48, 0.0 }
 0x3ac   : > { %v6059_v18 = vmax.f32 %v6027_v23, 0.0 }
 0x3ad   : > { %v6077_v60 = vpack.c.bf16 %v6061_v1, %v6060_v28 }
 0x3ae   : > { %v6076_v38 = vpack.c.bf16 %v6059_v18, %v6058_v29  ;;  %v8181_v29 = vld [vmem:[%s8276_s20 + $0x28] sm:$0xff]  }
 0x3af   : > { %v6379_v18 = vunpack.c.l.bf16 %v8181_v29 }
 0x3b0   : > { %7778 = vmatprep.mubr.msk.bf16.mxu0 %vm1880_vm7, %v6076_v38 }
 0x3b1   : > { %7779 = vmatmul.mubr.msk.bf16.gmra.mrb[92].mxu0 %vm1880_vm7, %v6077_v60 }
 0x44c   : > { %v7752_v16 = vpop.f32.mrb[64].mxu0 }
 0x44d   : > { %v6300_v19 = vmul.f32 %v7752_v16, %v10098_v7  ;;  %v6164_v26 = vpop.f32.mrb[65].mxu0 }
 0x44e   : > { %v6298_v27 = vmul.f32 %v10098_v7, %v6164_v26  ;;  %v7753_v44 = vpop.f32.mrb[66].mxu0 }
 0x44f   : > { %v6339_v14 = vadd.f32 %v10103_v24, %v6300_v19  ;;  %v6301_v21 = vmul.f32 %v7753_v44, %v10098_v7  ;;  %v6167_v50 = vpop.f32.mrb[67].mxu0  ;;  %v6380_v44 = vunpack.c.h.bf16 %v8181_v29 }
 0x450   : > { %v6337_v47 = vadd.f32 %v10103_v24, %v6298_v27  ;;  %v6299_v25 = vmul.f32 %v10098_v7, %v6167_v50 }
 0x451   : > { %v6403_v54 = vadd.f32 %v6371_v9, %v6339_v14  ;;  %v6340_v37 = vadd.f32 %v10103_v24, %v6301_v21  ;;  %v6377_v9 = vunpack.c.l.bf16 %v8182_v12 }
 0x452   : > { %v6401_v45 = vadd.f32 %v6369_v6, %v6337_v47  ;;  %v6338_v2 = vadd.f32 %v10103_v24, %v6299_v25 }
 0x453   : > { %v6435_v51 = vmax.f32 %v6403_v54, 0.0  ;;  %v6404_v3 = vadd.f32 %v6372_v8, %v6340_v37 }
 0x454   : > { %v6433_v63 = vmax.f32 %v6401_v45, 0.0  ;;  %v6402_v31 = vadd.f32 %v6370_v42, %v6338_v2  ;;  %v7756_v39 = vpop.f32.mrb[68].mxu0  ;;  %v6378_v42 = vunpack.c.h.bf16 %v8182_v12 }
 0x455   : > { %v7191_v35 = vpack.c.bf16 %v6435_v51, %v6435_v51  ;;  %v6436_v17 = vmax.f32 %v6404_v3, 0.0  ;;  %v6304_v40 = vmul.f32 %v7756_v39, %v10098_v7  ;;  %v6180_v13 = vpop.f32.mrb[69].mxu0 }
 0x456   : > { %v7189_v59 = vpack.c.bf16 %v6433_v63, %v6433_v63  ;;  %v6434_v61 = vmax.f32 %v6402_v31, 0.0  ;;  %v6302_v43 = vmul.f32 %v10098_v7, %v6180_v13  ;;  %v7757_v4 = vpop.f32.mrb[70].mxu0 }
 0x457   : > { %6596 = vst.msk [vmem:[%s10120_s11 + $0x8] sm:$0xf] %vm6593_vm1, %v7191_v35  ;;  %v7192_v30 = vpack.c.bf16 %v6436_v17, %v6436_v17  ;;  %v6343_v36 = vadd.f32 %v10103_v24, %v6304_v40  ;;  %v6305_v57 = vmul.f32 %v7757_v4, %v10098_v7  ;;  %v6183_v11 = vpop.f32.mrb[71].mxu0  ;;  %v8183_v17 = vld [vmem:[%s8276_s20 + $0x38] sm:$0xff]  }
 0x458   : > { %6594 = vst.msk [vmem:[%s10120_s11] sm:$0xf] %vm6593_vm1, %v7189_v59  ;;  %v7190_v10 = vpack.c.bf16 %v6434_v61, %v6434_v61  ;;  %v6341_v53 = vadd.f32 %v10103_v24, %v6302_v43  ;;  %v6303_v49 = vmul.f32 %v10098_v7, %v6183_v11  ;;  %v6383_v40 = vunpack.c.l.bf16 %v8183_v17  ;;  %v8184_v61 = vld [vmem:[%s8276_s20 + $0x30] sm:$0xff]  }
 0x459   : > { %6597 = vst.msk [vmem:[%s10120_s11 + $0xc] sm:$0xf] %vm6593_vm1, %v7192_v30  ;;  %v6407_v55 = vadd.f32 %v6375_v33, %v6343_v36  ;;  %v6344_v46 = vadd.f32 %v10103_v24, %v6305_v57  ;;  %v6381_v43 = vunpack.c.l.bf16 %v8184_v61  ;;  %v6384_v36 = vunpack.c.h.bf16 %v8183_v17 }
 0x45a   : > { %6595 = vst.msk [vmem:[%s10120_s11 + $0x4] sm:$0xf] %vm6593_vm1, %v7190_v10  ;;  %v6405_v56 = vadd.f32 %v6373_v20, %v6341_v53  ;;  %v6342_v0 = vadd.f32 %v10103_v24, %v6303_v49  ;;  %v6382_v53 = vunpack.c.h.bf16 %v8184_v61 }
 0x45b   : > { %v6439_v41 = vmax.f32 %v6407_v55, 0.0  ;;  %v6408_v15 = vadd.f32 %v6376_v62, %v6344_v46 }
 0x45c   : > { %v6437_v22 = vmax.f32 %v6405_v56, 0.0  ;;  %v6406_v32 = vadd.f32 %v6374_v5, %v6342_v0  ;;  %v7760_v48 = vpop.f32.mrb[72].mxu0 }
 0x45d   : > { %v7195_v23 = vpack.c.bf16 %v6439_v41, %v6439_v41  ;;  %v6440_v28 = vmax.f32 %v6408_v15, 0.0  ;;  %v6308_v1 = vmul.f32 %v7760_v48, %v10098_v7  ;;  %v6196_v60 = vpop.f32.mrb[73].mxu0 }
 0x45e   : > { %v7193_v38 = vpack.c.bf16 %v6437_v22, %v6437_v22  ;;  %v6438_v16 = vmax.f32 %v6406_v32, 0.0  ;;  %v6306_v19 = vmul.f32 %v10098_v7, %v6196_v60  ;;  %v7761_v26 = vpop.f32.mrb[74].mxu0 }
 0x45f   : > { %6600 = vst.msk [vmem:[%s10120_s11 + $0x18] sm:$0xf] %vm6593_vm1, %v7195_v23  ;;  %v7196_v34 = vpack.c.bf16 %v6440_v28, %v6440_v28  ;;  %v6347_v6 = vadd.f32 %v10103_v24, %v6308_v1  ;;  %v6309_v27 = vmul.f32 %v7761_v26, %v10098_v7  ;;  %v6199_v14 = vpop.f32.mrb[75].mxu0  ;;  %v8185_v28 = vld [vmem:[%s8276_s20 + $0x48] sm:$0xff]  }
 0x460   : > { %6598 = vst.msk [vmem:[%s10120_s11 + $0x10] sm:$0xf] %vm6593_vm1, %v7193_v38  ;;  %v7194_v21 = vpack.c.bf16 %v6438_v16, %v6438_v16  ;;  %v6345_v8 = vadd.f32 %v10103_v24, %v6306_v19  ;;  %v6307_v50 = vmul.f32 %v10098_v7, %v6199_v14  ;;  %v6387_v1 = vunpack.c.l.bf16 %v8185_v28  ;;  %v8186_v16 = vld [vmem:[%s8276_s20 + $0x40] sm:$0xff]  }
 0x461   : > { %6601 = vst.msk [vmem:[%s10120_s11 + $0x1c] sm:$0xf] %vm6593_vm1, %v7196_v34  ;;  %v6411_v47 = vadd.f32 %v6379_v18, %v6347_v6  ;;  %v6348_v25 = vadd.f32 %v10103_v24, %v6309_v27  ;;  %v6385_v19 = vunpack.c.l.bf16 %v8186_v16  ;;  %v6388_v6 = vunpack.c.h.bf16 %v8185_v28 }
 0x462   : > { %6599 = vst.msk [vmem:[%s10120_s11 + $0x14] sm:$0xf] %vm6593_vm1, %v7194_v21  ;;  %v6409_v54 = vadd.f32 %v6377_v9, %v6345_v8  ;;  %v6346_v37 = vadd.f32 %v10103_v24, %v6307_v50  ;;  %v6386_v8 = vunpack.c.h.bf16 %v8186_v16 }
 0x463   : > { %v6443_v45 = vmax.f32 %v6411_v47, 0.0  ;;  %v6412_v2 = vadd.f32 %v6380_v44, %v6348_v25 }
 0x464   : > { %v6441_v51 = vmax.f32 %v6409_v54, 0.0  ;;  %v6410_v3 = vadd.f32 %v6378_v42, %v6346_v37  ;;  %v7764_v63 = vpop.f32.mrb[76].mxu0 }
 0x465   : > { %v7199_v31 = vpack.c.bf16 %v6443_v45, %v6443_v45  ;;  %v6444_v39 = vmax.f32 %v6412_v2, 0.0  ;;  %v6312_v35 = vmul.f32 %v7764_v63, %v10098_v7  ;;  %v6212_v52 = vpop.f32.mrb[77].mxu0 }
 0x466   : > { %v7197_v33 = vpack.c.bf16 %v6441_v51, %v6441_v51  ;;  %v6442_v13 = vmax.f32 %v6410_v3, 0.0  ;;  %v6310_v59 = vmul.f32 %v10098_v7, %v6212_v52  ;;  %v7765_v58 = vpop.f32.mrb[78].mxu0 }
 0x467   : > { %6604 = vst.msk [vmem:[%s10120_s11 + $0x28] sm:$0xf] %vm6593_vm1, %v7199_v31  ;;  %v7200_v20 = vpack.c.bf16 %v6444_v39, %v6444_v39  ;;  %v6351_v4 = vadd.f32 %v10103_v24, %v6312_v35  ;;  %v6313_v30 = vmul.f32 %v7765_v58, %v10098_v7  ;;  %v6215_v57 = vpop.f32.mrb[79].mxu0  ;;  %v8187_v39 = vld [vmem:[%s8276_s20 + $0x58] sm:$0xff]  }
 0x468   : > { %6602 = vst.msk [vmem:[%s10120_s11 + $0x20] sm:$0xf] %vm6593_vm1, %v7197_v33  ;;  %v7198_v62 = vpack.c.bf16 %v6442_v13, %v6442_v13  ;;  %v6349_v11 = vadd.f32 %v10103_v24, %v6310_v59  ;;  %v6311_v10 = vmul.f32 %v10098_v7, %v6215_v57  ;;  %v6391_v35 = vunpack.c.l.bf16 %v8187_v39  ;;  %v8188_v13 = vld [vmem:[%s8276_s20 + $0x50] sm:$0xff]  }
 0x469   : > { %6605 = vst.msk [vmem:[%s10120_s11 + $0x2c] sm:$0xf] %vm6593_vm1, %v7200_v20  ;;  %v6415_v49 = vadd.f32 %v6383_v40, %v6351_v4  ;;  %v6352_v5 = vadd.f32 %v10103_v24, %v6313_v30  ;;  %v6389_v59 = vunpack.c.l.bf16 %v8188_v13  ;;  %v6392_v4 = vunpack.c.h.bf16 %v8187_v39 }
 0x46a   : > { %6603 = vst.msk [vmem:[%s10120_s11 + $0x24] sm:$0xf] %vm6593_vm1, %v7198_v62  ;;  %v6413_v55 = vadd.f32 %v6381_v43, %v6349_v11  ;;  %v6350_v46 = vadd.f32 %v10103_v24, %v6311_v10  ;;  %v6390_v11 = vunpack.c.h.bf16 %v8188_v13 }
 0x46b   : > { %v6447_v56 = vmax.f32 %v6415_v49, 0.0  ;;  %v6416_v0 = vadd.f32 %v6384_v36, %v6352_v5 }
 0x46c   : > { %v6445_v41 = vmax.f32 %v6413_v55, 0.0  ;;  %v6414_v15 = vadd.f32 %v6382_v53, %v6350_v46  ;;  %v7768_v22 = vpop.f32.mrb[80].mxu0 }
 0x46d   : > { %v7203_v32 = vpack.c.bf16 %v6447_v56, %v6447_v56  ;;  %v6448_v48 = vmax.f32 %v6416_v0, 0.0  ;;  %v6316_v23 = vmul.f32 %v7768_v22, %v10098_v7  ;;  %v6228_v29 = vpop.f32.mrb[81].mxu0 }
 0x46e   : > { %v7201_v18 = vpack.c.bf16 %v6445_v41, %v6445_v41  ;;  %v6446_v60 = vmax.f32 %v6414_v15, 0.0  ;;  %v6314_v38 = vmul.f32 %v10098_v7, %v6228_v29  ;;  %v7769_v12 = vpop.f32.mrb[82].mxu0 }
 0x46f   : > { %6608 = vst.msk [vmem:[%s10120_s11 + $0x38] sm:$0xf] %vm6593_vm1, %v7203_v32  ;;  %v7204_v9 = vpack.c.bf16 %v6448_v48, %v6448_v48  ;;  %v6355_v26 = vadd.f32 %v10103_v24, %v6316_v23  ;;  %v6317_v34 = vmul.f32 %v7769_v12, %v10098_v7  ;;  %v6231_v27 = vpop.f32.mrb[83].mxu0  ;;  %v8189_v48 = vld [vmem:[%s8276_s20 + $0x68] sm:$0xff]  }
 0x470   : > { %6606 = vst.msk [vmem:[%s10120_s11 + $0x30] sm:$0xf] %vm6593_vm1, %v7201_v18  ;;  %v7202_v44 = vpack.c.bf16 %v6446_v60, %v6446_v60  ;;  %v6353_v14 = vadd.f32 %v10103_v24, %v6314_v38  ;;  %v6315_v21 = vmul.f32 %v10098_v7, %v6231_v27  ;;  %v6395_v23 = vunpack.c.l.bf16 %v8189_v48  ;;  %v8190_v60 = vld [vmem:[%s8276_s20 + $0x60] sm:$0xff]  }
 0x471   : > { %6609 = vst.msk [vmem:[%s10120_s11 + $0x3c] sm:$0xf] %vm6593_vm1, %v7204_v9  ;;  %v6419_v50 = vadd.f32 %v6387_v1, %v6355_v26  ;;  %v6356_v42 = vadd.f32 %v10103_v24, %v6317_v34  ;;  %v6393_v38 = vunpack.c.l.bf16 %v8190_v60  ;;  %v6396_v26 = vunpack.c.h.bf16 %v8189_v48 }
 0x472   : > { %6607 = vst.msk [vmem:[%s10120_s11 + $0x34] sm:$0xf] %vm6593_vm1, %v7202_v44  ;;  %v6417_v47 = vadd.f32 %v6385_v19, %v6353_v14  ;;  %v6354_v25 = vadd.f32 %v10103_v24, %v6315_v21  ;;  %v6394_v14 = vunpack.c.h.bf16 %v8190_v60 }
 0x473   : > { %v6451_v54 = vmax.f32 %v6419_v50, 0.0  ;;  %v6420_v37 = vadd.f32 %v6388_v6, %v6356_v42 }
 0x474   : > { %v6449_v45 = vmax.f32 %v6417_v47, 0.0  ;;  %v6418_v2 = vadd.f32 %v6386_v8, %v6354_v25  ;;  %v7772_v51 = vpop.f32.mrb[84].mxu0 }
 0x475   : > { %v7207_v3 = vpack.c.bf16 %v6451_v54, %v6451_v54  ;;  %v6452_v63 = vmax.f32 %v6420_v37, 0.0  ;;  %v6320_v31 = vmul.f32 %v7772_v51, %v10098_v7  ;;  %v6244_v17 = vpop.f32.mrb[85].mxu0 }
 0x476   : > { %v7205_v40 = vpack.c.bf16 %v6449_v45, %v6449_v45  ;;  %v6450_v52 = vmax.f32 %v6418_v2, 0.0  ;;  %v6318_v33 = vmul.f32 %v10098_v7, %v6244_v17  ;;  %v7773_v61 = vpop.f32.mrb[86].mxu0 }
 0x477   : > { %6612 = vst.msk [vmem:[%s10120_s11 + $0x48] sm:$0xf] %vm6593_vm1, %v7207_v3  ;;  %v7208_v43 = vpack.c.bf16 %v6452_v63, %v6452_v63  ;;  %v6359_v58 = vadd.f32 %v10103_v24, %v6320_v31  ;;  %v6321_v20 = vmul.f32 %v7773_v61, %v10098_v7  ;;  %v6247_v30 = vpop.f32.mrb[87].mxu0  ;;  %v8191_v63 = vld [vmem:[%s8276_s20 + $0x78] sm:$0xff]  }
 0x478   : > { %6610 = vst.msk [vmem:[%s10120_s11 + $0x40] sm:$0xf] %vm6593_vm1, %v7205_v40  ;;  %v7206_v36 = vpack.c.bf16 %v6450_v52, %v6450_v52  ;;  %v6357_v57 = vadd.f32 %v10103_v24, %v6318_v33  ;;  %v6319_v62 = vmul.f32 %v10098_v7, %v6247_v30  ;;  %v6399_v31 = vunpack.c.l.bf16 %v8191_v63  ;;  %v8192_v52 = vld [vmem:[%s8276_s20 + $0x70] sm:$0xff]  }
 0x479   : > { %6613 = vst.msk [vmem:[%s10120_s11 + $0x4c] sm:$0xf] %vm6593_vm1, %v7208_v43  ;;  %v6423_v10 = vadd.f32 %v6391_v35, %v6359_v58  ;;  %v6360_v53 = vadd.f32 %v10103_v24, %v6321_v20  ;;  %v6397_v33 = vunpack.c.l.bf16 %v8192_v52  ;;  %v6400_v58 = vunpack.c.h.bf16 %v8191_v63 }
 0x47a   : > { %6611 = vst.msk [vmem:[%s10120_s11 + $0x44] sm:$0xf] %vm6593_vm1, %v7206_v36  ;;  %v6421_v49 = vadd.f32 %v6389_v59, %v6357_v57  ;;  %v6358_v5 = vadd.f32 %v10103_v24, %v6319_v62  ;;  %v6398_v57 = vunpack.c.h.bf16 %v8192_v52 }
 0x47b   : > { %v6455_v55 = vmax.f32 %v6423_v10, 0.0  ;;  %v6424_v46 = vadd.f32 %v6392_v4, %v6360_v53 }
 0x47c   : > { %v6453_v56 = vmax.f32 %v6421_v49, 0.0  ;;  %v6422_v0 = vadd.f32 %v6390_v11, %v6358_v5  ;;  %v7776_v41 = vpop.f32.mrb[88].mxu0 }
 0x47d   : > { %v7211_v15 = vpack.c.bf16 %v6455_v55, %v6455_v55  ;;  %v6456_v22 = vmax.f32 %v6424_v46, 0.0  ;;  %v6324_v32 = vmul.f32 %v7776_v41, %v10098_v7  ;;  %v6260_v28 = vpop.f32.mrb[89].mxu0 }
 0x47e   : > { %v7209_v1 = vpack.c.bf16 %v6453_v56, %v6453_v56  ;;  %v6454_v29 = vmax.f32 %v6422_v0, 0.0  ;;  %v6322_v18 = vmul.f32 %v10098_v7, %v6260_v28  ;;  %v7777_v16 = vpop.f32.mrb[90].mxu0 }
 0x47f   : > { %6616 = vst.msk [vmem:[%s10120_s11 + $0x58] sm:$0xf] %vm6593_vm1, %v7211_v15  ;;  %v7212_v19 = vpack.c.bf16 %v6456_v22, %v6456_v22  ;;  %v6363_v12 = vadd.f32 %v10103_v24, %v6324_v32  ;;  %v6325_v9 = vmul.f32 %v7777_v16, %v10098_v7  ;;  %v6263_v34 = vpop.f32.mrb[91].mxu0 }
 0x480   : > { %6614 = vst.msk [vmem:[%s10120_s11 + $0x50] sm:$0xf] %vm6593_vm1, %v7209_v1  ;;  %v7210_v6 = vpack.c.bf16 %v6454_v29, %v6454_v29  ;;  %v6361_v27 = vadd.f32 %v10103_v24, %v6322_v18  ;;  %v6323_v44 = vmul.f32 %v10098_v7, %v6263_v34 }
 0x481   : > { %6617 = vst.msk [vmem:[%s10120_s11 + $0x5c] sm:$0xf] %vm6593_vm1, %v7212_v19  ;;  %v6427_v21 = vadd.f32 %v6395_v23, %v6363_v12  ;;  %v6364_v8 = vadd.f32 %v10103_v24, %v6325_v9 }
 0x482   : > { %6615 = vst.msk [vmem:[%s10120_s11 + $0x54] sm:$0xf] %vm6593_vm1, %v7210_v6  ;;  %v6425_v50 = vadd.f32 %v6393_v38, %v6361_v27  ;;  %v6362_v42 = vadd.f32 %v10103_v24, %v6323_v44 }
 0x483   : > { %v6459_v47 = vmax.f32 %v6427_v21, 0.0  ;;  %v6428_v25 = vadd.f32 %v6396_v26, %v6364_v8 }
 0x484   : > { %v6457_v54 = vmax.f32 %v6425_v50, 0.0  ;;  %v6426_v37 = vadd.f32 %v6394_v14, %v6362_v42  ;;  %v7780_v45 = vpop.f32.mrb[92].mxu0 }
 0x485   : > { %v7215_v2 = vpack.c.bf16 %v6459_v47, %v6459_v47  ;;  %v6460_v51 = vmax.f32 %v6428_v25, 0.0  ;;  %v6328_v3 = vmul.f32 %v7780_v45, %v10098_v7  ;;  %v6276_v39 = vpop.f32.mrb[93].mxu0 }
 0x486   : > { %v7213_v35 = vpack.c.bf16 %v6457_v54, %v6457_v54  ;;  %v6458_v17 = vmax.f32 %v6426_v37, 0.0  ;;  %v6326_v40 = vmul.f32 %v10098_v7, %v6276_v39  ;;  %v7781_v13 = vpop.f32.mrb[94].mxu0 }
 0x487   : > { %6620 = vst.msk [vmem:[%s10120_s11 + $0x68] sm:$0xf] %vm6593_vm1, %v7215_v2  ;;  %v7216_v59 = vpack.c.bf16 %v6460_v51, %v6460_v51  ;;  %v6367_v61 = vadd.f32 %v10103_v24, %v6328_v3  ;;  %v6329_v43 = vmul.f32 %v7781_v13, %v10098_v7  ;;  %v6279_v20 = vpop.f32.mrb[95].mxu0 }
 0x488   : > { %6618 = vst.msk [vmem:[%s10120_s11 + $0x60] sm:$0xf] %vm6593_vm1, %v7213_v35  ;;  %v7214_v4 = vpack.c.bf16 %v6458_v17, %v6458_v17  ;;  %v6365_v30 = vadd.f32 %v10103_v24, %v6326_v40  ;;  %v6327_v36 = vmul.f32 %v10098_v7, %v6279_v20 }
 0x489   : > { %6621 = vst.msk [vmem:[%s10120_s11 + $0x6c] sm:$0xf] %vm6593_vm1, %v7216_v59  ;;  %v6431_v62 = vadd.f32 %v6399_v31, %v6367_v61  ;;  %v6368_v11 = vadd.f32 %v10103_v24, %v6329_v43 }
 0x48a   : > { %6619 = vst.msk [vmem:[%s10120_s11 + $0x64] sm:$0xf] %vm6593_vm1, %v7214_v4  ;;  %v6429_v10 = vadd.f32 %v6397_v33, %v6365_v30  ;;  %v6366_v53 = vadd.f32 %v10103_v24, %v6327_v36 }
 0x48b   : > { %v6463_v49 = vmax.f32 %v6431_v62, 0.0  ;;  %v6432_v5 = vadd.f32 %v6400_v58, %v6368_v11 }
 0x48c   : > { %v6461_v55 = vmax.f32 %v6429_v10, 0.0  ;;  %v6430_v46 = vadd.f32 %v6398_v57, %v6366_v53 }
 0x48d   : > { %v7219_v7 = vpack.c.bf16 %v6463_v49, %v6463_v49  ;;  %v6464_v56 = vmax.f32 %v6432_v5, 0.0 }
 0x48e   : > { %v7217_v0 = vpack.c.bf16 %v6461_v55, %v6461_v55  ;;  %v6462_v41 = vmax.f32 %v6430_v46, 0.0 }
 0x48f   : > { %6624 = vst.msk [vmem:[%s10120_s11 + $0x78] sm:$0xf] %vm6593_vm1, %v7219_v7  ;;  %v7220_v15 = vpack.c.bf16 %v6464_v56, %v6464_v56 }
 0x490   : > { %6622 = vst.msk [vmem:[%s10120_s11 + $0x70] sm:$0xf] %vm6593_vm1, %v7217_v0  ;;  %v7218_v22 = vpack.c.bf16 %v6462_v41, %v6462_v41 }
 0x491   : > { %6625 = vst.msk [vmem:[%s10120_s11 + $0x7c] sm:$0xf] %vm6593_vm1, %v7220_v15 }
 0x492   : > { %6623 = vst.msk [vmem:[%s10120_s11 + $0x74] sm:$0xf] %vm6593_vm1, %v7218_v22 }
 0x493 PF: > { %s20_s13 = sadd.s32 1, %s8199_s13  }
 0x494   : > { %p17_p4 = scmp.ge.s32.totalorder %s20_s13, 4  }
 0x496   :  { %19 = sbr.rel (!%p17_p4) target bundleno = 1 (0x1), region = 100 }

</bundles_post_ra>
